<compile_context>
chip_gen: v7x
topology: tpu7x:2x2x1
jax: 0.10.0
libtpu: 0.0.40
codegen_flags: <defaults>
</compile_context>

<pallas_src>
import functools

import jax
import jax.numpy as jnp
from jax import lax
from jax.experimental import pallas as pl
from jax.experimental.pallas import tpu as pltpu

# ----- static configuration (small shapes, consistent with the module) -----
BATCH = 2
LEADS = 12                     # n_leads (TCN num_inputs=12 hard-codes this)
SEQ_LEN = 16
STEP_LEN = 8
N_STEP = SEQ_LEN // STEP_LEN
N_TOT = BATCH * N_STEP         # 4 step windows
ROWS = N_TOT * STEP_LEN        # 32 rows in the channels-last activation slab
NUM_CLASSES = 9
FEAT = 52                      # GRU input/hidden size (hard-coded in GraphLearning)
OUT_PAD = 128                  # lane-padded logits
TCN_CFG = [(LEADS, 64, 1), (64, 128, 2), (128, 128, 4), (128, LEADS, 8)]  # (Cin, Cout, dil)
NEG_SLOPE = 0.01               # LeakyReLU default
BN_EPS = 1e-5
SEQ_MASK = SEQ_LEN - 1
SEQ_SHIFT = SEQ_LEN.bit_length() - 1
STEP_MASK = STEP_LEN - 1

f32 = jnp.float32

# first-tap elision in the last TCN block relies on dilation >= STEP_LEN
assert TCN_CFG[-1][2] >= STEP_LEN


# ============================== packed-operand layouts ==============================

def _ceil8(n):
    return -(-n // 8) * 8


def _build_layout(entries):
    offs, row = {}, 0
    for name, r, c in entries:
        offs[name] = (row, r, c)
        row += _ceil8(r)
    return offs, row


def _gru_entries():
    return [("wi", FEAT, 3 * FEAT), ("wh", FEAT, 3 * FEAT),
            ("bi", 1, 3 * FEAT), ("bh", 1, 3 * FEAT),
            ("aw0", FEAT, 3 * LEADS), ("aw1", FEAT, 3 * LEADS)]


def _main_entries():
    ents = []
    for li, (cin, cout, d) in enumerate(TCN_CFG):
        two_tap = d < STEP_LEN
        if two_tap:
            ents.append((f"t{li}_c1w0", cin, cout))
        ents += [(f"t{li}_c1w1", cin, cout), (f"t{li}_c1b", 1, cout)]
        if two_tap:
            ents.append((f"t{li}_c2w0", cout, cout))
        ents += [(f"t{li}_c2w1", cout, cout), (f"t{li}_c2b", 1, cout)]
        if cin != cout:
            ents += [(f"t{li}_dw", cin, cout), (f"t{li}_db", 1, cout)]
    ents += [
        ("head_m1", ROWS, ROWS), ("head_b1", ROWS, 1),
        ("bn_scale", 1, LEADS), ("bn_shift", 1, LEADS),
        ("head_m2", ROWS, ROWS), ("head_b2", ROWS, 1),
        ("fc_b1", 1, SEQ_LEN),
        ("fc_w2", SEQ_LEN, SEQ_LEN), ("fc_b2", 1, SEQ_LEN),
        ("fc_w3", SEQ_LEN, OUT_PAD), ("fc_b3", 1, OUT_PAD),
    ]
    return ents


GRU_LAYOUT, GRU_ROWS = _build_layout(_gru_entries())
MAIN_LAYOUT, MAIN_ROWS = _build_layout(_main_entries())
GRU_WIDTH = 3 * FEAT       # 156
MAIN_WIDTH = 128


def _pack(layout, total_rows, width, tensors):
    buf = jnp.zeros((total_rows, width), f32)
    for name, arr in tensors.items():
        off, r, c = layout[name]
        arr = jnp.asarray(arr, f32)
        assert arr.shape == (r, c), (name, arr.shape, (r, c))
        buf = buf.at[off:off + r, :c].set(arr)
    return buf


def _block_diag(blocks):
    r, c = blocks[0].shape
    out = jnp.zeros((len(blocks) * r, len(blocks) * c), f32)
    for i, blk in enumerate(blocks):
        out = out.at[i * r:(i + 1) * r, i * c:(i + 1) * c].set(blk)
    return out


# ============================== the single fused Pallas kernel ==============================

def _dot(a, b):
    return jnp.dot(a, b, preferred_element_type=jnp.float32)


def _leaky(v):
    return jnp.where(v > 0.0, v, NEG_SLOPE * v)


def fused_kernel(act_gru_ref, act_x_ref, pk_gru_ref, pk_main_ref, w_wide_ref,
                 out_ref, hs_ref):
    def G(name):
        off, r, c = GRU_LAYOUT[name]
        return pk_gru_ref[off:off + r, 0:c]

    def M(name):
        off, r, c = MAIN_LAYOUT[name]
        return pk_main_ref[off:off + r, 0:c]

    F = FEAT
    L = STEP_LEN

    # ---- GraphLearning GRU: input-gate matmul hoisted out of the recurrence ----
    wh = G("wh")
    bh = G("bh")
    gi_all = _dot(act_gru_ref[...], G("wi")) + G("bi")     # (LEADS*B, 3F), rows t*B + b
    h = jnp.zeros((BATCH, F), f32)
    for t in range(LEADS):                                 # static unrolled time loop
        gi = gi_all[t * BATCH:(t + 1) * BATCH, :]
        gh = _dot(h, wh) + bh
        r = jax.nn.sigmoid(gi[:, 0:F] + gh[:, 0:F])
        z = jax.nn.sigmoid(gi[:, F:2 * F] + gh[:, F:2 * F])
        n = jnp.tanh(gi[:, 2 * F:3 * F] + r * gh[:, 2 * F:3 * F])
        h = (1.0 - z) * n + z * h
        hs_ref[:, t, :] = h                                # (BATCH, LEADS, FEAT) scratch

    # ---- attention adjacency + sym-normalized Laplacian; gx = x_t @ L (L symmetric) ----
    gx = []
    for b in range(BATCH):
        hb = hs_ref[b]                                     # (LEADS, FEAT)
        kqv = _dot(hb, G(f"aw{b}"))                        # fused k|q|v: (LEADS, 3*LEADS)
        k = kqv[:, 0:LEADS]
        q = kqv[:, LEADS:2 * LEADS]
        v = kqv[:, 2 * LEADS:3 * LEADS]
        s = _dot(q, k.T)                                   # (LEADS, LEADS)
        m = jnp.max(s, axis=0, keepdims=True)              # softmax over dim=1 of (B,T,T)
        e = jnp.exp(s - m)
        att = e / jnp.sum(e, axis=0, keepdims=True)
        adj = jnp.maximum(_dot(att, v), 0.0)
        adj = 0.5 * (adj + adj.T)
        rs_c = jnp.sum(adj, axis=0, keepdims=True)
        rs_r = jnp.sum(adj, axis=1, keepdims=True)
        d_c = jnp.where(rs_c > 0.0, lax.rsqrt(rs_c), 0.0)  # inf -> 0
        d_r = jnp.where(rs_r > 0.0, lax.rsqrt(rs_r), 0.0)
        mul_L = d_r * adj * d_c                            # D^-1/2 A D^-1/2 (symmetric)
        xb = act_x_ref[b * SEQ_LEN:(b + 1) * SEQ_LEN, :]   # (SEQ, LEADS) time-major
        gx.append(_dot(xb, mul_L))                         # == (L @ x_window).T, both windows
    t2 = jnp.concatenate(gx, axis=0)                       # (32, LEADS), rows (b, s, t)

    # ---- TCN: dilated causal convs (k=2); shift = zero-padded slab + per-window mask ----
    def causal(vv, w0_name, w1_name, b_name, d):
        out = _dot(vv, M(w1_name)) + M(b_name)
        if d < L:
            cch = vv.shape[-1]
            shifted = jnp.concatenate(
                [jnp.zeros((d, cch), f32), vv[:ROWS - d, :]], axis=0)
            row_i = lax.broadcasted_iota(jnp.int32, (ROWS, cch), 0)
            prev = jnp.where((row_i & STEP_MASK) >= d, shifted, 0.0)
            out = out + _dot(prev, M(w0_name))
        # d >= STEP_LEN: first tap only ever sees zero padding -> statically elided
        return jnp.maximum(out, 0.0)

    cur = t2
    for li, (cin, cout, d) in enumerate(TCN_CFG):
        y = causal(cur, f"t{li}_c1w0", f"t{li}_c1w1", f"t{li}_c1b", d)
        # TODO(synk): Dropout(0.2) inside the TemporalBlock is eval-mode identity.
        zz = causal(y, f"t{li}_c2w0", f"t{li}_c2w1", f"t{li}_c2b", d)
        res = (_dot(cur, M(f"t{li}_dw")) + M(f"t{li}_db")) if cin != cout else cur
        cur = jnp.maximum(zz + res, 0.0)                   # (32, cout)

    # ---- block_out head, batched channels-last via precomputed block-diagonal matrices ----
    yy = _leaky(_dot(M("head_m1"), cur) + M("head_b1"))    # gcn + Linear1 fused
    yy = yy * M("bn_scale") + M("bn_shift")                # BatchNorm1d(leads), eval mode
    # TODO(synk): Dropout(0.5) in block_out is eval-mode identity.
    oc = _dot(M("head_m2"), yy) + M("head_b2")             # (32, LEADS) == res, channels-last

    # ---- fc1 over flattened (12*16) features without relayout:
    #      wide matmul + diagonal-block mask + fold/pool matmuls ----
    tt = _dot(oc, w_wide_ref[...])                         # (32, 256)
    ri = lax.broadcasted_iota(jnp.int32, (ROWS, SEQ_LEN * SEQ_LEN), 0)
    ci = lax.broadcasted_iota(jnp.int32, (ROWS, SEQ_LEN * SEQ_LEN), 1)
    tt = jnp.where((ci >> SEQ_SHIFT) == (ri & SEQ_MASK), tt, 0.0)
    fr = lax.broadcasted_iota(jnp.int32, (SEQ_LEN * SEQ_LEN, SEQ_LEN), 0)
    fc_i = lax.broadcasted_iota(jnp.int32, (SEQ_LEN * SEQ_LEN, SEQ_LEN), 1)
    fold = jnp.where((fr & SEQ_MASK) == fc_i, 1.0, 0.0)    # (256, 16)
    u = _dot(tt, fold)                                     # (32, 16) per-row diag terms
    pr = lax.broadcasted_iota(jnp.int32, (BATCH, ROWS), 0)
    pc = lax.broadcasted_iota(jnp.int32, (BATCH, ROWS), 1)
    pool = jnp.where((pc >> SEQ_SHIFT) == pr, 1.0, 0.0)    # sums each batch's 16 rows
    y1 = _leaky(_dot(pool, u) + M("fc_b1"))
    y2 = _leaky(_dot(y1, M("fc_w2")) + M("fc_b2"))
    out_ref[...] = _dot(y2, M("fc_w3")) + M("fc_b3")       # (B, 128) lane-padded logits


# ============================== wrapper ==============================

@jax.jit
def ecg_gcn_tcn_forward(x, features, packed):
    # GRU input: features.permute(0,2,1) -> (B, LEADS, FEAT); kernel wants time-major rows.
    act_gru = jnp.transpose(features, (2, 0, 1)).reshape(LEADS * BATCH, FEAT)
    # x pre-transposed so gx = x_t @ mul_L gives contiguous channels-last windows.
    act_x = jnp.transpose(x, (0, 2, 1)).reshape(BATCH * SEQ_LEN, LEADS)
    out = pl.pallas_call(
        fused_kernel,
        out_shape=jax.ShapeDtypeStruct((BATCH, OUT_PAD), f32),
        scratch_shapes=[pltpu.VMEM((BATCH, LEADS, FEAT), f32)],
    )(act_gru, act_x, packed['pk_gru'], packed['pk_main'], packed['w_wide'])
    return out[:, :NUM_CLASSES]


# ============================== params, packing & pure-JAX reference ==============================

def init_params(key):
    ks = iter(jax.random.split(key, 96))

    def nrm(shape, scale=0.1):
        return (scale * jax.random.normal(next(ks), shape)).astype(f32)

    p = {}
    # GraphLearning GRU (input=hidden=52); gates concatenated [r | z | n], pre-transposed
    p['gru_wi'] = nrm((FEAT, 3 * FEAT))
    p['gru_wh'] = nrm((FEAT, 3 * FEAT))
    p['gru_bi'] = nrm((1, 3 * FEAT))
    p['gru_bh'] = nrm((1, 3 * FEAT))
    # per-batch attention weights (batch, 52, n_leads)
    p['wk'] = nrm((BATCH, FEAT, LEADS))
    p['wq'] = nrm((BATCH, FEAT, LEADS))
    p['wv'] = nrm((BATCH, FEAT, LEADS))
    # StockBlockLayer gcn weight (batch, step, step)
    p['stock_w'] = nrm((BATCH, STEP_LEN, STEP_LEN))
    # TCN (kernel_size=2): taps stored separately as w0 (t-d) and w1 (t)
    p['tcn'] = []
    for (cin, cout, d) in TCN_CFG:
        layer = {'c1w1': nrm((cin, cout)), 'c1b': nrm((1, cout)),
                 'c2w1': nrm((cout, cout)), 'c2b': nrm((1, cout))}
        if d < STEP_LEN:
            layer['c1w0'] = nrm((cin, cout))
            layer['c2w0'] = nrm((cout, cout))
        if cin != cout:
            layer['dw'] = nrm((cin, cout))
            layer['db'] = nrm((1, cout))
        p['tcn'].append(layer)
    # block_out: Linear -> LeakyReLU -> BatchNorm1d(leads) -> Dropout -> Linear
    p['bo_w1'] = nrm((STEP_LEN, STEP_LEN)); p['bo_b1'] = nrm((1, STEP_LEN))
    p['bn_g'] = 1.0 + nrm((LEADS,));        p['bn_b'] = nrm((LEADS,))
    p['bn_m'] = nrm((LEADS,));              p['bn_v'] = 1.0 + jnp.abs(nrm((LEADS,)))
    p['bo_w2'] = nrm((STEP_LEN, STEP_LEN)); p['bo_b2'] = nrm((1, STEP_LEN))
    # fc head; fc_w1 stored as (LEADS, SEQ, SEQ) == (192, SEQ) Linear reshaped lead-major
    p['fc_w1'] = nrm((LEADS, SEQ_LEN, SEQ_LEN)); p['fc_b1'] = nrm((1, SEQ_LEN))
    p['fc_w2'] = nrm((SEQ_LEN, SEQ_LEN));        p['fc_b2'] = nrm((1, SEQ_LEN))
    p['fc_w3'] = nrm((SEQ_LEN, NUM_CLASSES));    p['fc_b3'] = nrm((1, NUM_CLASSES))
    return p


def prepare_params(p):
    """Host-side (one-time) packing of all weights into a few lane-padded buffers."""
    hp = functools.partial(jnp.matmul, precision=lax.Precision.HIGHEST)

    gt = {'wi': p['gru_wi'], 'wh': p['gru_wh'], 'bi': p['gru_bi'], 'bh': p['gru_bh']}
    for b in range(BATCH):
        gt[f'aw{b}'] = jnp.concatenate([p['wk'][b], p['wq'][b], p['wv'][b]], axis=1)

    mt = {}
    for li, layer in enumerate(p['tcn']):
        for k, v in layer.items():
            mt[f"t{li}_{k}"] = v

    # block_out head folded into channels-last block-diagonal form
    m1_blocks = [hp(p['bo_w1'].T, p['stock_w'][n // N_STEP].T) for n in range(N_TOT)]
    mt['head_m1'] = _block_diag(m1_blocks)
    mt['head_m2'] = jnp.kron(jnp.eye(N_TOT, dtype=f32), p['bo_w2'].T)
    mt['head_b1'] = jnp.tile(p['bo_b1'].reshape(STEP_LEN, 1), (N_TOT, 1))
    mt['head_b2'] = jnp.tile(p['bo_b2'].reshape(STEP_LEN, 1), (N_TOT, 1))
    scale = p['bn_g'] / jnp.sqrt(p['bn_v'] + BN_EPS)
    shift = p['bn_b'] - p['bn_m'] * scale
    mt['bn_scale'] = scale.reshape(1, LEADS)
    mt['bn_shift'] = shift.reshape(1, LEADS)
    mt['fc_b1'] = p['fc_b1']
    mt['fc_w2'] = p['fc_w2']
    mt['fc_b2'] = p['fc_b2']
    mt['fc_w3'] = jnp.zeros((SEQ_LEN, OUT_PAD), f32).at[:, :NUM_CLASSES].set(p['fc_w3'])
    mt['fc_b3'] = jnp.zeros((1, OUT_PAD), f32).at[:, :NUM_CLASSES].set(p['fc_b3'])

    return {
        'pk_gru': _pack(GRU_LAYOUT, GRU_ROWS, GRU_WIDTH, gt),
        'pk_main': _pack(MAIN_LAYOUT, MAIN_ROWS, MAIN_WIDTH, mt),
        # fc1 weight laid out so W_wide[l, r*SEQ + o] == fc_w1[l*SEQ + r, o]
        'w_wide': p['fc_w1'].reshape(LEADS, SEQ_LEN * SEQ_LEN).astype(f32),
    }


def reference_forward(x, features, p):
    """Pure-JAX reference mirroring the PyTorch forward (eval mode)."""
    dot = functools.partial(jnp.matmul, precision=lax.Precision.HIGHEST)
    B = x.shape[0]
    F = FEAT
    xg = jnp.transpose(features, (0, 2, 1))                # (B, LEADS, FEAT)

    def step(h, xt):
        gi = dot(xt, p['gru_wi']) + p['gru_bi']
        gh = dot(h, p['gru_wh']) + p['gru_bh']
        r = jax.nn.sigmoid(gi[:, :F] + gh[:, :F])
        z = jax.nn.sigmoid(gi[:, F:2 * F] + gh[:, F:2 * F])
        n = jnp.tanh(gi[:, 2 * F:] + r * gh[:, 2 * F:])
        h_new = (1.0 - z) * n + z * h
        return h_new, h_new

    _, hs = jax.lax.scan(step, jnp.zeros((B, F), f32), jnp.transpose(xg, (1, 0, 2)))
    h = jnp.transpose(hs, (1, 0, 2))
    key = dot(h, p['wk']); q = dot(h, p['wq']); v = dot(h, p['wv'])
    att = jax.nn.softmax(dot(q, jnp.transpose(key, (0, 2, 1))), axis=1)
    adj = jnp.maximum(dot(att, v), 0.0)
    adj = 0.5 * (adj + jnp.transpose(adj, (0, 2, 1)))
    rs = jnp.sum(adj, axis=1)
    d = jnp.where(rs > 0, rs ** -0.5, 0.0)
    mul_L = d[:, :, None] * adj * d[:, None, :]

    scale = p['bn_g'] / jnp.sqrt(p['bn_v'] + BN_EPS)
    shift = p['bn_b'] - p['bn_m'] * scale

    def cconv(inp, lyr, pre, dil):
        out = dot(inp, lyr[pre + 'w1']) + lyr[pre + 'b']
        if dil < STEP_LEN:
            prev = jnp.pad(inp, ((0, 0), (dil, 0), (0, 0)))[:, :STEP_LEN]
            out = out + dot(prev, lyr[pre + 'w0'])
        return out

    outs = []
    for i in range(N_STEP):
        xx = x[:, :, i * STEP_LEN:(i + 1) * STEP_LEN]
        t = jnp.transpose(dot(mul_L, xx), (0, 2, 1))       # (B, L, C) channels-last
        for layer, (cin, cout, dil) in zip(p['tcn'], TCN_CFG):
            y = jnp.maximum(cconv(t, layer, 'c1', dil), 0.0)
            z = jnp.maximum(cconv(y, layer, 'c2', dil), 0.0)
            resid = dot(t, layer['dw']) + layer['db'] if 'dw' in layer else t
            t = jnp.maximum(z + resid, 0.0)
        tcn_out = jnp.transpose(t, (0, 2, 1))              # (B, LEADS, STEP)
        gcn = dot(tcn_out, p['stock_w'])
        y = dot(gcn, p['bo_w1']) + p['bo_b1']
        y = jnp.where(y > 0, y, NEG_SLOPE * y)
        y = y * scale[None, :, None] + shift[None, :, None]
        y = dot(y, p['bo_w2']) + p['bo_b2']
        outs.append(y)
    res = jnp.concatenate(outs, axis=-1).reshape(B, -1)
    w1 = p['fc_w1'].reshape(LEADS * SEQ_LEN, SEQ_LEN)
    y = dot(res, w1) + p['fc_b1']; y = jnp.where(y > 0, y, NEG_SLOPE * y)
    y = dot(y, p['fc_w2']) + p['fc_b2']; y = jnp.where(y > 0, y, NEG_SLOPE * y)
    return dot(y, p['fc_w3']) + p['fc_b3']


if __name__ == "__main__":
    root = jax.random.PRNGKey(0)
    kp, kx, kf = jax.random.split(root, 3)
    params = init_params(kp)
    packed = prepare_params(params)
    x = jax.random.normal(kx, (BATCH, LEADS, SEQ_LEN), dtype=f32)
    features = jax.random.normal(kf, (BATCH, FEAT, LEADS), dtype=f32)

    out = jax.block_until_ready(ecg_gcn_tcn_forward(x, features, packed))
    assert out.shape == (BATCH, NUM_CLASSES), out.shape

    ref = reference_forward(x, features, params)
    if not bool(jnp.allclose(out, ref, rtol=1e-2, atol=1e-2)):
        raise AssertionError(
            f"kernel/reference mismatch, max abs diff={float(jnp.max(jnp.abs(out - ref)))}")
    print("KERNEL_OK")
</pallas_src>

<mosaic_0001>
module attributes {stable_mosaic.version = 11 : i64} {
  func.func @fused_kernel(%arg0: memref<24x52xf32, #tpu.memory_space<vmem>>, %arg1: memref<32x12xf32, #tpu.memory_space<vmem>>, %arg2: memref<240x156xf32, #tpu.memory_space<vmem>>, %arg3: memref<1696x128xf32, #tpu.memory_space<vmem>>, %arg4: memref<12x256xf32, #tpu.memory_space<vmem>>, %arg5: memref<2x128xf32, #tpu.memory_space<vmem>>, %arg6: memref<2x12x52xf32, #tpu.memory_space<vmem>>) attributes {dimension_semantics = [], scalar_prefetch = 0 : i64, scratch_operands = 1 : i64, tpu.core_type = #tpu.core_type<tc>} {
    %c56 = arith.constant 56 : index
    %c0 = arith.constant 0 : index
    %0 = vector.load %arg2[%c56, %c0] : memref<240x156xf32, #tpu.memory_space<vmem>>, vector<52x156xf32>
    %c120 = arith.constant 120 : index
    %c0_0 = arith.constant 0 : index
    %1 = vector.load %arg2[%c120, %c0_0] : memref<240x156xf32, #tpu.memory_space<vmem>>, vector<1x156xf32>
    %c0_1 = arith.constant 0 : index
    %c0_2 = arith.constant 0 : index
    %2 = vector.load %arg0[%c0_1, %c0_2] : memref<24x52xf32, #tpu.memory_space<vmem>>, vector<24x52xf32>
    %c0_3 = arith.constant 0 : index
    %c0_4 = arith.constant 0 : index
    %3 = vector.load %arg2[%c0_3, %c0_4] : memref<240x156xf32, #tpu.memory_space<vmem>>, vector<52x156xf32>
    %cst = arith.constant dense<0.000000e+00> : vector<24x156xf32>
    %4 = tpu.matmul %2, %3, %cst {dimension_numbers = #tpu.dot_dimension_numbers<[1], [0], [0], [1], [0, 0, 1, 1], [], []>} : vector<24x52xf32>, vector<52x156xf32>, vector<24x156xf32> -> vector<24x156xf32>
    %c112 = arith.constant 112 : index
    %c0_5 = arith.constant 0 : index
    %5 = vector.load %arg2[%c112, %c0_5] : memref<240x156xf32, #tpu.memory_space<vmem>>, vector<1x156xf32>
    %6 = vector.broadcast %5 : vector<1x156xf32> to vector<24x156xf32>
    %7 = arith.addf %4, %6 : vector<24x156xf32>
    %cst_6 = arith.constant 0.000000e+00 : f32
    %8 = vector.broadcast %cst_6 : f32 to vector<2x52xf32>
    %9 = vector.extract_strided_slice %7 {offsets = [0, 0], sizes = [2, 156], strides = [1, 1]} : vector<24x156xf32> to vector<2x156xf32>
    %cst_7 = arith.constant dense<0.000000e+00> : vector<2x156xf32>
    %10 = tpu.matmul %8, %0, %cst_7 {dimension_numbers = #tpu.dot_dimension_numbers<[1], [0], [0], [1], [0, 0, 1, 1], [], []>} : vector<2x52xf32>, vector<52x156xf32>, vector<2x156xf32> -> vector<2x156xf32>
    %11 = vector.broadcast %1 : vector<1x156xf32> to vector<2x156xf32>
    %12 = arith.addf %10, %11 : vector<2x156xf32>
    %13 = vector.extract_strided_slice %9 {offsets = [0, 0], sizes = [2, 52], strides = [1, 1]} : vector<2x156xf32> to vector<2x52xf32>
    %14 = vector.extract_strided_slice %12 {offsets = [0, 0], sizes = [2, 52], strides = [1, 1]} : vector<2x156xf32> to vector<2x52xf32>
    %15 = arith.addf %13, %14 : vector<2x52xf32>
    %16 = arith.negf %15 : vector<2x52xf32>
    %17 = math.exp %16 : vector<2x52xf32>
    %cst_8 = arith.constant 1.000000e+00 : f32
    %18 = vector.broadcast %cst_8 : f32 to vector<2x52xf32>
    %19 = arith.addf %18, %17 : vector<2x52xf32>
    %20 = arith.divf %18, %19 : vector<2x52xf32>
    %21 = vector.extract_strided_slice %9 {offsets = [0, 52], sizes = [2, 52], strides = [1, 1]} : vector<2x156xf32> to vector<2x52xf32>
    %22 = vector.extract_strided_slice %12 {offsets = [0, 52], sizes = [2, 52], strides = [1, 1]} : vector<2x156xf32> to vector<2x52xf32>
    %23 = arith.addf %21, %22 : vector<2x52xf32>
    %24 = arith.negf %23 : vector<2x52xf32>
    %25 = math.exp %24 : vector<2x52xf32>
    %cst_9 = arith.constant 1.000000e+00 : f32
    %26 = vector.broadcast %cst_9 : f32 to vector<2x52xf32>
    %27 = arith.addf %26, %25 : vector<2x52xf32>
    %28 = arith.divf %26, %27 : vector<2x52xf32>
    %29 = vector.extract_strided_slice %9 {offsets = [0, 104], sizes = [2, 52], strides = [1, 1]} : vector<2x156xf32> to vector<2x52xf32>
    %30 = vector.extract_strided_slice %12 {offsets = [0, 104], sizes = [2, 52], strides = [1, 1]} : vector<2x156xf32> to vector<2x52xf32>
    %31 = arith.mulf %20, %30 : vector<2x52xf32>
    %32 = arith.addf %29, %31 : vector<2x52xf32>
    %33 = math.tanh %32 : vector<2x52xf32>
    %cst_10 = arith.constant 1.000000e+00 : f32
    %34 = vector.broadcast %cst_10 : f32 to vector<2x52xf32>
    %35 = arith.subf %34, %28 : vector<2x52xf32>
    %36 = arith.mulf %35, %33 : vector<2x52xf32>
    %37 = arith.mulf %28, %8 : vector<2x52xf32>
    %38 = arith.addf %36, %37 : vector<2x52xf32>
    %c0_11 = arith.constant 0 : index
    %c0_12 = arith.constant 0 : index
    %c0_13 = arith.constant 0 : index
    %39 = vector.load %arg6[%c0_11, %c0_12, %c0_13] : memref<2x12x52xf32, #tpu.memory_space<vmem>>, vector<2x1x52xf32>
    %40 = vector.shape_cast %39 : vector<2x1x52xf32> to vector<2x52xf32>
    %41 = vector.shape_cast %38 : vector<2x52xf32> to vector<2x1x52xf32>
    tpu.vector_store %arg6[%c0_11, %c0_12, %c0_13], %41 {strides = array<i32>} : memref<2x12x52xf32, #tpu.memory_space<vmem>>, vector<2x1x52xf32>,
    %42 = vector.extract_strided_slice %7 {offsets = [2, 0], sizes = [2, 156], strides = [1, 1]} : vector<24x156xf32> to vector<2x156xf32>
    %cst_14 = arith.constant dense<0.000000e+00> : vector<2x156xf32>
    %43 = tpu.matmul %38, %0, %cst_14 {dimension_numbers = #tpu.dot_dimension_numbers<[1], [0], [0], [1], [0, 0, 1, 1], [], []>} : vector<2x52xf32>, vector<52x156xf32>, vector<2x156xf32> -> vector<2x156xf32>
    %44 = vector.broadcast %1 : vector<1x156xf32> to vector<2x156xf32>
    %45 = arith.addf %43, %44 : vector<2x156xf32>
    %46 = vector.extract_strided_slice %42 {offsets = [0, 0], sizes = [2, 52], strides = [1, 1]} : vector<2x156xf32> to vector<2x52xf32>
    %47 = vector.extract_strided_slice %45 {offsets = [0, 0], sizes = [2, 52], strides = [1, 1]} : vector<2x156xf32> to vector<2x52xf32>
    %48 = arith.addf %46, %47 : vector<2x52xf32>
    %49 = arith.negf %48 : vector<2x52xf32>
    %50 = math.exp %49 : vector<2x52xf32>
    %cst_15 = arith.constant 1.000000e+00 : f32
    %51 = vector.broadcast %cst_15 : f32 to vector<2x52xf32>
    %52 = arith.addf %51, %50 : vector<2x52xf32>
    %53 = arith.divf %51, %52 : vector<2x52xf32>
    %54 = vector.extract_strided_slice %42 {offsets = [0, 52], sizes = [2, 52], strides = [1, 1]} : vector<2x156xf32> to vector<2x52xf32>
    %55 = vector.extract_strided_slice %45 {offsets = [0, 52], sizes = [2, 52], strides = [1, 1]} : vector<2x156xf32> to vector<2x52xf32>
    %56 = arith.addf %54, %55 : vector<2x52xf32>
    %57 = arith.negf %56 : vector<2x52xf32>
    %58 = math.exp %57 : vector<2x52xf32>
    %cst_16 = arith.constant 1.000000e+00 : f32
    %59 = vector.broadcast %cst_16 : f32 to vector<2x52xf32>
    %60 = arith.addf %59, %58 : vector<2x52xf32>
    %61 = arith.divf %59, %60 : vector<2x52xf32>
    %62 = vector.extract_strided_slice %42 {offsets = [0, 104], sizes = [2, 52], strides = [1, 1]} : vector<2x156xf32> to vector<2x52xf32>
    %63 = vector.extract_strided_slice %45 {offsets = [0, 104], sizes = [2, 52], strides = [1, 1]} : vector<2x156xf32> to vector<2x52xf32>
    %64 = arith.mulf %53, %63 : vector<2x52xf32>
    %65 = arith.addf %62, %64 : vector<2x52xf32>
    %66 = math.tanh %65 : vector<2x52xf32>
    %cst_17 = arith.constant 1.000000e+00 : f32
    %67 = vector.broadcast %cst_17 : f32 to vector<2x52xf32>
    %68 = arith.subf %67, %61 : vector<2x52xf32>
    %69 = arith.mulf %68, %66 : vector<2x52xf32>
    %70 = arith.mulf %61, %38 : vector<2x52xf32>
    %71 = arith.addf %69, %70 : vector<2x52xf32>
    %c0_18 = arith.constant 0 : index
    %c1 = arith.constant 1 : index
    %c0_19 = arith.constant 0 : index
    %72 = vector.load %arg6[%c0_18, %c1, %c0_19] : memref<2x12x52xf32, #tpu.memory_space<vmem>>, vector<2x1x52xf32>
    %73 = vector.shape_cast %72 : vector<2x1x52xf32> to vector<2x52xf32>
    %74 = vector.shape_cast %71 : vector<2x52xf32> to vector<2x1x52xf32>
    tpu.vector_store %arg6[%c0_18, %c1, %c0_19], %74 {strides = array<i32>} : memref<2x12x52xf32, #tpu.memory_space<vmem>>, vector<2x1x52xf32>,
    %75 = vector.extract_strided_slice %7 {offsets = [4, 0], sizes = [2, 156], strides = [1, 1]} : vector<24x156xf32> to vector<2x156xf32>
    %cst_20 = arith.constant dense<0.000000e+00> : vector<2x156xf32>
    %76 = tpu.matmul %71, %0, %cst_20 {dimension_numbers = #tpu.dot_dimension_numbers<[1], [0], [0], [1], [0, 0, 1, 1], [], []>} : vector<2x52xf32>, vector<52x156xf32>, vector<2x156xf32> -> vector<2x156xf32>
    %77 = vector.broadcast %1 : vector<1x156xf32> to vector<2x156xf32>
    %78 = arith.addf %76, %77 : vector<2x156xf32>
    %79 = vector.extract_strided_slice %75 {offsets = [0, 0], sizes = [2, 52], strides = [1, 1]} : vector<2x156xf32> to vector<2x52xf32>
    %80 = vector.extract_strided_slice %78 {offsets = [0, 0], sizes = [2, 52], strides = [1, 1]} : vector<2x156xf32> to vector<2x52xf32>
    %81 = arith.addf %79, %80 : vector<2x52xf32>
    %82 = arith.negf %81 : vector<2x52xf32>
    %83 = math.exp %82 : vector<2x52xf32>
    %cst_21 = arith.constant 1.000000e+00 : f32
    %84 = vector.broadcast %cst_21 : f32 to vector<2x52xf32>
    %85 = arith.addf %84, %83 : vector<2x52xf32>
    %86 = arith.divf %84, %85 : vector<2x52xf32>
    %87 = vector.extract_strided_slice %75 {offsets = [0, 52], sizes = [2, 52], strides = [1, 1]} : vector<2x156xf32> to vector<2x52xf32>
    %88 = vector.extract_strided_slice %78 {offsets = [0, 52], sizes = [2, 52], strides = [1, 1]} : vector<2x156xf32> to vector<2x52xf32>
    %89 = arith.addf %87, %88 : vector<2x52xf32>
    %90 = arith.negf %89 : vector<2x52xf32>
    %91 = math.exp %90 : vector<2x52xf32>
    %cst_22 = arith.constant 1.000000e+00 : f32
    %92 = vector.broadcast %cst_22 : f32 to vector<2x52xf32>
    %93 = arith.addf %92, %91 : vector<2x52xf32>
    %94 = arith.divf %92, %93 : vector<2x52xf32>
    %95 = vector.extract_strided_slice %75 {offsets = [0, 104], sizes = [2, 52], strides = [1, 1]} : vector<2x156xf32> to vector<2x52xf32>
    %96 = vector.extract_strided_slice %78 {offsets = [0, 104], sizes = [2, 52], strides = [1, 1]} : vector<2x156xf32> to vector<2x52xf32>
    %97 = arith.mulf %86, %96 : vector<2x52xf32>
    %98 = arith.addf %95, %97 : vector<2x52xf32>
    %99 = math.tanh %98 : vector<2x52xf32>
    %cst_23 = arith.constant 1.000000e+00 : f32
    %100 = vector.broadcast %cst_23 : f32 to vector<2x52xf32>
    %101 = arith.subf %100, %94 : vector<2x52xf32>
    %102 = arith.mulf %101, %99 : vector<2x52xf32>
    %103 = arith.mulf %94, %71 : vector<2x52xf32>
    %104 = arith.addf %102, %103 : vector<2x52xf32>
    %c0_24 = arith.constant 0 : index
    %c2 = arith.constant 2 : index
    %c0_25 = arith.constant 0 : index
    %105 = vector.load %arg6[%c0_24, %c2, %c0_25] : memref<2x12x52xf32, #tpu.memory_space<vmem>>, vector<2x1x52xf32>
    %106 = vector.shape_cast %105 : vector<2x1x52xf32> to vector<2x52xf32>
    %107 = vector.shape_cast %104 : vector<2x52xf32> to vector<2x1x52xf32>
    tpu.vector_store %arg6[%c0_24, %c2, %c0_25], %107 {strides = array<i32>} : memref<2x12x52xf32, #tpu.memory_space<vmem>>, vector<2x1x52xf32>,
    %108 = vector.extract_strided_slice %7 {offsets = [6, 0], sizes = [2, 156], strides = [1, 1]} : vector<24x156xf32> to vector<2x156xf32>
    %cst_26 = arith.constant dense<0.000000e+00> : vector<2x156xf32>
    %109 = tpu.matmul %104, %0, %cst_26 {dimension_numbers = #tpu.dot_dimension_numbers<[1], [0], [0], [1], [0, 0, 1, 1], [], []>} : vector<2x52xf32>, vector<52x156xf32>, vector<2x156xf32> -> vector<2x156xf32>
    %110 = vector.broadcast %1 : vector<1x156xf32> to vector<2x156xf32>
    %111 = arith.addf %109, %110 : vector<2x156xf32>
    %112 = vector.extract_strided_slice %108 {offsets = [0, 0], sizes = [2, 52], strides = [1, 1]} : vector<2x156xf32> to vector<2x52xf32>
    %113 = vector.extract_strided_slice %111 {offsets = [0, 0], sizes = [2, 52], strides = [1, 1]} : vector<2x156xf32> to vector<2x52xf32>
    %114 = arith.addf %112, %113 : vector<2x52xf32>
    %115 = arith.negf %114 : vector<2x52xf32>
    %116 = math.exp %115 : vector<2x52xf32>
    %cst_27 = arith.constant 1.000000e+00 : f32
    %117 = vector.broadcast %cst_27 : f32 to vector<2x52xf32>
    %118 = arith.addf %117, %116 : vector<2x52xf32>
    %119 = arith.divf %117, %118 : vector<2x52xf32>
    %120 = vector.extract_strided_slice %108 {offsets = [0, 52], sizes = [2, 52], strides = [1, 1]} : vector<2x156xf32> to vector<2x52xf32>
    %121 = vector.extract_strided_slice %111 {offsets = [0, 52], sizes = [2, 52], strides = [1, 1]} : vector<2x156xf32> to vector<2x52xf32>
    %122 = arith.addf %120, %121 : vector<2x52xf32>
    %123 = arith.negf %122 : vector<2x52xf32>
    %124 = math.exp %123 : vector<2x52xf32>
    %cst_28 = arith.constant 1.000000e+00 : f32
    %125 = vector.broadcast %cst_28 : f32 to vector<2x52xf32>
    %126 = arith.addf %125, %124 : vector<2x52xf32>
    %127 = arith.divf %125, %126 : vector<2x52xf32>
    %128 = vector.extract_strided_slice %108 {offsets = [0, 104], sizes = [2, 52], strides = [1, 1]} : vector<2x156xf32> to vector<2x52xf32>
    %129 = vector.extract_strided_slice %111 {offsets = [0, 104], sizes = [2, 52], strides = [1, 1]} : vector<2x156xf32> to vector<2x52xf32>
    %130 = arith.mulf %119, %129 : vector<2x52xf32>
    %131 = arith.addf %128, %130 : vector<2x52xf32>
    %132 = math.tanh %131 : vector<2x52xf32>
    %cst_29 = arith.constant 1.000000e+00 : f32
    %133 = vector.broadcast %cst_29 : f32 to vector<2x52xf32>
    %134 = arith.subf %133, %127 : vector<2x52xf32>
    %135 = arith.mulf %134, %132 : vector<2x52xf32>
    %136 = arith.mulf %127, %104 : vector<2x52xf32>
    %137 = arith.addf %135, %136 : vector<2x52xf32>
    %c0_30 = arith.constant 0 : index
    %c3 = arith.constant 3 : index
    %c0_31 = arith.constant 0 : index
    %138 = vector.load %arg6[%c0_30, %c3, %c0_31] : memref<2x12x52xf32, #tpu.memory_space<vmem>>, vector<2x1x52xf32>
    %139 = vector.shape_cast %138 : vector<2x1x52xf32> to vector<2x52xf32>
    %140 = vector.shape_cast %137 : vector<2x52xf32> to vector<2x1x52xf32>
    tpu.vector_store %arg6[%c0_30, %c3, %c0_31], %140 {strides = array<i32>} : memref<2x12x52xf32, #tpu.memory_space<vmem>>, vector<2x1x52xf32>,
    %141 = vector.extract_strided_slice %7 {offsets = [8, 0], sizes = [2, 156], strides = [1, 1]} : vector<24x156xf32> to vector<2x156xf32>
    %cst_32 = arith.constant dense<0.000000e+00> : vector<2x156xf32>
    %142 = tpu.matmul %137, %0, %cst_32 {dimension_numbers = #tpu.dot_dimension_numbers<[1], [0], [0], [1], [0, 0, 1, 1], [], []>} : vector<2x52xf32>, vector<52x156xf32>, vector<2x156xf32> -> vector<2x156xf32>
    %143 = vector.broadcast %1 : vector<1x156xf32> to vector<2x156xf32>
    %144 = arith.addf %142, %143 : vector<2x156xf32>
    %145 = vector.extract_strided_slice %141 {offsets = [0, 0], sizes = [2, 52], strides = [1, 1]} : vector<2x156xf32> to vector<2x52xf32>
    %146 = vector.extract_strided_slice %144 {offsets = [0, 0], sizes = [2, 52], strides = [1, 1]} : vector<2x156xf32> to vector<2x52xf32>
    %147 = arith.addf %145, %146 : vector<2x52xf32>
    %148 = arith.negf %147 : vector<2x52xf32>
    %149 = math.exp %148 : vector<2x52xf32>
    %cst_33 = arith.constant 1.000000e+00 : f32
    %150 = vector.broadcast %cst_33 : f32 to vector<2x52xf32>
    %151 = arith.addf %150, %149 : vector<2x52xf32>
    %152 = arith.divf %150, %151 : vector<2x52xf32>
    %153 = vector.extract_strided_slice %141 {offsets = [0, 52], sizes = [2, 52], strides = [1, 1]} : vector<2x156xf32> to vector<2x52xf32>
    %154 = vector.extract_strided_slice %144 {offsets = [0, 52], sizes = [2, 52], strides = [1, 1]} : vector<2x156xf32> to vector<2x52xf32>
    %155 = arith.addf %153, %154 : vector<2x52xf32>
    %156 = arith.negf %155 : vector<2x52xf32>
    %157 = math.exp %156 : vector<2x52xf32>
    %cst_34 = arith.constant 1.000000e+00 : f32
    %158 = vector.broadcast %cst_34 : f32 to vector<2x52xf32>
    %159 = arith.addf %158, %157 : vector<2x52xf32>
    %160 = arith.divf %158, %159 : vector<2x52xf32>
    %161 = vector.extract_strided_slice %141 {offsets = [0, 104], sizes = [2, 52], strides = [1, 1]} : vector<2x156xf32> to vector<2x52xf32>
    %162 = vector.extract_strided_slice %144 {offsets = [0, 104], sizes = [2, 52], strides = [1, 1]} : vector<2x156xf32> to vector<2x52xf32>
    %163 = arith.mulf %152, %162 : vector<2x52xf32>
    %164 = arith.addf %161, %163 : vector<2x52xf32>
    %165 = math.tanh %164 : vector<2x52xf32>
    %cst_35 = arith.constant 1.000000e+00 : f32
    %166 = vector.broadcast %cst_35 : f32 to vector<2x52xf32>
    %167 = arith.subf %166, %160 : vector<2x52xf32>
    %168 = arith.mulf %167, %165 : vector<2x52xf32>
    %169 = arith.mulf %160, %137 : vector<2x52xf32>
    %170 = arith.addf %168, %169 : vector<2x52xf32>
    %c0_36 = arith.constant 0 : index
    %c4 = arith.constant 4 : index
    %c0_37 = arith.constant 0 : index
    %171 = vector.load %arg6[%c0_36, %c4, %c0_37] : memref<2x12x52xf32, #tpu.memory_space<vmem>>, vector<2x1x52xf32>
    %172 = vector.shape_cast %171 : vector<2x1x52xf32> to vector<2x52xf32>
    %173 = vector.shape_cast %170 : vector<2x52xf32> to vector<2x1x52xf32>
    tpu.vector_store %arg6[%c0_36, %c4, %c0_37], %173 {strides = array<i32>} : memref<2x12x52xf32, #tpu.memory_space<vmem>>, vector<2x1x52xf32>,
    %174 = vector.extract_strided_slice %7 {offsets = [10, 0], sizes = [2, 156], strides = [1, 1]} : vector<24x156xf32> to vector<2x156xf32>
    %cst_38 = arith.constant dense<0.000000e+00> : vector<2x156xf32>
    %175 = tpu.matmul %170, %0, %cst_38 {dimension_numbers = #tpu.dot_dimension_numbers<[1], [0], [0], [1], [0, 0, 1, 1], [], []>} : vector<2x52xf32>, vector<52x156xf32>, vector<2x156xf32> -> vector<2x156xf32>
    %176 = vector.broadcast %1 : vector<1x156xf32> to vector<2x156xf32>
    %177 = arith.addf %175, %176 : vector<2x156xf32>
    %178 = vector.extract_strided_slice %174 {offsets = [0, 0], sizes = [2, 52], strides = [1, 1]} : vector<2x156xf32> to vector<2x52xf32>
    %179 = vector.extract_strided_slice %177 {offsets = [0, 0], sizes = [2, 52], strides = [1, 1]} : vector<2x156xf32> to vector<2x52xf32>
    %180 = arith.addf %178, %179 : vector<2x52xf32>
    %181 = arith.negf %180 : vector<2x52xf32>
    %182 = math.exp %181 : vector<2x52xf32>
    %cst_39 = arith.constant 1.000000e+00 : f32
    %183 = vector.broadcast %cst_39 : f32 to vector<2x52xf32>
    %184 = arith.addf %183, %182 : vector<2x52xf32>
    %185 = arith.divf %183, %184 : vector<2x52xf32>
    %186 = vector.extract_strided_slice %174 {offsets = [0, 52], sizes = [2, 52], strides = [1, 1]} : vector<2x156xf32> to vector<2x52xf32>
    %187 = vector.extract_strided_slice %177 {offsets = [0, 52], sizes = [2, 52], strides = [1, 1]} : vector<2x156xf32> to vector<2x52xf32>
    %188 = arith.addf %186, %187 : vector<2x52xf32>
    %189 = arith.negf %188 : vector<2x52xf32>
    %190 = math.exp %189 : vector<2x52xf32>
    %cst_40 = arith.constant 1.000000e+00 : f32
    %191 = vector.broadcast %cst_40 : f32 to vector<2x52xf32>
    %192 = arith.addf %191, %190 : vector<2x52xf32>
    %193 = arith.divf %191, %192 : vector<2x52xf32>
    %194 = vector.extract_strided_slice %174 {offsets = [0, 104], sizes = [2, 52], strides = [1, 1]} : vector<2x156xf32> to vector<2x52xf32>
    %195 = vector.extract_strided_slice %177 {offsets = [0, 104], sizes = [2, 52], strides = [1, 1]} : vector<2x156xf32> to vector<2x52xf32>
    %196 = arith.mulf %185, %195 : vector<2x52xf32>
    %197 = arith.addf %194, %196 : vector<2x52xf32>
    %198 = math.tanh %197 : vector<2x52xf32>
    %cst_41 = arith.constant 1.000000e+00 : f32
    %199 = vector.broadcast %cst_41 : f32 to vector<2x52xf32>
    %200 = arith.subf %199, %193 : vector<2x52xf32>
    %201 = arith.mulf %200, %198 : vector<2x52xf32>
    %202 = arith.mulf %193, %170 : vector<2x52xf32>
    %203 = arith.addf %201, %202 : vector<2x52xf32>
    %c0_42 = arith.constant 0 : index
    %c5 = arith.constant 5 : index
    %c0_43 = arith.constant 0 : index
    %204 = vector.load %arg6[%c0_42, %c5, %c0_43] : memref<2x12x52xf32, #tpu.memory_space<vmem>>, vector<2x1x52xf32>
    %205 = vector.shape_cast %204 : vector<2x1x52xf32> to vector<2x52xf32>
    %206 = vector.shape_cast %203 : vector<2x52xf32> to vector<2x1x52xf32>
    tpu.vector_store %arg6[%c0_42, %c5, %c0_43], %206 {strides = array<i32>} : memref<2x12x52xf32, #tpu.memory_space<vmem>>, vector<2x1x52xf32>,
    %207 = vector.extract_strided_slice %7 {offsets = [12, 0], sizes = [2, 156], strides = [1, 1]} : vector<24x156xf32> to vector<2x156xf32>
    %cst_44 = arith.constant dense<0.000000e+00> : vector<2x156xf32>
    %208 = tpu.matmul %203, %0, %cst_44 {dimension_numbers = #tpu.dot_dimension_numbers<[1], [0], [0], [1], [0, 0, 1, 1], [], []>} : vector<2x52xf32>, vector<52x156xf32>, vector<2x156xf32> -> vector<2x156xf32>
    %209 = vector.broadcast %1 : vector<1x156xf32> to vector<2x156xf32>
    %210 = arith.addf %208, %209 : vector<2x156xf32>
    %211 = vector.extract_strided_slice %207 {offsets = [0, 0], sizes = [2, 52], strides = [1, 1]} : vector<2x156xf32> to vector<2x52xf32>
    %212 = vector.extract_strided_slice %210 {offsets = [0, 0], sizes = [2, 52], strides = [1, 1]} : vector<2x156xf32> to vector<2x52xf32>
    %213 = arith.addf %211, %212 : vector<2x52xf32>
    %214 = arith.negf %213 : vector<2x52xf32>
    %215 = math.exp %214 : vector<2x52xf32>
    %cst_45 = arith.constant 1.000000e+00 : f32
    %216 = vector.broadcast %cst_45 : f32 to vector<2x52xf32>
    %217 = arith.addf %216, %215 : vector<2x52xf32>
    %218 = arith.divf %216, %217 : vector<2x52xf32>
    %219 = vector.extract_strided_slice %207 {offsets = [0, 52], sizes = [2, 52], strides = [1, 1]} : vector<2x156xf32> to vector<2x52xf32>
    %220 = vector.extract_strided_slice %210 {offsets = [0, 52], sizes = [2, 52], strides = [1, 1]} : vector<2x156xf32> to vector<2x52xf32>
    %221 = arith.addf %219, %220 : vector<2x52xf32>
    %222 = arith.negf %221 : vector<2x52xf32>
    %223 = math.exp %222 : vector<2x52xf32>
    %cst_46 = arith.constant 1.000000e+00 : f32
    %224 = vector.broadcast %cst_46 : f32 to vector<2x52xf32>
    %225 = arith.addf %224, %223 : vector<2x52xf32>
    %226 = arith.divf %224, %225 : vector<2x52xf32>
    %227 = vector.extract_strided_slice %207 {offsets = [0, 104], sizes = [2, 52], strides = [1, 1]} : vector<2x156xf32> to vector<2x52xf32>
    %228 = vector.extract_strided_slice %210 {offsets = [0, 104], sizes = [2, 52], strides = [1, 1]} : vector<2x156xf32> to vector<2x52xf32>
    %229 = arith.mulf %218, %228 : vector<2x52xf32>
    %230 = arith.addf %227, %229 : vector<2x52xf32>
    %231 = math.tanh %230 : vector<2x52xf32>
    %cst_47 = arith.constant 1.000000e+00 : f32
    %232 = vector.broadcast %cst_47 : f32 to vector<2x52xf32>
    %233 = arith.subf %232, %226 : vector<2x52xf32>
    %234 = arith.mulf %233, %231 : vector<2x52xf32>
    %235 = arith.mulf %226, %203 : vector<2x52xf32>
    %236 = arith.addf %234, %235 : vector<2x52xf32>
    %c0_48 = arith.constant 0 : index
    %c6 = arith.constant 6 : index
    %c0_49 = arith.constant 0 : index
    %237 = vector.load %arg6[%c0_48, %c6, %c0_49] : memref<2x12x52xf32, #tpu.memory_space<vmem>>, vector<2x1x52xf32>
    %238 = vector.shape_cast %237 : vector<2x1x52xf32> to vector<2x52xf32>
    %239 = vector.shape_cast %236 : vector<2x52xf32> to vector<2x1x52xf32>
    tpu.vector_store %arg6[%c0_48, %c6, %c0_49], %239 {strides = array<i32>} : memref<2x12x52xf32, #tpu.memory_space<vmem>>, vector<2x1x52xf32>,
    %240 = vector.extract_strided_slice %7 {offsets = [14, 0], sizes = [2, 156], strides = [1, 1]} : vector<24x156xf32> to vector<2x156xf32>
    %cst_50 = arith.constant dense<0.000000e+00> : vector<2x156xf32>
    %241 = tpu.matmul %236, %0, %cst_50 {dimension_numbers = #tpu.dot_dimension_numbers<[1], [0], [0], [1], [0, 0, 1, 1], [], []>} : vector<2x52xf32>, vector<52x156xf32>, vector<2x156xf32> -> vector<2x156xf32>
    %242 = vector.broadcast %1 : vector<1x156xf32> to vector<2x156xf32>
    %243 = arith.addf %241, %242 : vector<2x156xf32>
    %244 = vector.extract_strided_slice %240 {offsets = [0, 0], sizes = [2, 52], strides = [1, 1]} : vector<2x156xf32> to vector<2x52xf32>
    %245 = vector.extract_strided_slice %243 {offsets = [0, 0], sizes = [2, 52], strides = [1, 1]} : vector<2x156xf32> to vector<2x52xf32>
    %246 = arith.addf %244, %245 : vector<2x52xf32>
    %247 = arith.negf %246 : vector<2x52xf32>
    %248 = math.exp %247 : vector<2x52xf32>
    %cst_51 = arith.constant 1.000000e+00 : f32
    %249 = vector.broadcast %cst_51 : f32 to vector<2x52xf32>
    %250 = arith.addf %249, %248 : vector<2x52xf32>
    %251 = arith.divf %249, %250 : vector<2x52xf32>
    %252 = vector.extract_strided_slice %240 {offsets = [0, 52], sizes = [2, 52], strides = [1, 1]} : vector<2x156xf32> to vector<2x52xf32>
    %253 = vector.extract_strided_slice %243 {offsets = [0, 52], sizes = [2, 52], strides = [1, 1]} : vector<2x156xf32> to vector<2x52xf32>
    %254 = arith.addf %252, %253 : vector<2x52xf32>
    %255 = arith.negf %254 : vector<2x52xf32>
    %256 = math.exp %255 : vector<2x52xf32>
    %cst_52 = arith.constant 1.000000e+00 : f32
    %257 = vector.broadcast %cst_52 : f32 to vector<2x52xf32>
    %258 = arith.addf %257, %256 : vector<2x52xf32>
    %259 = arith.divf %257, %258 : vector<2x52xf32>
    %260 = vector.extract_strided_slice %240 {offsets = [0, 104], sizes = [2, 52], strides = [1, 1]} : vector<2x156xf32> to vector<2x52xf32>
    %261 = vector.extract_strided_slice %243 {offsets = [0, 104], sizes = [2, 52], strides = [1, 1]} : vector<2x156xf32> to vector<2x52xf32>
    %262 = arith.mulf %251, %261 : vector<2x52xf32>
    %263 = arith.addf %260, %262 : vector<2x52xf32>
    %264 = math.tanh %263 : vector<2x52xf32>
    %cst_53 = arith.constant 1.000000e+00 : f32
    %265 = vector.broadcast %cst_53 : f32 to vector<2x52xf32>
    %266 = arith.subf %265, %259 : vector<2x52xf32>
    %267 = arith.mulf %266, %264 : vector<2x52xf32>
    %268 = arith.mulf %259, %236 : vector<2x52xf32>
    %269 = arith.addf %267, %268 : vector<2x52xf32>
    %c0_54 = arith.constant 0 : index
    %c7 = arith.constant 7 : index
    %c0_55 = arith.constant 0 : index
    %270 = vector.load %arg6[%c0_54, %c7, %c0_55] : memref<2x12x52xf32, #tpu.memory_space<vmem>>, vector<2x1x52xf32>
    %271 = vector.shape_cast %270 : vector<2x1x52xf32> to vector<2x52xf32>
    %272 = vector.shape_cast %269 : vector<2x52xf32> to vector<2x1x52xf32>
    tpu.vector_store %arg6[%c0_54, %c7, %c0_55], %272 {strides = array<i32>} : memref<2x12x52xf32, #tpu.memory_space<vmem>>, vector<2x1x52xf32>,
    %273 = vector.extract_strided_slice %7 {offsets = [16, 0], sizes = [2, 156], strides = [1, 1]} : vector<24x156xf32> to vector<2x156xf32>
    %cst_56 = arith.constant dense<0.000000e+00> : vector<2x156xf32>
    %274 = tpu.matmul %269, %0, %cst_56 {dimension_numbers = #tpu.dot_dimension_numbers<[1], [0], [0], [1], [0, 0, 1, 1], [], []>} : vector<2x52xf32>, vector<52x156xf32>, vector<2x156xf32> -> vector<2x156xf32>
    %275 = vector.broadcast %1 : vector<1x156xf32> to vector<2x156xf32>
    %276 = arith.addf %274, %275 : vector<2x156xf32>
    %277 = vector.extract_strided_slice %273 {offsets = [0, 0], sizes = [2, 52], strides = [1, 1]} : vector<2x156xf32> to vector<2x52xf32>
    %278 = vector.extract_strided_slice %276 {offsets = [0, 0], sizes = [2, 52], strides = [1, 1]} : vector<2x156xf32> to vector<2x52xf32>
    %279 = arith.addf %277, %278 : vector<2x52xf32>
    %280 = arith.negf %279 : vector<2x52xf32>
    %281 = math.exp %280 : vector<2x52xf32>
    %cst_57 = arith.constant 1.000000e+00 : f32
    %282 = vector.broadcast %cst_57 : f32 to vector<2x52xf32>
    %283 = arith.addf %282, %281 : vector<2x52xf32>
    %284 = arith.divf %282, %283 : vector<2x52xf32>
    %285 = vector.extract_strided_slice %273 {offsets = [0, 52], sizes = [2, 52], strides = [1, 1]} : vector<2x156xf32> to vector<2x52xf32>
    %286 = vector.extract_strided_slice %276 {offsets = [0, 52], sizes = [2, 52], strides = [1, 1]} : vector<2x156xf32> to vector<2x52xf32>
    %287 = arith.addf %285, %286 : vector<2x52xf32>
    %288 = arith.negf %287 : vector<2x52xf32>
    %289 = math.exp %288 : vector<2x52xf32>
    %cst_58 = arith.constant 1.000000e+00 : f32
    %290 = vector.broadcast %cst_58 : f32 to vector<2x52xf32>
    %291 = arith.addf %290, %289 : vector<2x52xf32>
    %292 = arith.divf %290, %291 : vector<2x52xf32>
    %293 = vector.extract_strided_slice %273 {offsets = [0, 104], sizes = [2, 52], strides = [1, 1]} : vector<2x156xf32> to vector<2x52xf32>
    %294 = vector.extract_strided_slice %276 {offsets = [0, 104], sizes = [2, 52], strides = [1, 1]} : vector<2x156xf32> to vector<2x52xf32>
    %295 = arith.mulf %284, %294 : vector<2x52xf32>
    %296 = arith.addf %293, %295 : vector<2x52xf32>
    %297 = math.tanh %296 : vector<2x52xf32>
    %cst_59 = arith.constant 1.000000e+00 : f32
    %298 = vector.broadcast %cst_59 : f32 to vector<2x52xf32>
    %299 = arith.subf %298, %292 : vector<2x52xf32>
    %300 = arith.mulf %299, %297 : vector<2x52xf32>
    %301 = arith.mulf %292, %269 : vector<2x52xf32>
    %302 = arith.addf %300, %301 : vector<2x52xf32>
    %c0_60 = arith.constant 0 : index
    %c8 = arith.constant 8 : index
    %c0_61 = arith.constant 0 : index
    %303 = vector.load %arg6[%c0_60, %c8, %c0_61] : memref<2x12x52xf32, #tpu.memory_space<vmem>>, vector<2x1x52xf32>
    %304 = vector.shape_cast %303 : vector<2x1x52xf32> to vector<2x52xf32>
    %305 = vector.shape_cast %302 : vector<2x52xf32> to vector<2x1x52xf32>
    tpu.vector_store %arg6[%c0_60, %c8, %c0_61], %305 {strides = array<i32>} : memref<2x12x52xf32, #tpu.memory_space<vmem>>, vector<2x1x52xf32>,
    %306 = vector.extract_strided_slice %7 {offsets = [18, 0], sizes = [2, 156], strides = [1, 1]} : vector<24x156xf32> to vector<2x156xf32>
    %cst_62 = arith.constant dense<0.000000e+00> : vector<2x156xf32>
    %307 = tpu.matmul %302, %0, %cst_62 {dimension_numbers = #tpu.dot_dimension_numbers<[1], [0], [0], [1], [0, 0, 1, 1], [], []>} : vector<2x52xf32>, vector<52x156xf32>, vector<2x156xf32> -> vector<2x156xf32>
    %308 = vector.broadcast %1 : vector<1x156xf32> to vector<2x156xf32>
    %309 = arith.addf %307, %308 : vector<2x156xf32>
    %310 = vector.extract_strided_slice %306 {offsets = [0, 0], sizes = [2, 52], strides = [1, 1]} : vector<2x156xf32> to vector<2x52xf32>
    %311 = vector.extract_strided_slice %309 {offsets = [0, 0], sizes = [2, 52], strides = [1, 1]} : vector<2x156xf32> to vector<2x52xf32>
    %312 = arith.addf %310, %311 : vector<2x52xf32>
    %313 = arith.negf %312 : vector<2x52xf32>
    %314 = math.exp %313 : vector<2x52xf32>
    %cst_63 = arith.constant 1.000000e+00 : f32
    %315 = vector.broadcast %cst_63 : f32 to vector<2x52xf32>
    %316 = arith.addf %315, %314 : vector<2x52xf32>
    %317 = arith.divf %315, %316 : vector<2x52xf32>
    %318 = vector.extract_strided_slice %306 {offsets = [0, 52], sizes = [2, 52], strides = [1, 1]} : vector<2x156xf32> to vector<2x52xf32>
    %319 = vector.extract_strided_slice %309 {offsets = [0, 52], sizes = [2, 52], strides = [1, 1]} : vector<2x156xf32> to vector<2x52xf32>
    %320 = arith.addf %318, %319 : vector<2x52xf32>
    %321 = arith.negf %320 : vector<2x52xf32>
    %322 = math.exp %321 : vector<2x52xf32>
    %cst_64 = arith.constant 1.000000e+00 : f32
    %323 = vector.broadcast %cst_64 : f32 to vector<2x52xf32>
    %324 = arith.addf %323, %322 : vector<2x52xf32>
    %325 = arith.divf %323, %324 : vector<2x52xf32>
    %326 = vector.extract_strided_slice %306 {offsets = [0, 104], sizes = [2, 52], strides = [1, 1]} : vector<2x156xf32> to vector<2x52xf32>
    %327 = vector.extract_strided_slice %309 {offsets = [0, 104], sizes = [2, 52], strides = [1, 1]} : vector<2x156xf32> to vector<2x52xf32>
    %328 = arith.mulf %317, %327 : vector<2x52xf32>
    %329 = arith.addf %326, %328 : vector<2x52xf32>
    %330 = math.tanh %329 : vector<2x52xf32>
    %cst_65 = arith.constant 1.000000e+00 : f32
    %331 = vector.broadcast %cst_65 : f32 to vector<2x52xf32>
    %332 = arith.subf %331, %325 : vector<2x52xf32>
    %333 = arith.mulf %332, %330 : vector<2x52xf32>
    %334 = arith.mulf %325, %302 : vector<2x52xf32>
    %335 = arith.addf %333, %334 : vector<2x52xf32>
    %c0_66 = arith.constant 0 : index
    %c9 = arith.constant 9 : index
    %c0_67 = arith.constant 0 : index
    %336 = vector.load %arg6[%c0_66, %c9, %c0_67] : memref<2x12x52xf32, #tpu.memory_space<vmem>>, vector<2x1x52xf32>
    %337 = vector.shape_cast %336 : vector<2x1x52xf32> to vector<2x52xf32>
    %338 = vector.shape_cast %335 : vector<2x52xf32> to vector<2x1x52xf32>
    tpu.vector_store %arg6[%c0_66, %c9, %c0_67], %338 {strides = array<i32>} : memref<2x12x52xf32, #tpu.memory_space<vmem>>, vector<2x1x52xf32>,
    %339 = vector.extract_strided_slice %7 {offsets = [20, 0], sizes = [2, 156], strides = [1, 1]} : vector<24x156xf32> to vector<2x156xf32>
    %cst_68 = arith.constant dense<0.000000e+00> : vector<2x156xf32>
    %340 = tpu.matmul %335, %0, %cst_68 {dimension_numbers = #tpu.dot_dimension_numbers<[1], [0], [0], [1], [0, 0, 1, 1], [], []>} : vector<2x52xf32>, vector<52x156xf32>, vector<2x156xf32> -> vector<2x156xf32>
    %341 = vector.broadcast %1 : vector<1x156xf32> to vector<2x156xf32>
    %342 = arith.addf %340, %341 : vector<2x156xf32>
    %343 = vector.extract_strided_slice %339 {offsets = [0, 0], sizes = [2, 52], strides = [1, 1]} : vector<2x156xf32> to vector<2x52xf32>
    %344 = vector.extract_strided_slice %342 {offsets = [0, 0], sizes = [2, 52], strides = [1, 1]} : vector<2x156xf32> to vector<2x52xf32>
    %345 = arith.addf %343, %344 : vector<2x52xf32>
    %346 = arith.negf %345 : vector<2x52xf32>
    %347 = math.exp %346 : vector<2x52xf32>
    %cst_69 = arith.constant 1.000000e+00 : f32
    %348 = vector.broadcast %cst_69 : f32 to vector<2x52xf32>
    %349 = arith.addf %348, %347 : vector<2x52xf32>
    %350 = arith.divf %348, %349 : vector<2x52xf32>
    %351 = vector.extract_strided_slice %339 {offsets = [0, 52], sizes = [2, 52], strides = [1, 1]} : vector<2x156xf32> to vector<2x52xf32>
    %352 = vector.extract_strided_slice %342 {offsets = [0, 52], sizes = [2, 52], strides = [1, 1]} : vector<2x156xf32> to vector<2x52xf32>
    %353 = arith.addf %351, %352 : vector<2x52xf32>
    %354 = arith.negf %353 : vector<2x52xf32>
    %355 = math.exp %354 : vector<2x52xf32>
    %cst_70 = arith.constant 1.000000e+00 : f32
    %356 = vector.broadcast %cst_70 : f32 to vector<2x52xf32>
    %357 = arith.addf %356, %355 : vector<2x52xf32>
    %358 = arith.divf %356, %357 : vector<2x52xf32>
    %359 = vector.extract_strided_slice %339 {offsets = [0, 104], sizes = [2, 52], strides = [1, 1]} : vector<2x156xf32> to vector<2x52xf32>
    %360 = vector.extract_strided_slice %342 {offsets = [0, 104], sizes = [2, 52], strides = [1, 1]} : vector<2x156xf32> to vector<2x52xf32>
    %361 = arith.mulf %350, %360 : vector<2x52xf32>
    %362 = arith.addf %359, %361 : vector<2x52xf32>
    %363 = math.tanh %362 : vector<2x52xf32>
    %cst_71 = arith.constant 1.000000e+00 : f32
    %364 = vector.broadcast %cst_71 : f32 to vector<2x52xf32>
    %365 = arith.subf %364, %358 : vector<2x52xf32>
    %366 = arith.mulf %365, %363 : vector<2x52xf32>
    %367 = arith.mulf %358, %335 : vector<2x52xf32>
    %368 = arith.addf %366, %367 : vector<2x52xf32>
    %c0_72 = arith.constant 0 : index
    %c10 = arith.constant 10 : index
    %c0_73 = arith.constant 0 : index
    %369 = vector.load %arg6[%c0_72, %c10, %c0_73] : memref<2x12x52xf32, #tpu.memory_space<vmem>>, vector<2x1x52xf32>
    %370 = vector.shape_cast %369 : vector<2x1x52xf32> to vector<2x52xf32>
    %371 = vector.shape_cast %368 : vector<2x52xf32> to vector<2x1x52xf32>
    tpu.vector_store %arg6[%c0_72, %c10, %c0_73], %371 {strides = array<i32>} : memref<2x12x52xf32, #tpu.memory_space<vmem>>, vector<2x1x52xf32>,
    %372 = vector.extract_strided_slice %7 {offsets = [22, 0], sizes = [2, 156], strides = [1, 1]} : vector<24x156xf32> to vector<2x156xf32>
    %cst_74 = arith.constant dense<0.000000e+00> : vector<2x156xf32>
    %373 = tpu.matmul %368, %0, %cst_74 {dimension_numbers = #tpu.dot_dimension_numbers<[1], [0], [0], [1], [0, 0, 1, 1], [], []>} : vector<2x52xf32>, vector<52x156xf32>, vector<2x156xf32> -> vector<2x156xf32>
    %374 = vector.broadcast %1 : vector<1x156xf32> to vector<2x156xf32>
    %375 = arith.addf %373, %374 : vector<2x156xf32>
    %376 = vector.extract_strided_slice %372 {offsets = [0, 0], sizes = [2, 52], strides = [1, 1]} : vector<2x156xf32> to vector<2x52xf32>
    %377 = vector.extract_strided_slice %375 {offsets = [0, 0], sizes = [2, 52], strides = [1, 1]} : vector<2x156xf32> to vector<2x52xf32>
    %378 = arith.addf %376, %377 : vector<2x52xf32>
    %379 = arith.negf %378 : vector<2x52xf32>
    %380 = math.exp %379 : vector<2x52xf32>
    %cst_75 = arith.constant 1.000000e+00 : f32
    %381 = vector.broadcast %cst_75 : f32 to vector<2x52xf32>
    %382 = arith.addf %381, %380 : vector<2x52xf32>
    %383 = arith.divf %381, %382 : vector<2x52xf32>
    %384 = vector.extract_strided_slice %372 {offsets = [0, 52], sizes = [2, 52], strides = [1, 1]} : vector<2x156xf32> to vector<2x52xf32>
    %385 = vector.extract_strided_slice %375 {offsets = [0, 52], sizes = [2, 52], strides = [1, 1]} : vector<2x156xf32> to vector<2x52xf32>
    %386 = arith.addf %384, %385 : vector<2x52xf32>
    %387 = arith.negf %386 : vector<2x52xf32>
    %388 = math.exp %387 : vector<2x52xf32>
    %cst_76 = arith.constant 1.000000e+00 : f32
    %389 = vector.broadcast %cst_76 : f32 to vector<2x52xf32>
    %390 = arith.addf %389, %388 : vector<2x52xf32>
    %391 = arith.divf %389, %390 : vector<2x52xf32>
    %392 = vector.extract_strided_slice %372 {offsets = [0, 104], sizes = [2, 52], strides = [1, 1]} : vector<2x156xf32> to vector<2x52xf32>
    %393 = vector.extract_strided_slice %375 {offsets = [0, 104], sizes = [2, 52], strides = [1, 1]} : vector<2x156xf32> to vector<2x52xf32>
    %394 = arith.mulf %383, %393 : vector<2x52xf32>
    %395 = arith.addf %392, %394 : vector<2x52xf32>
    %396 = math.tanh %395 : vector<2x52xf32>
    %cst_77 = arith.constant 1.000000e+00 : f32
    %397 = vector.broadcast %cst_77 : f32 to vector<2x52xf32>
    %398 = arith.subf %397, %391 : vector<2x52xf32>
    %399 = arith.mulf %398, %396 : vector<2x52xf32>
    %400 = arith.mulf %391, %368 : vector<2x52xf32>
    %401 = arith.addf %399, %400 : vector<2x52xf32>
    %c0_78 = arith.constant 0 : index
    %c11 = arith.constant 11 : index
    %c0_79 = arith.constant 0 : index
    %402 = vector.load %arg6[%c0_78, %c11, %c0_79] : memref<2x12x52xf32, #tpu.memory_space<vmem>>, vector<2x1x52xf32>
    %403 = vector.shape_cast %402 : vector<2x1x52xf32> to vector<2x52xf32>
    %404 = vector.shape_cast %401 : vector<2x52xf32> to vector<2x1x52xf32>
    tpu.vector_store %arg6[%c0_78, %c11, %c0_79], %404 {strides = array<i32>} : memref<2x12x52xf32, #tpu.memory_space<vmem>>, vector<2x1x52xf32>,
    %c0_80 = arith.constant 0 : index
    %c0_81 = arith.constant 0 : index
    %c0_82 = arith.constant 0 : index
    %405 = vector.load %arg6[%c0_80, %c0_81, %c0_82] : memref<2x12x52xf32, #tpu.memory_space<vmem>>, vector<1x12x52xf32>
    %406 = vector.shape_cast %405 : vector<1x12x52xf32> to vector<12x52xf32>
    %c128 = arith.constant 128 : index
    %c0_83 = arith.constant 0 : index
    %407 = vector.load %arg2[%c128, %c0_83] : memref<240x156xf32, #tpu.memory_space<vmem>>, vector<52x36xf32>
    %cst_84 = arith.constant dense<0.000000e+00> : vector<12x36xf32>
    %408 = tpu.matmul %406, %407, %cst_84 {dimension_numbers = #tpu.dot_dimension_numbers<[1], [0], [0], [1], [0, 0, 1, 1], [], []>} : vector<12x52xf32>, vector<52x36xf32>, vector<12x36xf32> -> vector<12x36xf32>
    %409 = vector.extract_strided_slice %408 {offsets = [0, 0], sizes = [12, 12], strides = [1, 1]} : vector<12x36xf32> to vector<12x12xf32>
    %410 = vector.extract_strided_slice %408 {offsets = [0, 12], sizes = [12, 12], strides = [1, 1]} : vector<12x36xf32> to vector<12x12xf32>
    %411 = vector.extract_strided_slice %408 {offsets = [0, 24], sizes = [12, 12], strides = [1, 1]} : vector<12x36xf32> to vector<12x12xf32>
    %412 = tpu.transpose %409, [1, 0] : vector<12x12xf32> -> vector<12x12xf32>
    %cst_85 = arith.constant dense<0.000000e+00> : vector<12x12xf32>
    %413 = tpu.matmul %410, %412, %cst_85 {dimension_numbers = #tpu.dot_dimension_numbers<[1], [0], [0], [1], [0, 0, 1, 1], [], []>} : vector<12x12xf32>, vector<12x12xf32>, vector<12x12xf32> -> vector<12x12xf32>
    %cst_86 = arith.constant dense<0xFF800000> : vector<12xf32>
    %414 = vector.multi_reduction <maximumf>, %413, %cst_86 [0] : vector<12x12xf32> to vector<12xf32>
    %415 = vector.shape_cast %414 : vector<12xf32> to vector<1x12xf32>
    %416 = vector.broadcast %415 : vector<1x12xf32> to vector<12x12xf32>
    %417 = arith.subf %413, %416 : vector<12x12xf32>
    %418 = math.exp %417 : vector<12x12xf32>
    %cst_87 = arith.constant dense<0.000000e+00> : vector<12xf32>
    %419 = vector.multi_reduction <add>, %418, %cst_87 [0] : vector<12x12xf32> to vector<12xf32>
    %420 = vector.shape_cast %419 : vector<12xf32> to vector<1x12xf32>
    %421 = vector.broadcast %420 : vector<1x12xf32> to vector<12x12xf32>
    %422 = arith.divf %418, %421 : vector<12x12xf32>
    %cst_88 = arith.constant dense<0.000000e+00> : vector<12x12xf32>
    %423 = tpu.matmul %422, %411, %cst_88 {dimension_numbers = #tpu.dot_dimension_numbers<[1], [0], [0], [1], [0, 0, 1, 1], [], []>} : vector<12x12xf32>, vector<12x12xf32>, vector<12x12xf32> -> vector<12x12xf32>
    %cst_89 = arith.constant 0.000000e+00 : f32
    %424 = vector.broadcast %cst_89 : f32 to vector<12x12xf32>
    %425 = arith.maximumf %423, %424 : vector<12x12xf32>
    %426 = tpu.transpose %425, [1, 0] : vector<12x12xf32> -> vector<12x12xf32>
    %427 = arith.addf %425, %426 : vector<12x12xf32>
    %cst_90 = arith.constant 5.000000e-01 : f32
    %428 = vector.broadcast %cst_90 : f32 to vector<12x12xf32>
    %429 = arith.mulf %428, %427 : vector<12x12xf32>
    %cst_91 = arith.constant dense<0.000000e+00> : vector<12xf32>
    %430 = vector.multi_reduction <add>, %429, %cst_91 [0] : vector<12x12xf32> to vector<12xf32>
    %431 = vector.shape_cast %430 : vector<12xf32> to vector<1x12xf32>
    %cst_92 = arith.constant dense<0.000000e+00> : vector<12xf32>
    %432 = vector.multi_reduction <add>, %429, %cst_92 [1] : vector<12x12xf32> to vector<12xf32>
    %433 = vector.shape_cast %432 : vector<12xf32> to vector<12x1xf32>
    %cst_93 = arith.constant 0.000000e+00 : f32
    %434 = vector.broadcast %cst_93 : f32 to vector<1x12xf32>
    %435 = arith.cmpf ogt, %431, %434 : vector<1x12xf32>
    %436 = math.rsqrt %431 : vector<1x12xf32>
    %cst_94 = arith.constant 0.000000e+00 : f32
    %437 = vector.broadcast %cst_94 : f32 to vector<1x12xf32>
    %438 = arith.select %435, %436, %437 : vector<1x12xi1>, vector<1x12xf32>
    %cst_95 = arith.constant 0.000000e+00 : f32
    %439 = vector.broadcast %cst_95 : f32 to vector<12x1xf32>
    %440 = arith.cmpf ogt, %433, %439 : vector<12x1xf32>
    %441 = math.rsqrt %433 : vector<12x1xf32>
    %cst_96 = arith.constant 0.000000e+00 : f32
    %442 = vector.broadcast %cst_96 : f32 to vector<12x1xf32>
    %443 = arith.select %440, %441, %442 : vector<12x1xi1>, vector<12x1xf32>
    %444 = vector.broadcast %443 : vector<12x1xf32> to vector<12x12xf32>
    %445 = arith.mulf %444, %429 : vector<12x12xf32>
    %446 = vector.broadcast %438 : vector<1x12xf32> to vector<12x12xf32>
    %447 = arith.mulf %445, %446 : vector<12x12xf32>
    %c0_97 = arith.constant 0 : index
    %c0_98 = arith.constant 0 : index
    %448 = vector.load %arg1[%c0_97, %c0_98] : memref<32x12xf32, #tpu.memory_space<vmem>>, vector<16x12xf32>
    %cst_99 = arith.constant dense<0.000000e+00> : vector<16x12xf32>
    %449 = tpu.matmul %448, %447, %cst_99 {dimension_numbers = #tpu.dot_dimension_numbers<[1], [0], [0], [1], [0, 0, 1, 1], [], []>} : vector<16x12xf32>, vector<12x12xf32>, vector<16x12xf32> -> vector<16x12xf32>
    %c1_100 = arith.constant 1 : index
    %c0_101 = arith.constant 0 : index
    %c0_102 = arith.constant 0 : index
    %450 = vector.load %arg6[%c1_100, %c0_101, %c0_102] : memref<2x12x52xf32, #tpu.memory_space<vmem>>, vector<1x12x52xf32>
    %451 = vector.shape_cast %450 : vector<1x12x52xf32> to vector<12x52xf32>
    %c184 = arith.constant 184 : index
    %c0_103 = arith.constant 0 : index
    %452 = vector.load %arg2[%c184, %c0_103] : memref<240x156xf32, #tpu.memory_space<vmem>>, vector<52x36xf32>
    %cst_104 = arith.constant dense<0.000000e+00> : vector<12x36xf32>
    %453 = tpu.matmul %451, %452, %cst_104 {dimension_numbers = #tpu.dot_dimension_numbers<[1], [0], [0], [1], [0, 0, 1, 1], [], []>} : vector<12x52xf32>, vector<52x36xf32>, vector<12x36xf32> -> vector<12x36xf32>
    %454 = vector.extract_strided_slice %453 {offsets = [0, 0], sizes = [12, 12], strides = [1, 1]} : vector<12x36xf32> to vector<12x12xf32>
    %455 = vector.extract_strided_slice %453 {offsets = [0, 12], sizes = [12, 12], strides = [1, 1]} : vector<12x36xf32> to vector<12x12xf32>
    %456 = vector.extract_strided_slice %453 {offsets = [0, 24], sizes = [12, 12], strides = [1, 1]} : vector<12x36xf32> to vector<12x12xf32>
    %457 = tpu.transpose %454, [1, 0] : vector<12x12xf32> -> vector<12x12xf32>
    %cst_105 = arith.constant dense<0.000000e+00> : vector<12x12xf32>
    %458 = tpu.matmul %455, %457, %cst_105 {dimension_numbers = #tpu.dot_dimension_numbers<[1], [0], [0], [1], [0, 0, 1, 1], [], []>} : vector<12x12xf32>, vector<12x12xf32>, vector<12x12xf32> -> vector<12x12xf32>
    %cst_106 = arith.constant dense<0xFF800000> : vector<12xf32>
    %459 = vector.multi_reduction <maximumf>, %458, %cst_106 [0] : vector<12x12xf32> to vector<12xf32>
    %460 = vector.shape_cast %459 : vector<12xf32> to vector<1x12xf32>
    %461 = vector.broadcast %460 : vector<1x12xf32> to vector<12x12xf32>
    %462 = arith.subf %458, %461 : vector<12x12xf32>
    %463 = math.exp %462 : vector<12x12xf32>
    %cst_107 = arith.constant dense<0.000000e+00> : vector<12xf32>
    %464 = vector.multi_reduction <add>, %463, %cst_107 [0] : vector<12x12xf32> to vector<12xf32>
    %465 = vector.shape_cast %464 : vector<12xf32> to vector<1x12xf32>
    %466 = vector.broadcast %465 : vector<1x12xf32> to vector<12x12xf32>
    %467 = arith.divf %463, %466 : vector<12x12xf32>
    %cst_108 = arith.constant dense<0.000000e+00> : vector<12x12xf32>
    %468 = tpu.matmul %467, %456, %cst_108 {dimension_numbers = #tpu.dot_dimension_numbers<[1], [0], [0], [1], [0, 0, 1, 1], [], []>} : vector<12x12xf32>, vector<12x12xf32>, vector<12x12xf32> -> vector<12x12xf32>
    %cst_109 = arith.constant 0.000000e+00 : f32
    %469 = vector.broadcast %cst_109 : f32 to vector<12x12xf32>
    %470 = arith.maximumf %468, %469 : vector<12x12xf32>
    %471 = tpu.transpose %470, [1, 0] : vector<12x12xf32> -> vector<12x12xf32>
    %472 = arith.addf %470, %471 : vector<12x12xf32>
    %cst_110 = arith.constant 5.000000e-01 : f32
    %473 = vector.broadcast %cst_110 : f32 to vector<12x12xf32>
    %474 = arith.mulf %473, %472 : vector<12x12xf32>
    %cst_111 = arith.constant dense<0.000000e+00> : vector<12xf32>
    %475 = vector.multi_reduction <add>, %474, %cst_111 [0] : vector<12x12xf32> to vector<12xf32>
    %476 = vector.shape_cast %475 : vector<12xf32> to vector<1x12xf32>
    %cst_112 = arith.constant dense<0.000000e+00> : vector<12xf32>
    %477 = vector.multi_reduction <add>, %474, %cst_112 [1] : vector<12x12xf32> to vector<12xf32>
    %478 = vector.shape_cast %477 : vector<12xf32> to vector<12x1xf32>
    %cst_113 = arith.constant 0.000000e+00 : f32
    %479 = vector.broadcast %cst_113 : f32 to vector<1x12xf32>
    %480 = arith.cmpf ogt, %476, %479 : vector<1x12xf32>
    %481 = math.rsqrt %476 : vector<1x12xf32>
    %cst_114 = arith.constant 0.000000e+00 : f32
    %482 = vector.broadcast %cst_114 : f32 to vector<1x12xf32>
    %483 = arith.select %480, %481, %482 : vector<1x12xi1>, vector<1x12xf32>
    %cst_115 = arith.constant 0.000000e+00 : f32
    %484 = vector.broadcast %cst_115 : f32 to vector<12x1xf32>
    %485 = arith.cmpf ogt, %478, %484 : vector<12x1xf32>
    %486 = math.rsqrt %478 : vector<12x1xf32>
    %cst_116 = arith.constant 0.000000e+00 : f32
    %487 = vector.broadcast %cst_116 : f32 to vector<12x1xf32>
    %488 = arith.select %485, %486, %487 : vector<12x1xi1>, vector<12x1xf32>
    %489 = vector.broadcast %488 : vector<12x1xf32> to vector<12x12xf32>
    %490 = arith.mulf %489, %474 : vector<12x12xf32>
    %491 = vector.broadcast %483 : vector<1x12xf32> to vector<12x12xf32>
    %492 = arith.mulf %490, %491 : vector<12x12xf32>
    %c16 = arith.constant 16 : index
    %c0_117 = arith.constant 0 : index
    %493 = vector.load %arg1[%c16, %c0_117] : memref<32x12xf32, #tpu.memory_space<vmem>>, vector<16x12xf32>
    %cst_118 = arith.constant dense<0.000000e+00> : vector<16x12xf32>
    %494 = tpu.matmul %493, %492, %cst_118 {dimension_numbers = #tpu.dot_dimension_numbers<[1], [0], [0], [1], [0, 0, 1, 1], [], []>} : vector<16x12xf32>, vector<12x12xf32>, vector<16x12xf32> -> vector<16x12xf32>
    %495 = tpu.concatenate %449, %494 in 0 : vector<16x12xf32>, vector<16x12xf32> -> vector<32x12xf32>
    %c16_119 = arith.constant 16 : index
    %c0_120 = arith.constant 0 : index
    %496 = vector.load %arg3[%c16_119, %c0_120] : memref<1696x128xf32, #tpu.memory_space<vmem>>, vector<12x64xf32>
    %cst_121 = arith.constant dense<0.000000e+00> : vector<32x64xf32>
    %497 = tpu.matmul %495, %496, %cst_121 {dimension_numbers = #tpu.dot_dimension_numbers<[1], [0], [0], [1], [0, 0, 1, 1], [], []>} : vector<32x12xf32>, vector<12x64xf32>, vector<32x64xf32> -> vector<32x64xf32>
    %c32 = arith.constant 32 : index
    %c0_122 = arith.constant 0 : index
    %498 = vector.load %arg3[%c32, %c0_122] : memref<1696x128xf32, #tpu.memory_space<vmem>>, vector<1x64xf32>
    %499 = vector.broadcast %498 : vector<1x64xf32> to vector<32x64xf32>
    %500 = arith.addf %497, %499 : vector<32x64xf32>
    %cst_123 = arith.constant 0.000000e+00 : f32
    %501 = vector.broadcast %cst_123 : f32 to vector<1x12xf32>
    %502 = vector.extract_strided_slice %495 {offsets = [0, 0], sizes = [31, 12], strides = [1, 1]} : vector<32x12xf32> to vector<31x12xf32>
    %503 = tpu.concatenate %501, %502 in 0 : vector<1x12xf32>, vector<31x12xf32> -> vector<32x12xf32>
    %504 = tpu.iota {dimensions = array<i32: 0>} : vector<32x12xi32>
    %c7_i32 = arith.constant 7 : i32
    %505 = vector.broadcast %c7_i32 : i32 to vector<32x12xi32>
    %506 = arith.andi %504, %505 : vector<32x12xi32>
    %c1_i32 = arith.constant 1 : i32
    %507 = vector.broadcast %c1_i32 : i32 to vector<32x12xi32>
    %508 = arith.cmpi sge, %506, %507 : vector<32x12xi32>
    %cst_124 = arith.constant 0.000000e+00 : f32
    %509 = vector.broadcast %cst_124 : f32 to vector<32x12xf32>
    %510 = arith.select %508, %503, %509 : vector<32x12xi1>, vector<32x12xf32>
    %c0_125 = arith.constant 0 : index
    %c0_126 = arith.constant 0 : index
    %511 = vector.load %arg3[%c0_125, %c0_126] : memref<1696x128xf32, #tpu.memory_space<vmem>>, vector<12x64xf32>
    %cst_127 = arith.constant dense<0.000000e+00> : vector<32x64xf32>
    %512 = tpu.matmul %510, %511, %cst_127 {dimension_numbers = #tpu.dot_dimension_numbers<[1], [0], [0], [1], [0, 0, 1, 1], [], []>} : vector<32x12xf32>, vector<12x64xf32>, vector<32x64xf32> -> vector<32x64xf32>
    %513 = arith.addf %500, %512 : vector<32x64xf32>
    %cst_128 = arith.constant 0.000000e+00 : f32
    %514 = vector.broadcast %cst_128 : f32 to vector<32x64xf32>
    %515 = arith.maximumf %513, %514 : vector<32x64xf32>
    %c104 = arith.constant 104 : index
    %c0_129 = arith.constant 0 : index
    %516 = vector.load %arg3[%c104, %c0_129] : memref<1696x128xf32, #tpu.memory_space<vmem>>, vector<64x64xf32>
    %cst_130 = arith.constant dense<0.000000e+00> : vector<32x64xf32>
    %517 = tpu.matmul %515, %516, %cst_130 {dimension_numbers = #tpu.dot_dimension_numbers<[1], [0], [0], [1], [0, 0, 1, 1], [], []>} : vector<32x64xf32>, vector<64x64xf32>, vector<32x64xf32> -> vector<32x64xf32>
    %c168 = arith.constant 168 : index
    %c0_131 = arith.constant 0 : index
    %518 = vector.load %arg3[%c168, %c0_131] : memref<1696x128xf32, #tpu.memory_space<vmem>>, vector<1x64xf32>
    %519 = vector.broadcast %518 : vector<1x64xf32> to vector<32x64xf32>
    %520 = arith.addf %517, %519 : vector<32x64xf32>
    %cst_132 = arith.constant 0.000000e+00 : f32
    %521 = vector.broadcast %cst_132 : f32 to vector<1x64xf32>
    %522 = vector.extract_strided_slice %515 {offsets = [0, 0], sizes = [31, 64], strides = [1, 1]} : vector<32x64xf32> to vector<31x64xf32>
    %523 = tpu.concatenate %521, %522 in 0 : vector<1x64xf32>, vector<31x64xf32> -> vector<32x64xf32>
    %524 = tpu.iota {dimensions = array<i32: 0>} : vector<32x64xi32>
    %c7_i32_133 = arith.constant 7 : i32
    %525 = vector.broadcast %c7_i32_133 : i32 to vector<32x64xi32>
    %526 = arith.andi %524, %525 : vector<32x64xi32>
    %c1_i32_134 = arith.constant 1 : i32
    %527 = vector.broadcast %c1_i32_134 : i32 to vector<32x64xi32>
    %528 = arith.cmpi sge, %526, %527 : vector<32x64xi32>
    %cst_135 = arith.constant 0.000000e+00 : f32
    %529 = vector.broadcast %cst_135 : f32 to vector<32x64xf32>
    %530 = arith.select %528, %523, %529 : vector<32x64xi1>, vector<32x64xf32>
    %c40 = arith.constant 40 : index
    %c0_136 = arith.constant 0 : index
    %531 = vector.load %arg3[%c40, %c0_136] : memref<1696x128xf32, #tpu.memory_space<vmem>>, vector<64x64xf32>
    %cst_137 = arith.constant dense<0.000000e+00> : vector<32x64xf32>
    %532 = tpu.matmul %530, %531, %cst_137 {dimension_numbers = #tpu.dot_dimension_numbers<[1], [0], [0], [1], [0, 0, 1, 1], [], []>} : vector<32x64xf32>, vector<64x64xf32>, vector<32x64xf32> -> vector<32x64xf32>
    %533 = arith.addf %520, %532 : vector<32x64xf32>
    %cst_138 = arith.constant 0.000000e+00 : f32
    %534 = vector.broadcast %cst_138 : f32 to vector<32x64xf32>
    %535 = arith.maximumf %533, %534 : vector<32x64xf32>
    %c176 = arith.constant 176 : index
    %c0_139 = arith.constant 0 : index
    %536 = vector.load %arg3[%c176, %c0_139] : memref<1696x128xf32, #tpu.memory_space<vmem>>, vector<12x64xf32>
    %cst_140 = arith.constant dense<0.000000e+00> : vector<32x64xf32>
    %537 = tpu.matmul %495, %536, %cst_140 {dimension_numbers = #tpu.dot_dimension_numbers<[1], [0], [0], [1], [0, 0, 1, 1], [], []>} : vector<32x12xf32>, vector<12x64xf32>, vector<32x64xf32> -> vector<32x64xf32>
    %c192 = arith.constant 192 : index
    %c0_141 = arith.constant 0 : index
    %538 = vector.load %arg3[%c192, %c0_141] : memref<1696x128xf32, #tpu.memory_space<vmem>>, vector<1x64xf32>
    %539 = vector.broadcast %538 : vector<1x64xf32> to vector<32x64xf32>
    %540 = arith.addf %537, %539 : vector<32x64xf32>
    %541 = arith.addf %535, %540 : vector<32x64xf32>
    %cst_142 = arith.constant 0.000000e+00 : f32
    %542 = vector.broadcast %cst_142 : f32 to vector<32x64xf32>
    %543 = arith.maximumf %541, %542 : vector<32x64xf32>
    %c264 = arith.constant 264 : index
    %c0_143 = arith.constant 0 : index
    %544 = vector.load %arg3[%c264, %c0_143] : memref<1696x128xf32, #tpu.memory_space<vmem>>, vector<64x128xf32>
    %cst_144 = arith.constant dense<0.000000e+00> : vector<32x128xf32>
    %545 = tpu.matmul %543, %544, %cst_144 {dimension_numbers = #tpu.dot_dimension_numbers<[1], [0], [0], [1], [0, 0, 1, 1], [], []>} : vector<32x64xf32>, vector<64x128xf32>, vector<32x128xf32> -> vector<32x128xf32>
    %c328 = arith.constant 328 : index
    %c0_145 = arith.constant 0 : index
    %546 = vector.load %arg3[%c328, %c0_145] : memref<1696x128xf32, #tpu.memory_space<vmem>>, vector<1x128xf32>
    %547 = vector.broadcast %546 : vector<1x128xf32> to vector<32x128xf32>
    %548 = arith.addf %545, %547 : vector<32x128xf32>
    %cst_146 = arith.constant 0.000000e+00 : f32
    %549 = vector.broadcast %cst_146 : f32 to vector<2x64xf32>
    %550 = vector.extract_strided_slice %543 {offsets = [0, 0], sizes = [30, 64], strides = [1, 1]} : vector<32x64xf32> to vector<30x64xf32>
    %551 = tpu.concatenate %549, %550 in 0 : vector<2x64xf32>, vector<30x64xf32> -> vector<32x64xf32>
    %552 = tpu.iota {dimensions = array<i32: 0>} : vector<32x64xi32>
    %c7_i32_147 = arith.constant 7 : i32
    %553 = vector.broadcast %c7_i32_147 : i32 to vector<32x64xi32>
    %554 = arith.andi %552, %553 : vector<32x64xi32>
    %c2_i32 = arith.constant 2 : i32
    %555 = vector.broadcast %c2_i32 : i32 to vector<32x64xi32>
    %556 = arith.cmpi sge, %554, %555 : vector<32x64xi32>
    %cst_148 = arith.constant 0.000000e+00 : f32
    %557 = vector.broadcast %cst_148 : f32 to vector<32x64xf32>
    %558 = arith.select %556, %551, %557 : vector<32x64xi1>, vector<32x64xf32>
    %c200 = arith.constant 200 : index
    %c0_149 = arith.constant 0 : index
    %559 = vector.load %arg3[%c200, %c0_149] : memref<1696x128xf32, #tpu.memory_space<vmem>>, vector<64x128xf32>
    %cst_150 = arith.constant dense<0.000000e+00> : vector<32x128xf32>
    %560 = tpu.matmul %558, %559, %cst_150 {dimension_numbers = #tpu.dot_dimension_numbers<[1], [0], [0], [1], [0, 0, 1, 1], [], []>} : vector<32x64xf32>, vector<64x128xf32>, vector<32x128xf32> -> vector<32x128xf32>
    %561 = arith.addf %548, %560 : vector<32x128xf32>
    %cst_151 = arith.constant 0.000000e+00 : f32
    %562 = vector.broadcast %cst_151 : f32 to vector<32x128xf32>
    %563 = arith.maximumf %561, %562 : vector<32x128xf32>
    %c464 = arith.constant 464 : index
    %c0_152 = arith.constant 0 : index
    %564 = vector.load %arg3[%c464, %c0_152] : memref<1696x128xf32, #tpu.memory_space<vmem>>, vector<128x128xf32>
    %cst_153 = arith.constant dense<0.000000e+00> : vector<32x128xf32>
    %565 = tpu.matmul %563, %564, %cst_153 {dimension_numbers = #tpu.dot_dimension_numbers<[1], [0], [0], [1], [0, 0, 1, 1], [], []>} : vector<32x128xf32>, vector<128x128xf32>, vector<32x128xf32> -> vector<32x128xf32>
    %c592 = arith.constant 592 : index
    %c0_154 = arith.constant 0 : index
    %566 = vector.load %arg3[%c592, %c0_154] : memref<1696x128xf32, #tpu.memory_space<vmem>>, vector<1x128xf32>
    %567 = vector.broadcast %566 : vector<1x128xf32> to vector<32x128xf32>
    %568 = arith.addf %565, %567 : vector<32x128xf32>
    %cst_155 = arith.constant 0.000000e+00 : f32
    %569 = vector.broadcast %cst_155 : f32 to vector<2x128xf32>
    %570 = vector.extract_strided_slice %563 {offsets = [0, 0], sizes = [30, 128], strides = [1, 1]} : vector<32x128xf32> to vector<30x128xf32>
    %571 = tpu.concatenate %569, %570 in 0 : vector<2x128xf32>, vector<30x128xf32> -> vector<32x128xf32>
    %572 = tpu.iota {dimensions = array<i32: 0>} : vector<32x128xi32>
    %c7_i32_156 = arith.constant 7 : i32
    %573 = vector.broadcast %c7_i32_156 : i32 to vector<32x128xi32>
    %574 = arith.andi %572, %573 : vector<32x128xi32>
    %c2_i32_157 = arith.constant 2 : i32
    %575 = vector.broadcast %c2_i32_157 : i32 to vector<32x128xi32>
    %576 = arith.cmpi sge, %574, %575 : vector<32x128xi32>
    %cst_158 = arith.constant 0.000000e+00 : f32
    %577 = vector.broadcast %cst_158 : f32 to vector<32x128xf32>
    %578 = arith.select %576, %571, %577 : vector<32x128xi1>, vector<32x128xf32>
    %c336 = arith.constant 336 : index
    %c0_159 = arith.constant 0 : index
    %579 = vector.load %arg3[%c336, %c0_159] : memref<1696x128xf32, #tpu.memory_space<vmem>>, vector<128x128xf32>
    %cst_160 = arith.constant dense<0.000000e+00> : vector<32x128xf32>
    %580 = tpu.matmul %578, %579, %cst_160 {dimension_numbers = #tpu.dot_dimension_numbers<[1], [0], [0], [1], [0, 0, 1, 1], [], []>} : vector<32x128xf32>, vector<128x128xf32>, vector<32x128xf32> -> vector<32x128xf32>
    %581 = arith.addf %568, %580 : vector<32x128xf32>
    %cst_161 = arith.constant 0.000000e+00 : f32
    %582 = vector.broadcast %cst_161 : f32 to vector<32x128xf32>
    %583 = arith.maximumf %581, %582 : vector<32x128xf32>
    %c600 = arith.constant 600 : index
    %c0_162 = arith.constant 0 : index
    %584 = vector.load %arg3[%c600, %c0_162] : memref<1696x128xf32, #tpu.memory_space<vmem>>, vector<64x128xf32>
    %cst_163 = arith.constant dense<0.000000e+00> : vector<32x128xf32>
    %585 = tpu.matmul %543, %584, %cst_163 {dimension_numbers = #tpu.dot_dimension_numbers<[1], [0], [0], [1], [0, 0, 1, 1], [], []>} : vector<32x64xf32>, vector<64x128xf32>, vector<32x128xf32> -> vector<32x128xf32>
    %c664 = arith.constant 664 : index
    %c0_164 = arith.constant 0 : index
    %586 = vector.load %arg3[%c664, %c0_164] : memref<1696x128xf32, #tpu.memory_space<vmem>>, vector<1x128xf32>
    %587 = vector.broadcast %586 : vector<1x128xf32> to vector<32x128xf32>
    %588 = arith.addf %585, %587 : vector<32x128xf32>
    %589 = arith.addf %583, %588 : vector<32x128xf32>
    %cst_165 = arith.constant 0.000000e+00 : f32
    %590 = vector.broadcast %cst_165 : f32 to vector<32x128xf32>
    %591 = arith.maximumf %589, %590 : vector<32x128xf32>
    %c800 = arith.constant 800 : index
    %c0_166 = arith.constant 0 : index
    %592 = vector.load %arg3[%c800, %c0_166] : memref<1696x128xf32, #tpu.memory_space<vmem>>, vector<128x128xf32>
    %cst_167 = arith.constant dense<0.000000e+00> : vector<32x128xf32>
    %593 = tpu.matmul %591, %592, %cst_167 {dimension_numbers = #tpu.dot_dimension_numbers<[1], [0], [0], [1], [0, 0, 1, 1], [], []>} : vector<32x128xf32>, vector<128x128xf32>, vector<32x128xf32> -> vector<32x128xf32>
    %c928 = arith.constant 928 : index
    %c0_168 = arith.constant 0 : index
    %594 = vector.load %arg3[%c928, %c0_168] : memref<1696x128xf32, #tpu.memory_space<vmem>>, vector<1x128xf32>
    %595 = vector.broadcast %594 : vector<1x128xf32> to vector<32x128xf32>
    %596 = arith.addf %593, %595 : vector<32x128xf32>
    %cst_169 = arith.constant 0.000000e+00 : f32
    %597 = vector.broadcast %cst_169 : f32 to vector<4x128xf32>
    %598 = vector.extract_strided_slice %591 {offsets = [0, 0], sizes = [28, 128], strides = [1, 1]} : vector<32x128xf32> to vector<28x128xf32>
    %599 = tpu.concatenate %597, %598 in 0 : vector<4x128xf32>, vector<28x128xf32> -> vector<32x128xf32>
    %600 = tpu.iota {dimensions = array<i32: 0>} : vector<32x128xi32>
    %c7_i32_170 = arith.constant 7 : i32
    %601 = vector.broadcast %c7_i32_170 : i32 to vector<32x128xi32>
    %602 = arith.andi %600, %601 : vector<32x128xi32>
    %c4_i32 = arith.constant 4 : i32
    %603 = vector.broadcast %c4_i32 : i32 to vector<32x128xi32>
    %604 = arith.cmpi sge, %602, %603 : vector<32x128xi32>
    %cst_171 = arith.constant 0.000000e+00 : f32
    %605 = vector.broadcast %cst_171 : f32 to vector<32x128xf32>
    %606 = arith.select %604, %599, %605 : vector<32x128xi1>, vector<32x128xf32>
    %c672 = arith.constant 672 : index
    %c0_172 = arith.constant 0 : index
    %607 = vector.load %arg3[%c672, %c0_172] : memref<1696x128xf32, #tpu.memory_space<vmem>>, vector<128x128xf32>
    %cst_173 = arith.constant dense<0.000000e+00> : vector<32x128xf32>
    %608 = tpu.matmul %606, %607, %cst_173 {dimension_numbers = #tpu.dot_dimension_numbers<[1], [0], [0], [1], [0, 0, 1, 1], [], []>} : vector<32x128xf32>, vector<128x128xf32>, vector<32x128xf32> -> vector<32x128xf32>
    %609 = arith.addf %596, %608 : vector<32x128xf32>
    %cst_174 = arith.constant 0.000000e+00 : f32
    %610 = vector.broadcast %cst_174 : f32 to vector<32x128xf32>
    %611 = arith.maximumf %609, %610 : vector<32x128xf32>
    %c1064 = arith.constant 1064 : index
    %c0_175 = arith.constant 0 : index
    %612 = vector.load %arg3[%c1064, %c0_175] : memref<1696x128xf32, #tpu.memory_space<vmem>>, vector<128x128xf32>
    %cst_176 = arith.constant dense<0.000000e+00> : vector<32x128xf32>
    %613 = tpu.matmul %611, %612, %cst_176 {dimension_numbers = #tpu.dot_dimension_numbers<[1], [0], [0], [1], [0, 0, 1, 1], [], []>} : vector<32x128xf32>, vector<128x128xf32>, vector<32x128xf32> -> vector<32x128xf32>
    %c1192 = arith.constant 1192 : index
    %c0_177 = arith.constant 0 : index
    %614 = vector.load %arg3[%c1192, %c0_177] : memref<1696x128xf32, #tpu.memory_space<vmem>>, vector<1x128xf32>
    %615 = vector.broadcast %614 : vector<1x128xf32> to vector<32x128xf32>
    %616 = arith.addf %613, %615 : vector<32x128xf32>
    %cst_178 = arith.constant 0.000000e+00 : f32
    %617 = vector.broadcast %cst_178 : f32 to vector<4x128xf32>
    %618 = vector.extract_strided_slice %611 {offsets = [0, 0], sizes = [28, 128], strides = [1, 1]} : vector<32x128xf32> to vector<28x128xf32>
    %619 = tpu.concatenate %617, %618 in 0 : vector<4x128xf32>, vector<28x128xf32> -> vector<32x128xf32>
    %620 = tpu.iota {dimensions = array<i32: 0>} : vector<32x128xi32>
    %c7_i32_179 = arith.constant 7 : i32
    %621 = vector.broadcast %c7_i32_179 : i32 to vector<32x128xi32>
    %622 = arith.andi %620, %621 : vector<32x128xi32>
    %c4_i32_180 = arith.constant 4 : i32
    %623 = vector.broadcast %c4_i32_180 : i32 to vector<32x128xi32>
    %624 = arith.cmpi sge, %622, %623 : vector<32x128xi32>
    %cst_181 = arith.constant 0.000000e+00 : f32
    %625 = vector.broadcast %cst_181 : f32 to vector<32x128xf32>
    %626 = arith.select %624, %619, %625 : vector<32x128xi1>, vector<32x128xf32>
    %c936 = arith.constant 936 : index
    %c0_182 = arith.constant 0 : index
    %627 = vector.load %arg3[%c936, %c0_182] : memref<1696x128xf32, #tpu.memory_space<vmem>>, vector<128x128xf32>
    %cst_183 = arith.constant dense<0.000000e+00> : vector<32x128xf32>
    %628 = tpu.matmul %626, %627, %cst_183 {dimension_numbers = #tpu.dot_dimension_numbers<[1], [0], [0], [1], [0, 0, 1, 1], [], []>} : vector<32x128xf32>, vector<128x128xf32>, vector<32x128xf32> -> vector<32x128xf32>
    %629 = arith.addf %616, %628 : vector<32x128xf32>
    %cst_184 = arith.constant 0.000000e+00 : f32
    %630 = vector.broadcast %cst_184 : f32 to vector<32x128xf32>
    %631 = arith.maximumf %629, %630 : vector<32x128xf32>
    %632 = arith.addf %631, %591 : vector<32x128xf32>
    %cst_185 = arith.constant 0.000000e+00 : f32
    %633 = vector.broadcast %cst_185 : f32 to vector<32x128xf32>
    %634 = arith.maximumf %632, %633 : vector<32x128xf32>
    %c1200 = arith.constant 1200 : index
    %c0_186 = arith.constant 0 : index
    %635 = vector.load %arg3[%c1200, %c0_186] : memref<1696x128xf32, #tpu.memory_space<vmem>>, vector<128x12xf32>
    %cst_187 = arith.constant dense<0.000000e+00> : vector<32x12xf32>
    %636 = tpu.matmul %634, %635, %cst_187 {dimension_numbers = #tpu.dot_dimension_numbers<[1], [0], [0], [1], [0, 0, 1, 1], [], []>} : vector<32x128xf32>, vector<128x12xf32>, vector<32x12xf32> -> vector<32x12xf32>
    %c1328 = arith.constant 1328 : index
    %c0_188 = arith.constant 0 : index
    %637 = vector.load %arg3[%c1328, %c0_188] : memref<1696x128xf32, #tpu.memory_space<vmem>>, vector<1x12xf32>
    %638 = vector.broadcast %637 : vector<1x12xf32> to vector<32x12xf32>
    %639 = arith.addf %636, %638 : vector<32x12xf32>
    %cst_189 = arith.constant 0.000000e+00 : f32
    %640 = vector.broadcast %cst_189 : f32 to vector<32x12xf32>
    %641 = arith.maximumf %639, %640 : vector<32x12xf32>
    %c1336 = arith.constant 1336 : index
    %c0_190 = arith.constant 0 : index
    %642 = vector.load %arg3[%c1336, %c0_190] : memref<1696x128xf32, #tpu.memory_space<vmem>>, vector<12x12xf32>
    %cst_191 = arith.constant dense<0.000000e+00> : vector<32x12xf32>
    %643 = tpu.matmul %641, %642, %cst_191 {dimension_numbers = #tpu.dot_dimension_numbers<[1], [0], [0], [1], [0, 0, 1, 1], [], []>} : vector<32x12xf32>, vector<12x12xf32>, vector<32x12xf32> -> vector<32x12xf32>
    %c1352 = arith.constant 1352 : index
    %c0_192 = arith.constant 0 : index
    %644 = vector.load %arg3[%c1352, %c0_192] : memref<1696x128xf32, #tpu.memory_space<vmem>>, vector<1x12xf32>
    %645 = vector.broadcast %644 : vector<1x12xf32> to vector<32x12xf32>
    %646 = arith.addf %643, %645 : vector<32x12xf32>
    %cst_193 = arith.constant 0.000000e+00 : f32
    %647 = vector.broadcast %cst_193 : f32 to vector<32x12xf32>
    %648 = arith.maximumf %646, %647 : vector<32x12xf32>
    %c1360 = arith.constant 1360 : index
    %c0_194 = arith.constant 0 : index
    %649 = vector.load %arg3[%c1360, %c0_194] : memref<1696x128xf32, #tpu.memory_space<vmem>>, vector<128x12xf32>
    %cst_195 = arith.constant dense<0.000000e+00> : vector<32x12xf32>
    %650 = tpu.matmul %634, %649, %cst_195 {dimension_numbers = #tpu.dot_dimension_numbers<[1], [0], [0], [1], [0, 0, 1, 1], [], []>} : vector<32x128xf32>, vector<128x12xf32>, vector<32x12xf32> -> vector<32x12xf32>
    %c1488 = arith.constant 1488 : index
    %c0_196 = arith.constant 0 : index
    %651 = vector.load %arg3[%c1488, %c0_196] : memref<1696x128xf32, #tpu.memory_space<vmem>>, vector<1x12xf32>
    %652 = vector.broadcast %651 : vector<1x12xf32> to vector<32x12xf32>
    %653 = arith.addf %650, %652 : vector<32x12xf32>
    %654 = arith.addf %648, %653 : vector<32x12xf32>
    %cst_197 = arith.constant 0.000000e+00 : f32
    %655 = vector.broadcast %cst_197 : f32 to vector<32x12xf32>
    %656 = arith.maximumf %654, %655 : vector<32x12xf32>
    %c1496 = arith.constant 1496 : index
    %c0_198 = arith.constant 0 : index
    %657 = vector.load %arg3[%c1496, %c0_198] : memref<1696x128xf32, #tpu.memory_space<vmem>>, vector<32x32xf32>
    %cst_199 = arith.constant dense<0.000000e+00> : vector<32x12xf32>
    %658 = tpu.matmul %657, %656, %cst_199 {dimension_numbers = #tpu.dot_dimension_numbers<[1], [0], [0], [1], [0, 0, 1, 1], [], []>} : vector<32x32xf32>, vector<32x12xf32>, vector<32x12xf32> -> vector<32x12xf32>
    %c1528 = arith.constant 1528 : index
    %c0_200 = arith.constant 0 : index
    %659 = vector.load %arg3[%c1528, %c0_200] : memref<1696x128xf32, #tpu.memory_space<vmem>>, vector<32x1xf32>
    %660 = vector.broadcast %659 : vector<32x1xf32> to vector<32x12xf32>
    %661 = arith.addf %658, %660 : vector<32x12xf32>
    %cst_201 = arith.constant 0.000000e+00 : f32
    %662 = vector.broadcast %cst_201 : f32 to vector<32x12xf32>
    %663 = arith.cmpf ogt, %661, %662 : vector<32x12xf32>
    %cst_202 = arith.constant 0.00999999977 : f32
    %664 = vector.broadcast %cst_202 : f32 to vector<32x12xf32>
    %665 = arith.mulf %664, %661 : vector<32x12xf32>
    %666 = arith.select %663, %661, %665 : vector<32x12xi1>, vector<32x12xf32>
    %c1560 = arith.constant 1560 : index
    %c0_203 = arith.constant 0 : index
    %667 = vector.load %arg3[%c1560, %c0_203] : memref<1696x128xf32, #tpu.memory_space<vmem>>, vector<1x12xf32>
    %668 = vector.broadcast %667 : vector<1x12xf32> to vector<32x12xf32>
    %669 = arith.mulf %666, %668 : vector<32x12xf32>
    %c1568 = arith.constant 1568 : index
    %c0_204 = arith.constant 0 : index
    %670 = vector.load %arg3[%c1568, %c0_204] : memref<1696x128xf32, #tpu.memory_space<vmem>>, vector<1x12xf32>
    %671 = vector.broadcast %670 : vector<1x12xf32> to vector<32x12xf32>
    %672 = arith.addf %669, %671 : vector<32x12xf32>
    %c1576 = arith.constant 1576 : index
    %c0_205 = arith.constant 0 : index
    %673 = vector.load %arg3[%c1576, %c0_205] : memref<1696x128xf32, #tpu.memory_space<vmem>>, vector<32x32xf32>
    %cst_206 = arith.constant dense<0.000000e+00> : vector<32x12xf32>
    %674 = tpu.matmul %673, %672, %cst_206 {dimension_numbers = #tpu.dot_dimension_numbers<[1], [0], [0], [1], [0, 0, 1, 1], [], []>} : vector<32x32xf32>, vector<32x12xf32>, vector<32x12xf32> -> vector<32x12xf32>
    %c1608 = arith.constant 1608 : index
    %c0_207 = arith.constant 0 : index
    %675 = vector.load %arg3[%c1608, %c0_207] : memref<1696x128xf32, #tpu.memory_space<vmem>>, vector<32x1xf32>
    %676 = vector.broadcast %675 : vector<32x1xf32> to vector<32x12xf32>
    %677 = arith.addf %674, %676 : vector<32x12xf32>
    %c0_208 = arith.constant 0 : index
    %c0_209 = arith.constant 0 : index
    %678 = vector.load %arg4[%c0_208, %c0_209] : memref<12x256xf32, #tpu.memory_space<vmem>>, vector<12x256xf32>
    %cst_210 = arith.constant dense<0.000000e+00> : vector<32x256xf32>
    %679 = tpu.matmul %677, %678, %cst_210 {dimension_numbers = #tpu.dot_dimension_numbers<[1], [0], [0], [1], [0, 0, 1, 1], [], []>} : vector<32x12xf32>, vector<12x256xf32>, vector<32x256xf32> -> vector<32x256xf32>
    %680 = tpu.iota {dimensions = array<i32: 0>} : vector<32x256xi32>
    %681 = tpu.iota {dimensions = array<i32: 1>} : vector<32x256xi32>
    %c4_i32_211 = arith.constant 4 : i32
    %682 = vector.broadcast %c4_i32_211 : i32 to vector<32x256xi32>
    %683 = arith.shrsi %681, %682 : vector<32x256xi32>
    %c15_i32 = arith.constant 15 : i32
    %684 = vector.broadcast %c15_i32 : i32 to vector<32x256xi32>
    %685 = arith.andi %680, %684 : vector<32x256xi32>
    %686 = arith.cmpi eq, %683, %685 : vector<32x256xi32>
    %cst_212 = arith.constant 0.000000e+00 : f32
    %687 = vector.broadcast %cst_212 : f32 to vector<32x256xf32>
    %688 = arith.select %686, %679, %687 : vector<32x256xi1>, vector<32x256xf32>
    %689 = tpu.iota {dimensions = array<i32: 0>} : vector<256x16xi32>
    %690 = tpu.iota {dimensions = array<i32: 1>} : vector<256x16xi32>
    %c15_i32_213 = arith.constant 15 : i32
    %691 = vector.broadcast %c15_i32_213 : i32 to vector<256x16xi32>
    %692 = arith.andi %689, %691 : vector<256x16xi32>
    %693 = arith.cmpi eq, %692, %690 : vector<256x16xi32>
    %cst_214 = arith.constant 1.000000e+00 : f32
    %cst_215 = arith.constant 0.000000e+00 : f32
    %694 = vector.broadcast %cst_214 : f32 to vector<256x16xf32>
    %695 = vector.broadcast %cst_215 : f32 to vector<256x16xf32>
    %696 = arith.select %693, %694, %695 : vector<256x16xi1>, vector<256x16xf32>
    %cst_216 = arith.constant dense<0.000000e+00> : vector<32x16xf32>
    %697 = tpu.matmul %688, %696, %cst_216 {dimension_numbers = #tpu.dot_dimension_numbers<[1], [0], [0], [1], [0, 0, 1, 1], [], []>} : vector<32x256xf32>, vector<256x16xf32>, vector<32x16xf32> -> vector<32x16xf32>
    %698 = tpu.iota {dimensions = array<i32: 0>} : vector<2x32xi32>
    %699 = tpu.iota {dimensions = array<i32: 1>} : vector<2x32xi32>
    %c4_i32_217 = arith.constant 4 : i32
    %700 = vector.broadcast %c4_i32_217 : i32 to vector<2x32xi32>
    %701 = arith.shrsi %699, %700 : vector<2x32xi32>
    %702 = arith.cmpi eq, %701, %698 : vector<2x32xi32>
    %cst_218 = arith.constant 1.000000e+00 : f32
    %cst_219 = arith.constant 0.000000e+00 : f32
    %703 = vector.broadcast %cst_218 : f32 to vector<2x32xf32>
    %704 = vector.broadcast %cst_219 : f32 to vector<2x32xf32>
    %705 = arith.select %702, %703, %704 : vector<2x32xi1>, vector<2x32xf32>
    %cst_220 = arith.constant dense<0.000000e+00> : vector<2x16xf32>
    %706 = tpu.matmul %705, %697, %cst_220 {dimension_numbers = #tpu.dot_dimension_numbers<[1], [0], [0], [1], [0, 0, 1, 1], [], []>} : vector<2x32xf32>, vector<32x16xf32>, vector<2x16xf32> -> vector<2x16xf32>
    %c1640 = arith.constant 1640 : index
    %c0_221 = arith.constant 0 : index
    %707 = vector.load %arg3[%c1640, %c0_221] : memref<1696x128xf32, #tpu.memory_space<vmem>>, vector<1x16xf32>
    %708 = vector.broadcast %707 : vector<1x16xf32> to vector<2x16xf32>
    %709 = arith.addf %706, %708 : vector<2x16xf32>
    %cst_222 = arith.constant 0.000000e+00 : f32
    %710 = vector.broadcast %cst_222 : f32 to vector<2x16xf32>
    %711 = arith.cmpf ogt, %709, %710 : vector<2x16xf32>
    %cst_223 = arith.constant 0.00999999977 : f32
    %712 = vector.broadcast %cst_223 : f32 to vector<2x16xf32>
    %713 = arith.mulf %712, %709 : vector<2x16xf32>
    %714 = arith.select %711, %709, %713 : vector<2x16xi1>, vector<2x16xf32>
    %c1648 = arith.constant 1648 : index
    %c0_224 = arith.constant 0 : index
    %715 = vector.load %arg3[%c1648, %c0_224] : memref<1696x128xf32, #tpu.memory_space<vmem>>, vector<16x16xf32>
    %cst_225 = arith.constant dense<0.000000e+00> : vector<2x16xf32>
    %716 = tpu.matmul %714, %715, %cst_225 {dimension_numbers = #tpu.dot_dimension_numbers<[1], [0], [0], [1], [0, 0, 1, 1], [], []>} : vector<2x16xf32>, vector<16x16xf32>, vector<2x16xf32> -> vector<2x16xf32>
    %c1664 = arith.constant 1664 : index
    %c0_226 = arith.constant 0 : index
    %717 = vector.load %arg3[%c1664, %c0_226] : memref<1696x128xf32, #tpu.memory_space<vmem>>, vector<1x16xf32>
    %718 = vector.broadcast %717 : vector<1x16xf32> to vector<2x16xf32>
    %719 = arith.addf %716, %718 : vector<2x16xf32>
    %cst_227 = arith.constant 0.000000e+00 : f32
    %720 = vector.broadcast %cst_227 : f32 to vector<2x16xf32>
    %721 = arith.cmpf ogt, %719, %720 : vector<2x16xf32>
    %cst_228 = arith.constant 0.00999999977 : f32
    %722 = vector.broadcast %cst_228 : f32 to vector<2x16xf32>
    %723 = arith.mulf %722, %719 : vector<2x16xf32>
    %724 = arith.select %721, %719, %723 : vector<2x16xi1>, vector<2x16xf32>
    %c1672 = arith.constant 1672 : index
    %c0_229 = arith.constant 0 : index
    %725 = vector.load %arg3[%c1672, %c0_229] : memref<1696x128xf32, #tpu.memory_space<vmem>>, vector<16x128xf32>
    %cst_230 = arith.constant dense<0.000000e+00> : vector<2x128xf32>
    %726 = tpu.matmul %724, %725, %cst_230 {dimension_numbers = #tpu.dot_dimension_numbers<[1], [0], [0], [1], [0, 0, 1, 1], [], []>} : vector<2x16xf32>, vector<16x128xf32>, vector<2x128xf32> -> vector<2x128xf32>
    %c1688 = arith.constant 1688 : index
    %c0_231 = arith.constant 0 : index
    %727 = vector.load %arg3[%c1688, %c0_231] : memref<1696x128xf32, #tpu.memory_space<vmem>>, vector<1x128xf32>
    %728 = vector.broadcast %727 : vector<1x128xf32> to vector<2x128xf32>
    %729 = arith.addf %726, %728 : vector<2x128xf32>
    %c0_232 = arith.constant 0 : index
    %c0_233 = arith.constant 0 : index
    %730 = vector.load %arg5[%c0_232, %c0_233] : memref<2x128xf32, #tpu.memory_space<vmem>>, vector<2x128xf32>
    tpu.vector_store %arg5[%c0_232, %c0_233], %729 {strides = array<i32>} : memref<2x128xf32, #tpu.memory_space<vmem>>, vector<2x128xf32>,
    return
  }
}

</mosaic_0001>

<bundles_post_ra>
// kernel: ecg_gcn_tcn_forward.1
= control target key start
LH: loop header
LB: loop body
LE: loop exit
PB: predicated region body
PF: predicated region fallthrough
CT: control target
= control target key end

     0   :  { %10 = vsyncpa [#allocation4], 0  ;;  %s9281_s0 = inlined_call_operand.vmem [shape: f32[24,52], index: 0, kind: input, shape index: {}]   ;;  %s9282_s1 = inlined_call_operand.vmem [shape: f32[32,12], index: 1, kind: input, shape index: {}]   ;;  %s9283_s2 = inlined_call_operand.vmem [shape: f32[240,156], index: 2, kind: input, shape index: {}]   ;;  %s9284_s3 = inlined_call_operand.hbm [shape: f32[1696,128], index: 3, kind: input, shape index: {}]   ;;  %s9285_s4 = inlined_call_operand.vmem [shape: f32[12,256], index: 4, kind: input, shape index: {}]   ;;  %s9286_s5 = inlined_call_operand.hbm [shape: f32[2,128], index: 5, kind: output, shape index: {}]  }
   0x1   :  { %11 = vsyncpa [#allocation5], 0  ;;  %s7877_s18 = smov [#allocation3]   ;;  %s7829_s22 = scalar_lea.hbm %s9284_s3, 27136 }
   0x2   :  { %s23_s19 = sshll.u32 %s7877_s18, 4  ;;  %p7830_p0 = scmp.ne.s32.totalorder %s9284_s3, %s7829_s22  ;;  %s24_s19 = int_to_ptr.vmem [resolvable:$true] %s23_s19 }
   0x3   :  { %p7833_p1 = scmp.lt.u32.totalorder %s7829_s22, %s9284_s3 }
   0x5   :  { %p7835_p2 = pnand %p7833_p1, %p7830_p0 }
   0x7   :  { %7838 = shalt.err (!%p7835_p2)
}
   0x8   :  { %s7839_s27 = scalar_lea.vmem %s24_s19, 27136  ;;  %p7844_p4 = scmp.lt.s32.totalorder %s24_s19, %s24_s19 }
   0x9   :  { %p7840_p3 = scmp.ne.s32.totalorder %s24_s19, %s7839_s27  ;;  %p7845_p5 = scmp.lt.s32.totalorder %s7839_s27, %s7839_s27 }
   0xb   :  { %p7846_p6 = por %p7845_p5, %p7844_p4 }
   0xd   :  { %p7847_p7 = pnand %p7846_p6, %p7840_p3 }
   0xf   :  { %7850 = shalt.err (!%p7847_p7)
}
  0x10   :  { %s7878_s28 = smov 128   ;;  %s7879_s29 = smov 8  }
  0x11   :  { %29 = dma.hbm_to_vmem [thread:$0]  %s9284_s3, 27136, %s24_s19, [#allocation4], %s7878_s28, %s7878_s28, %s7879_s29  }
  0x12   :  { %7873 = dma.done.wait [#allocation4], 27136  }
  0x13   :  { %7874 = vsyncadd [#allocation4], 4294940160  ;;  %v7880_v0 = vmov 0.0   ;;  %v55_v1 = vld [vmem:[%s9283_s2 + $0x8] sm:$0xff]  ;;  %v57_v2 = vld [vmem:[%s9283_s2 + $0x18] sm:$0xff]  ;;  %vm91_vm0 = vcmask 1043456   ;;  %v71_v44 = vlaneseq }
  0x14   :  { %162 = vmatprep.mubr.f32.mxu0 %v7880_v0  ;;  %576 = vmatprep.mubr.f32.mxu1 %v7880_v0  ;;  %v54_v3 = vld [vmem:[%s9283_s2] sm:$0xff]  ;;  %v6992_v4 = vpack.c.bf16 %v57_v2, %v55_v1  ;;  %v56_v5 = vld [vmem:[%s9283_s2 + $0x10] sm:$0xff]  ;;  %v59_v6 = vld [vmem:[%s9283_s2 + $0x28] sm:$0xff]  ;;  %vm81_vm1 = vcmask 424960   ;;  %s7881_s19 = smov 24   ;;  %vm285_vm2 = vcmask 195584  }
  0x15   :  { %v61_v7 = vld [vmem:[%s9283_s2 + $0x38] sm:$0xff]  ;;  %v6994_v8 = vpack.c.bf16 %v56_v5, %v54_v3  ;;  %v58_v10 = vld [vmem:[%s9283_s2 + $0x20] sm:$0xff]  ;;  %v60_v11 = vld [vmem:[%s9283_s2 + $0x30] sm:$0xff]  ;;  %v8088_v45 = vshrl.u32 %v71_v44, 7  ;;  %s7882_s20 = smov 104   ;;  %s7883_s21 = smov 76  }
  0x16   :  { %v6996_v9 = vpack.c.bf16 %v61_v7, %v59_v6  ;;  %v63_v12 = vld [vmem:[%s9283_s2 + $0x48] sm:$0xff]  ;;  %6993 = vmatprep.subr.bf16.mxu0 %v6992_v4  ;;  %v65_v13 = vld [vmem:[%s9283_s2 + $0x58] sm:$0xff]  ;;  %v6998_v14 = vpack.c.bf16 %v60_v11, %v58_v10  ;;  %v62_v15 = vld [vmem:[%s9283_s2 + $0x40] sm:$0xff]  ;;  %vm304_vm3 = vcmask 621568   ;;  %vm347_vm4 = vcmask 417792   ;;  %s7885_s11 = smov 116  }
  0x17   :  { %6995 = vmatpush1.bf16.msra.mxu0 %v6994_v8  ;;  %v64_v16 = vld [vmem:[%s9283_s2 + $0x50] sm:$0xff]  ;;  %v7000_v17 = vpack.c.bf16 %v65_v13, %v63_v12  ;;  %v36_v18 = vld [vmem:[%s9283_s2 + $0x78] sm:$0xff]  ;;  %v38_v19 = vld [vmem:[%s9283_s2 + $0x88] sm:$0xff]  ;;  %v77_v46 = vsub.s32 1, %v8088_v45  ;;  %v8095_v49 = vsub.s32 0, %v8088_v45  ;;  %vm2172_vm5 = vcmask 97280  }
  0x18   :  { %6997 = vmatprep.subr.bf16.mxu0 %v6996_v9  ;;  %v35_v20 = vld [vmem:[%s9283_s2 + $0x70] sm:$0xff]  ;;  %v7981_v21 = vpack.c.bf16 %v38_v19, %v36_v18  ;;  %v37_v22 = vld [vmem:[%s9283_s2 + $0x80] sm:$0xff]  ;;  %v40_v23 = vld [vmem:[%s9283_s2 + $0x98] sm:$0xff]  ;;  %v7002_v26 = vpack.c.bf16 %v64_v16, %v62_v15  ;;  %vm7886_vm7 = vmmov 1   ;;  %vm2257_vm9 = vcmask 93184  }
  0x19   :  { %v42_v24 = vld [vmem:[%s9283_s2 + $0xa8] sm:$0xff]  ;;  %v7992_v25 = vpack.c.bf16 %v37_v22, %v35_v20  ;;  %v39_v28 = vld [vmem:[%s9283_s2 + $0x90] sm:$0xff]  ;;  %v41_v29 = vld [vmem:[%s9283_s2 + $0xa0] sm:$0xff]  ;;  %vm3077_vm13 = vcmask 1040384  }
  0x1a   :  { %v7994_v27 = vpack.c.bf16 %v42_v24, %v40_v23  ;;  %7029 = vmatprep.subr.bf16.mxu1 %v7981_v21  ;;  %v44_v30 = vld [vmem:[%s9283_s2 + $0xb8] sm:$0xff]  ;;  %v46_v31 = vld [vmem:[%s9283_s2 + $0xc8] sm:$0xff]  ;;  %v8014_v33 = vpack.c.bf16 %v41_v29, %v39_v28  ;;  %v66_v35 = vld [vmem:[%s9283_s2 + $0x60] sm:$0xf] }
  0x1b   :  { %6999 = vmatpush1.bf16.msra.mxu0 %v6998_v14  ;;  %7031 = vmatpush1.bf16.msra.mxu1 %v7992_v25  ;;  %v67_v32 = vld [vmem:[%s9283_s2 + $0x68] sm:$0xf]  ;;  %v8016_v34 = vpack.c.bf16 %v46_v31, %v44_v30  ;;  %v51_v36 = vld [vmem:[%s9281_s0] sm:$0xff]  ;;  %v43_v37 = vld [vmem:[%s9283_s2 + $0xb0] sm:$0xff] }
  0x1c   :  { %7001 = vmatprep.subr.bf16.mxu0 %v7000_v17  ;;  %7033 = vmatprep.subr.bf16.mxu1 %v7994_v27  ;;  %v45_v38 = vld [vmem:[%s9283_s2 + $0xc0] sm:$0xff]  ;;  %v52_v40 = vld [vmem:[%s9281_s0 + $0x8] sm:$0xff]  ;;  %v8047_v41 = vld [vmem:[%s9283_s2 + $0xd8] sm:$0xf] }
  0x1d   :  { %v8036_v39 = vpack.c.bf16 %v45_v38, %v43_v37  ;;  %v53_v42 = vld [vmem:[%s9281_s0 + $0x10] sm:$0xff]  ;;  %v5848_v47 = vld [vmem:[%s9283_s2 + $0xe0] ss:$8 sm:$0x3]  ;;  %vm8581_vm6 = vmpackc.low %vm2172_vm5, %vm2172_vm5 }
  0x1e   :  { %v8061_v43 = vld [vmem:[%s9283_s2 + $0xd0] sm:$0xf]  ;;  %v78_v48 = vrot.slane %v5848_v47, %v77_v46  ;;  %v74_v53 = vrot.slane %v5848_v47, %v8095_v49  ;;  %vm8663_vm8 = vmpackc.low %vm91_vm0, %vm7886_vm7  ;;  %vm3230_vm7 = vcmask 523264  }
  0x1f   :  { %7003 = vmatpush1.bf16.msra.mxu0 %v7002_v26  ;;  %7035 = vmatpush1.bf16.msra.mxu1 %v8014_v33  ;;  %v5847_v58 = vld [vmem:[%s9283_s2 + $0xf0] ss:$8 sm:$0x3] }
  0x20   :  { %5849 = vmatprep.subr.msk.mxu0 %vm91_vm0, %v67_v32  ;;  %7037 = vmatprep.subr.bf16.mxu1 %v8016_v34  ;;  %v8112_v63 = vrot.slane %v5847_v58, %v8095_v49  ;;  %v8114_v2 = vrot.slane %v5847_v58, %v77_v46 }
  0x23   :  { %5850 = vmatpush1.msk.msra.mxu0 %vm91_vm0, %v66_v35  ;;  %7039 = vmatpush1.bf16.msra.mxu1 %v8036_v39 }
  0x24   :  { %5851 = vmatmul.mubr.msk.f32.vlgmr.msra.gmra.mrb[0].mxu0 %vm81_vm1, %v51_v36  ;;  %7005 = vmatprep.subr.bf16.mxu0 %v7981_v21 }
  0x25   :  { %7007 = vmatpush1.bf16.msra.mxu0 %v7992_v25  ;;  %168 = vmatprep.mubr.f32.mxu0 %v7880_v0 }
  0x26   :  { %7009 = vmatprep.subr.bf16.mxu0 %v7994_v27  ;;  %5861 = vmatprep.subr.msk.mxu1 %vm91_vm0, %v8047_v41 }
  0x27   :  { %5862 = vmatpush1.msk.msra.mxu1 %vm91_vm0, %v8061_v43 }
  0x28   :  { %5852 = vmatmul.mubr.msk.f32.gmra.mrb[2].mxu0 %vm81_vm1, %v52_v40  ;;  %7053 = vmatprep.subr.bf16.mxu1 %v7981_v21 }
  0x29   :  { %7011 = vmatpush1.bf16.msra.mxu0 %v8014_v33  ;;  %174 = vmatprep.mubr.f32.mxu0 %v7880_v0 }
  0x2a   :  { %7013 = vmatprep.subr.bf16.mxu0 %v8016_v34 }
  0x2c   :  { %5853 = vmatmul.mubr.msk.f32.gmra.mrb[4].mxu0 %vm81_vm1, %v53_v42 }
  0x2d   :  { %7015 = vmatpush1.bf16.msra.mxu0 %v8036_v39  ;;  %265 = vmatprep.mubr.f32.mxu0 %v7880_v0 }
  0x2e   :  { %5854 = vmatprep.subr.msk.mxu0 %vm91_vm0, %v8047_v41 }
  0x31   :  { %5855 = vmatpush1.msk.msra.mxu0 %vm91_vm0, %v8061_v43 }
  0x32   :  { %266 = vmatmul.mubr.f32.vlgmr.msra.gmra.mrb[6].mxu0 %v7880_v0  ;;  %7017 = vmatprep.subr.bf16.mxu0 %v7981_v21 }
  0x33   :  { %7019 = vmatpush1.bf16.msra.mxu0 %v7992_v25  ;;  %418 = vmatprep.mubr.f32.mxu0 %v7880_v0 }
  0x34   :  { %7021 = vmatprep.subr.bf16.mxu0 %v7994_v27 }
  0x37   :  { %7023 = vmatpush1.bf16.msra.mxu0 %v8014_v33 }
  0x38   :  { %7025 = vmatprep.subr.bf16.mxu0 %v8016_v34 }
  0x3b   :  { %7027 = vmatpush1.bf16.msra.mxu0 %v8036_v39 }
  0x3c   :  { %5857 = vmatprep.subr.msk.mxu0 %vm91_vm0, %v8047_v41 }
  0x3f   :  { %5858 = vmatpush1.msk.msra.mxu0 %vm91_vm0, %v8061_v43 }
  0x40   :  { %7041 = vmatprep.subr.bf16.mxu0 %v7981_v21 }
  0xf7   :  { %v164_v50 = vpop.f32.mrb[0].mxu0 }
  0xf8   :  { %v166_v51 = vpop.f32.mrb[1].mxu0  ;;  %v8120_v6 = vadd.f32 %v164_v50, %v74_v53 }
  0xf9   :  { %v8097_v52 = vadd.f32 %v166_v51, %v78_v48 }
  0xfb   :  { %v170_v54 = vpop.f32.mrb[2].mxu0 }
  0xfc   :  { %v8100_v55 = vadd.f32 %v170_v54, %v74_v53  ;;  %v172_v56 = vpop.f32.mrb[3].mxu0 }
  0xfd   :  { %v8102_v57 = vadd.f32 %v172_v56, %v78_v48 }
  0xff   :  { %v176_v59 = vpop.f32.mrb[4].mxu0 }
 0x100   :  { %v8107_v60 = vadd.f32 %v176_v59, %v74_v53  ;;  %v178_v61 = vpop.f32.mrb[5].mxu0 }
 0x101   :  { %v8109_v62 = vadd.f32 %v178_v61, %v78_v48 }
 0x105   :  { %v267_v1 = vpop.f32.mrb[6].mxu0 }
 0x106   :  { %v268_v3 = vadd.f32 %v267_v1, %v8112_v63  ;;  %v269_v4 = vpop.f32.mrb[7].mxu0 }
 0x107   :  { %v270_v5 = vadd.f32 %v269_v4, %v8114_v2 }
 0x108   :  { %281 = vrot.lane.b32.xlu0 %v268_v3, %s7881_s19  ;;  %v272_v7 = vadd.f32 %v268_v3, %v8120_v6 }
 0x10a   :  { %v5856_v8 = vmul.f32 -1.442695, %v272_v7 }
 0x10c   :  { %283 = vrot.lane.b32.xlu0 %v270_v5, %s7881_s19  ;;  %7709 = vpow2.f32 %v5856_v8 }
 0x116   :  { %v7710_v9 = vpop.eup %7709 }
 0x117   :  { %v276_v10 = vadd.f32 1.0, %v7710_v9 }
 0x119   :  { %7711 = vrcp.f32 %v276_v10 }
 0x123   :  { %v7712_v13 = vpop.eup %7711 }
 0x124   :  { %v297_v24 = vsub.f32 1.0, %v7712_v13  ;;  %v308_v29 = vmul.f32 0.0, %v7712_v13 }
 0x17a   :  { %v282_v11 = vpop.permute.xlu0 %281 }
 0x17e   :  { %v284_v12 = vpop.permute.xlu0 %283 }
 0x17f   :  { %v286_v14 = vsel %vm285_vm2, %v282_v11, %v284_v12 }
 0x180   :  { %v288_v15 = vmul.f32 %v7712_v13, %v286_v14 }
 0x182   :  { %290 = vrot.lane.b32.xlu1 %v288_v15, %s7882_s20 }
 0x1f4   :  { %v291_v16 = vpop.permute.xlu1 %290 }
 0x1f5   :  { %v293_v17 = vadd.f32 %v291_v16, %v8120_v6  ;;  %v294_v18 = vadd.f32 %v291_v16, %v8097_v52 }
 0x1f7   :  { %7713 = vtanh.f32 %v293_v17 }
 0x1f8   :  { %7715 = vtanh.f32 %v294_v18 }
 0x201   :  { %v7714_v19 = vpop.eup %7713 }
 0x202   :  { %v7716_v20 = vpop.eup %7715  ;;  %300 = vrot.lane.b32.xlu1 %v7714_v19, %s7883_s21 }
 0x203   :  { %302 = vrot.lane.b32.xlu0 %v7716_v20, %s7883_s21 }
 0x274   :  { %v301_v22 = vpop.permute.xlu1 %300 }
 0x275   :  { %v303_v23 = vpop.permute.xlu0 %302 }
 0x276   :  { %v305_v26 = vsel %vm304_vm3, %v301_v22, %v303_v23 }
 0x277   :  { %v307_v28 = vmul.f32 %v305_v26, %v297_v24 }
 0x279   :  { %v8130_v30 = vadd.f32 %v308_v29, %v307_v28 }
 0x27b   :  { %350 = vrot.lane.b32.xlu1 %v8130_v30, %s7883_s21  ;;  %v462_v5 = vrot.slane %v8130_v30, 6 }
 0x2ed   :  { %v351_v31 = vpop.permute.xlu1 %350 }
 0x2ee   :  { %5859 = vmatmul.mubr.msk.f32.vlgmr.msra.gmra.mrb[8].mxu0 %vm81_vm1, %v351_v31 }
 0x2ef   :  { %7043 = vmatpush1.bf16.msra.mxu0 %v7992_v25  ;;  %733 = vmatprep.mubr.f32.mxu0 %v7880_v0 }
 0x2f0   :  { %7045 = vmatprep.subr.bf16.mxu0 %v7994_v27 }
 0x2f3   :  { %7047 = vmatpush1.bf16.msra.mxu0 %v8014_v33 }
 0x2f4   :  { %7049 = vmatprep.subr.bf16.mxu0 %v8016_v34 }
 0x2f7   :  { %7051 = vmatpush1.bf16.msra.mxu0 %v8036_v39 }
 0x2f8   :  { %5865 = vmatprep.subr.msk.mxu0 %vm91_vm0, %v8047_v41 }
 0x2fb   :  { %5866 = vmatpush1.msk.msra.mxu0 %vm91_vm0, %v8061_v43 }
 0x2fc   :  { %7065 = vmatprep.subr.bf16.mxu0 %v7981_v21 }
 0x3c1   :  { %v420_v32 = vpop.f32.mrb[8].mxu0 }
 0x3c2   :  { %v421_v35 = vadd.f32 %v420_v32, %v8112_v63  ;;  %v422_v36 = vpop.f32.mrb[9].mxu0 }
 0x3c3   :  { %v423_v37 = vadd.f32 %v422_v36, %v8114_v2 }
 0x3c4   :  { %v426_v38 = vrot.slane %v421_v35, 6 }
 0x3c5   :  { %v436_v40 = vrot.slane %v423_v37, 6 }
 0x3c6   :  { %437 = vrot.lane.b32.xlu0 %v426_v38, %s7881_s19  ;;  %v428_v42 = vadd.f32 %v426_v38, %v8120_v6 }
 0x3c7   :  { %439 = vrot.lane.b32.xlu1 %v436_v40, %s7881_s19 }
 0x3c8   :  { %v5860_v46 = vmul.f32 -1.442695, %v428_v42 }
 0x3ca   :  { %7717 = vpow2.f32 %v5860_v46 }
 0x3d4   :  { %v7718_v47 = vpop.eup %7717 }
 0x3d5   :  { %v432_v48 = vadd.f32 1.0, %v7718_v47 }
 0x3d7   :  { %7719 = vrcp.f32 %v432_v48 }
 0x3e1   :  { %v7720_v53 = vpop.eup %7719 }
 0x3e2   :  { %v452_v8 = vsub.f32 1.0, %v7720_v53  ;;  %v464_v11 = vmul.f32 %v7720_v53, %v462_v5 }
 0x438   :  { %v438_v50 = vpop.permute.xlu0 %437 }
 0x439   :  { %v440_v51 = vpop.permute.xlu1 %439 }
 0x43a   :  { %v441_v54 = vsel %vm285_vm2, %v438_v50, %v440_v51 }
 0x43b   :  { %v443_v56 = vmul.f32 %v7720_v53, %v441_v54 }
 0x43d   :  { %445 = vrot.lane.b32.xlu0 %v443_v56, %s7882_s20 }
 0x4af   :  { %v446_v58 = vpop.permute.xlu0 %445 }
 0x4b0   :  { %v448_v59 = vadd.f32 %v446_v58, %v8120_v6  ;;  %v449_v61 = vadd.f32 %v446_v58, %v8097_v52 }
 0x4b2   :  { %7721 = vtanh.f32 %v448_v59 }
 0x4b3   :  { %7723 = vtanh.f32 %v449_v61 }
 0x4bc   :  { %v7722_v1 = vpop.eup %7721 }
 0x4bd   :  { %v7724_v3 = vpop.eup %7723  ;;  %455 = vrot.lane.b32.xlu1 %v7722_v1, %s7883_s21 }
 0x4be   :  { %457 = vrot.lane.b32.xlu0 %v7724_v3, %s7883_s21 }
 0x52f   :  { %v456_v4 = vpop.permute.xlu1 %455 }
 0x530   :  { %v458_v7 = vpop.permute.xlu0 %457 }
 0x531   :  { %v459_v9 = vsel %vm304_vm3, %v456_v4, %v458_v7 }
 0x532   :  { %v461_v10 = vmul.f32 %v459_v9, %v452_v8 }
 0x534   :  { %v8159_v12 = vadd.f32 %v464_v11, %v461_v10 }
 0x536   :  { %v507_v13 = vrot.slane %v8159_v12, 2  ;;  %v620_v50 = vrot.slane %v8159_v12, 6 }
 0x538   :  { %508 = vrot.lane.b32.xlu1 %v507_v13, %s7883_s21 }
 0x5aa   :  { %v509_v14 = vpop.permute.xlu1 %508 }
 0x5ab   :  { %5863 = vmatmul.mubr.msk.f32.vlgmr.msra.gmra.mrb[0].mxu1 %vm81_vm1, %v509_v14 }
 0x5ac   :  { %7055 = vmatpush1.bf16.msra.mxu1 %v7992_v25  ;;  %892 = vmatprep.mubr.f32.mxu1 %v7880_v0 }
 0x5ad   :  { %7057 = vmatprep.subr.bf16.mxu1 %v7994_v27 }
 0x5b0   :  { %7059 = vmatpush1.bf16.msra.mxu1 %v8014_v33 }
 0x5b1   :  { %7061 = vmatprep.subr.bf16.mxu1 %v8016_v34 }
 0x5b4   :  { %7063 = vmatpush1.bf16.msra.mxu1 %v8036_v39 }
 0x5b5   :  { %5869 = vmatprep.subr.msk.mxu1 %vm91_vm0, %v8047_v41 }
 0x5b8   :  { %5870 = vmatpush1.msk.msra.mxu1 %vm91_vm0, %v8061_v43 }
 0x5b9   :  { %7077 = vmatprep.subr.bf16.mxu1 %v7981_v21 }
 0x67e   :  { %v578_v15 = vpop.f32.mrb[0].mxu1 }
 0x67f   :  { %v579_v16 = vadd.f32 %v578_v15, %v8112_v63  ;;  %v580_v17 = vpop.f32.mrb[1].mxu1 }
 0x680   :  { %v581_v18 = vadd.f32 %v580_v17, %v8114_v2 }
 0x681   :  { %v584_v19 = vrot.slane %v579_v16, 4 }
 0x682   :  { %v594_v20 = vrot.slane %v581_v18, 4 }
 0x683   :  { %595 = vrot.lane.b32.xlu0 %v584_v19, %s7881_s19  ;;  %v586_v22 = vadd.f32 %v584_v19, %v8120_v6 }
 0x684   :  { %597 = vrot.lane.b32.xlu1 %v594_v20, %s7881_s19 }
 0x685   :  { %v5864_v23 = vmul.f32 -1.442695, %v586_v22 }
 0x687   :  { %7725 = vpow2.f32 %v5864_v23 }
 0x691   :  { %v7726_v24 = vpop.eup %7725 }
 0x692   :  { %v590_v26 = vadd.f32 1.0, %v7726_v24 }
 0x694   :  { %7727 = vrcp.f32 %v590_v26 }
 0x69e   :  { %v7728_v31 = vpop.eup %7727 }
 0x69f   :  { %v610_v48 = vsub.f32 1.0, %v7728_v31  ;;  %v622_v53 = vmul.f32 %v7728_v31, %v620_v50 }
 0x6f5   :  { %v596_v28 = vpop.permute.xlu0 %595 }
 0x6f6   :  { %v598_v29 = vpop.permute.xlu1 %597 }
 0x6f7   :  { %v599_v32 = vsel %vm285_vm2, %v596_v28, %v598_v29 }
 0x6f8   :  { %v601_v35 = vmul.f32 %v7728_v31, %v599_v32 }
 0x6fa   :  { %603 = vrot.lane.b32.xlu0 %v601_v35, %s7882_s20 }
 0x76c   :  { %v604_v36 = vpop.permute.xlu0 %603 }
 0x76d   :  { %v606_v37 = vadd.f32 %v604_v36, %v8120_v6  ;;  %v607_v38 = vadd.f32 %v604_v36, %v8097_v52 }
 0x76f   :  { %7729 = vtanh.f32 %v606_v37 }
 0x770   :  { %7731 = vtanh.f32 %v607_v38 }
 0x779   :  { %v7730_v40 = vpop.eup %7729 }
 0x77a   :  { %v7732_v42 = vpop.eup %7731  ;;  %613 = vrot.lane.b32.xlu1 %v7730_v40, %s7883_s21 }
 0x77b   :  { %615 = vrot.lane.b32.xlu0 %v7732_v42, %s7883_s21 }
 0x7ec   :  { %v614_v46 = vpop.permute.xlu1 %613 }
 0x7ed   :  { %v616_v47 = vpop.permute.xlu0 %615 }
 0x7ee   :  { %v617_v51 = vsel %vm304_vm3, %v614_v46, %v616_v47 }
 0x7ef   :  { %v619_v54 = vmul.f32 %v617_v51, %v610_v48 }
 0x7f1   :  { %v8188_v56 = vadd.f32 %v622_v53, %v619_v54 }
 0x7f3   :  { %v664_v58 = vrot.slane %v8188_v56, 4  ;;  %v777_v29 = vrot.slane %v8188_v56, 6 }
 0x7f5   :  { %665 = vrot.lane.b32.xlu1 %v664_v58, %s7883_s21 }
 0x867   :  { %v666_v59 = vpop.permute.xlu1 %665 }
 0x868   :  { %5867 = vmatmul.mubr.msk.f32.vlgmr.msra.gmra.mrb[10].mxu0 %vm81_vm1, %v666_v59 }
 0x869   :  { %7067 = vmatpush1.bf16.msra.mxu0 %v7992_v25  ;;  %1043 = vmatprep.mubr.f32.mxu0 %v7880_v0 }
 0x86a   :  { %7069 = vmatprep.subr.bf16.mxu0 %v7994_v27 }
 0x86d   :  { %7071 = vmatpush1.bf16.msra.mxu0 %v8014_v33 }
 0x86e   :  { %7073 = vmatprep.subr.bf16.mxu0 %v8016_v34 }
 0x871   :  { %7075 = vmatpush1.bf16.msra.mxu0 %v8036_v39 }
 0x872   :  { %5873 = vmatprep.subr.msk.mxu0 %vm91_vm0, %v8047_v41 }
 0x875   :  { %5874 = vmatpush1.msk.msra.mxu0 %vm91_vm0, %v8061_v43 }
 0x876   :  { %7089 = vmatprep.subr.bf16.mxu0 %v7981_v21 }
 0x93b   :  { %v735_v61 = vpop.f32.mrb[10].mxu0 }
 0x93c   :  { %v736_v1 = vadd.f32 %v735_v61, %v8112_v63  ;;  %v737_v3 = vpop.f32.mrb[11].mxu0 }
 0x93d   :  { %v738_v4 = vadd.f32 %v737_v3, %v8114_v2 }
 0x93e   :  { %v741_v5 = vrot.slane %v736_v1, 2 }
 0x93f   :  { %v751_v7 = vrot.slane %v738_v4, 2 }
 0x940   :  { %752 = vrot.lane.b32.xlu0 %v741_v5, %s7881_s19  ;;  %v743_v8 = vadd.f32 %v741_v5, %v8120_v6 }
 0x941   :  { %754 = vrot.lane.b32.xlu1 %v751_v7, %s7881_s19 }
 0x942   :  { %v5868_v9 = vmul.f32 -1.442695, %v743_v8 }
 0x944   :  { %7733 = vpow2.f32 %v5868_v9 }
 0x94e   :  { %v7734_v10 = vpop.eup %7733 }
 0x94f   :  { %v747_v11 = vadd.f32 1.0, %v7734_v10 }
 0x951   :  { %7735 = vrcp.f32 %v747_v11 }
 0x95b   :  { %v7736_v15 = vpop.eup %7735 }
 0x95c   :  { %v767_v28 = vsub.f32 1.0, %v7736_v15  ;;  %v779_v32 = vmul.f32 %v7736_v15, %v777_v29 }
 0x9b2   :  { %v753_v13 = vpop.permute.xlu0 %752 }
 0x9b3   :  { %v755_v14 = vpop.permute.xlu1 %754 }
 0x9b4   :  { %v756_v16 = vsel %vm285_vm2, %v753_v13, %v755_v14 }
 0x9b5   :  { %v758_v17 = vmul.f32 %v7736_v15, %v756_v16 }
 0x9b7   :  { %760 = vrot.lane.b32.xlu0 %v758_v17, %s7882_s20 }
 0xa29   :  { %v761_v18 = vpop.permute.xlu0 %760 }
 0xa2a   :  { %v763_v19 = vadd.f32 %v761_v18, %v8120_v6  ;;  %v764_v20 = vadd.f32 %v761_v18, %v8097_v52 }
 0xa2c   :  { %7737 = vtanh.f32 %v763_v19 }
 0xa2d   :  { %7739 = vtanh.f32 %v764_v20 }
 0xa36   :  { %v7738_v22 = vpop.eup %7737 }
 0xa37   :  { %v7740_v23 = vpop.eup %7739  ;;  %770 = vrot.lane.b32.xlu1 %v7738_v22, %s7883_s21 }
 0xa38   :  { %772 = vrot.lane.b32.xlu0 %v7740_v23, %s7883_s21 }
 0xaa9   :  { %v771_v24 = vpop.permute.xlu1 %770 }
 0xaaa   :  { %v773_v26 = vpop.permute.xlu0 %772 }
 0xaab   :  { %v774_v31 = vsel %vm304_vm3, %v771_v24, %v773_v26 }
 0xaac   :  { %v776_v35 = vmul.f32 %v774_v31, %v767_v28 }
 0xaae   :  { %v8217_v6 = vadd.f32 %v779_v32, %v776_v35 }
 0xab0   :  { %v823_v52 = vrot.slane %v8217_v6, 6 }
 0xab2   :  { %824 = vrot.lane.b32.xlu1 %v823_v52, %s7883_s21 }
 0xb24   :  { %v825_v36 = vpop.permute.xlu1 %824 }
 0xb25   :  { %5871 = vmatmul.mubr.msk.f32.vlgmr.msra.gmra.mrb[2].mxu1 %vm81_vm1, %v825_v36 }
 0xb26   :  { %7079 = vmatpush1.bf16.msra.mxu1 %v7992_v25  ;;  %1201 = vmatprep.mubr.f32.mxu1 %v7880_v0 }
 0xb27   :  { %7081 = vmatprep.subr.bf16.mxu1 %v7994_v27 }
 0xb2a   :  { %7083 = vmatpush1.bf16.msra.mxu1 %v8014_v33 }
 0xb2b   :  { %7085 = vmatprep.subr.bf16.mxu1 %v8016_v34 }
 0xb2e   :  { %7087 = vmatpush1.bf16.msra.mxu1 %v8036_v39 }
 0xb2f   :  { %5877 = vmatprep.subr.msk.mxu1 %vm91_vm0, %v8047_v41 }
 0xb32   :  { %5878 = vmatpush1.msk.msra.mxu1 %vm91_vm0, %v8061_v43 }
 0xb33   :  { %7101 = vmatprep.subr.bf16.mxu1 %v7981_v21 }
 0xbf8   :  { %v894_v37 = vpop.f32.mrb[2].mxu1 }
 0xbf9   :  { %v895_v38 = vadd.f32 %v894_v37, %v8112_v63  ;;  %v896_v40 = vpop.f32.mrb[3].mxu1 }
 0xbfa   :  { %v897_v42 = vadd.f32 %v896_v40, %v8114_v2 }
 0xbfb   :  { %908 = vrot.lane.b32.xlu0 %v895_v38, %s7881_s19  ;;  %v899_v46 = vadd.f32 %v895_v38, %v8100_v55 }
 0xbfc   :  { %910 = vrot.lane.b32.xlu1 %v897_v42, %s7881_s19 }
 0xbfd   :  { %v5872_v47 = vmul.f32 -1.442695, %v899_v46 }
 0xbff   :  { %7741 = vpow2.f32 %v5872_v47 }
 0xc09   :  { %v7742_v48 = vpop.eup %7741 }
 0xc0a   :  { %v903_v50 = vadd.f32 1.0, %v7742_v48 }
 0xc0c   :  { %7743 = vrcp.f32 %v903_v50 }
 0xc16   :  { %v7744_v54 = vpop.eup %7743 }
 0xc17   :  { %v923_v9 = vsub.f32 1.0, %v7744_v54  ;;  %v934_v13 = vmul.f32 %v7744_v54, %v823_v52 }
 0xc6d   :  { %v909_v51 = vpop.permute.xlu0 %908 }
 0xc6e   :  { %v911_v53 = vpop.permute.xlu1 %910 }
 0xc6f   :  { %v912_v58 = vsel %vm285_vm2, %v909_v51, %v911_v53 }
 0xc70   :  { %v914_v59 = vmul.f32 %v7744_v54, %v912_v58 }
 0xc72   :  { %916 = vrot.lane.b32.xlu0 %v914_v59, %s7882_s20 }
 0xce4   :  { %v917_v61 = vpop.permute.xlu0 %916 }
 0xce5   :  { %v919_v1 = vadd.f32 %v917_v61, %v8100_v55  ;;  %v920_v3 = vadd.f32 %v917_v61, %v8102_v57 }
 0xce7   :  { %7745 = vtanh.f32 %v919_v1 }
 0xce8   :  { %7747 = vtanh.f32 %v920_v3 }
 0xcf1   :  { %v7746_v4 = vpop.eup %7745 }
 0xcf2   :  { %v7748_v5 = vpop.eup %7747  ;;  %926 = vrot.lane.b32.xlu1 %v7746_v4, %s7883_s21 }
 0xcf3   :  { %928 = vrot.lane.b32.xlu0 %v7748_v5, %s7883_s21 }
 0xd64   :  { %v927_v7 = vpop.permute.xlu1 %926 }
 0xd65   :  { %v929_v8 = vpop.permute.xlu0 %928 }
 0xd66   :  { %v930_v10 = vsel %vm304_vm3, %v927_v7, %v929_v8 }
 0xd67   :  { %v932_v11 = vmul.f32 %v930_v10, %v923_v9 }
 0xd69   :  { %v8245_v14 = vadd.f32 %v934_v13, %v932_v11 }
 0xd6b   :  { %975 = vrot.lane.b32.xlu1 %v8245_v14, %s7883_s21  ;;  %v1087_v47 = vrot.slane %v8245_v14, 6 }
 0xddd   :  { %v976_v15 = vpop.permute.xlu1 %975 }
 0xdde   :  { %5875 = vmatmul.mubr.msk.f32.vlgmr.msra.gmra.mrb[12].mxu0 %vm81_vm1, %v976_v15 }
 0xddf   :  { %7091 = vmatpush1.bf16.msra.mxu0 %v7992_v25  ;;  %1358 = vmatprep.mubr.f32.mxu0 %v7880_v0 }
 0xde0   :  { %7093 = vmatprep.subr.bf16.mxu0 %v7994_v27 }
 0xde3   :  { %7095 = vmatpush1.bf16.msra.mxu0 %v8014_v33 }
 0xde4   :  { %7097 = vmatprep.subr.bf16.mxu0 %v8016_v34 }
 0xde7   :  { %7099 = vmatpush1.bf16.msra.mxu0 %v8036_v39 }
 0xde8   :  { %5881 = vmatprep.subr.msk.mxu0 %vm91_vm0, %v8047_v41 }
 0xdeb   :  { %5882 = vmatpush1.msk.msra.mxu0 %vm91_vm0, %v8061_v43 }
 0xdec   :  { %7113 = vmatprep.subr.bf16.mxu0 %v7981_v21 }
 0xeb1   :  { %v1045_v16 = vpop.f32.mrb[12].mxu0 }
 0xeb2   :  { %v1046_v17 = vadd.f32 %v1045_v16, %v8112_v63  ;;  %v1047_v18 = vpop.f32.mrb[13].mxu0 }
 0xeb3   :  { %v1048_v19 = vadd.f32 %v1047_v18, %v8114_v2 }
 0xeb4   :  { %v1051_v20 = vrot.slane %v1046_v17, 6 }
 0xeb5   :  { %v1061_v22 = vrot.slane %v1048_v19, 6 }
 0xeb6   :  { %1062 = vrot.lane.b32.xlu0 %v1051_v20, %s7881_s19  ;;  %v1053_v23 = vadd.f32 %v1051_v20, %v8100_v55 }
 0xeb7   :  { %1064 = vrot.lane.b32.xlu1 %v1061_v22, %s7881_s19 }
 0xeb8   :  { %v5876_v24 = vmul.f32 -1.442695, %v1053_v23 }
 0xeba   :  { %7749 = vpow2.f32 %v5876_v24 }
 0xec4   :  { %v7750_v26 = vpop.eup %7749 }
 0xec5   :  { %v1057_v28 = vadd.f32 1.0, %v7750_v26 }
 0xec7   :  { %7751 = vrcp.f32 %v1057_v28 }
 0xed1   :  { %v7752_v32 = vpop.eup %7751 }
 0xed2   :  { %v1077_v50 = vsub.f32 1.0, %v7752_v32  ;;  %v1089_v54 = vmul.f32 %v7752_v32, %v1087_v47 }
 0xf28   :  { %v1063_v29 = vpop.permute.xlu0 %1062 }
 0xf29   :  { %v1065_v31 = vpop.permute.xlu1 %1064 }
 0xf2a   :  { %v1066_v35 = vsel %vm285_vm2, %v1063_v29, %v1065_v31 }
 0xf2b   :  { %v1068_v52 = vmul.f32 %v7752_v32, %v1066_v35 }
 0xf2d   :  { %1070 = vrot.lane.b32.xlu0 %v1068_v52, %s7882_s20 }
 0xf9f   :  { %v1071_v36 = vpop.permute.xlu0 %1070 }
 0xfa0   :  { %v1073_v37 = vadd.f32 %v1071_v36, %v8100_v55  ;;  %v1074_v38 = vadd.f32 %v1071_v36, %v8102_v57 }
 0xfa2   :  { %7753 = vtanh.f32 %v1073_v37 }
 0xfa3   :  { %7755 = vtanh.f32 %v1074_v38 }
 0xfac   :  { %v7754_v40 = vpop.eup %7753 }
 0xfad   :  { %v7756_v42 = vpop.eup %7755  ;;  %1080 = vrot.lane.b32.xlu1 %v7754_v40, %s7883_s21 }
 0xfae   :  { %1082 = vrot.lane.b32.xlu0 %v7756_v42, %s7883_s21 }
0x101f   :  { %v1081_v46 = vpop.permute.xlu1 %1080 }
0x1020   :  { %v1083_v48 = vpop.permute.xlu0 %1082 }
0x1021   :  { %v1084_v51 = vsel %vm304_vm3, %v1081_v46, %v1083_v48 }
0x1022   :  { %v1086_v53 = vmul.f32 %v1084_v51, %v1077_v50 }
0x1024   :  { %v8274_v58 = vadd.f32 %v1089_v54, %v1086_v53 }
0x1026   :  { %v1132_v59 = vrot.slane %v8274_v58, 2  ;;  %v1245_v32 = vrot.slane %v8274_v58, 6 }
0x1028   :  { %1133 = vrot.lane.b32.xlu1 %v1132_v59, %s7883_s21 }
0x109a   :  { %v1134_v61 = vpop.permute.xlu1 %1133 }
0x109b   :  { %5879 = vmatmul.mubr.msk.f32.vlgmr.msra.gmra.mrb[4].mxu1 %vm81_vm1, %v1134_v61 }
0x109c   :  { %7103 = vmatpush1.bf16.msra.mxu1 %v7992_v25  ;;  %1517 = vmatprep.mubr.f32.mxu1 %v7880_v0 }
0x109d   :  { %7105 = vmatprep.subr.bf16.mxu1 %v7994_v27 }
0x10a0   :  { %7107 = vmatpush1.bf16.msra.mxu1 %v8014_v33 }
0x10a1   :  { %7109 = vmatprep.subr.bf16.mxu1 %v8016_v34 }
0x10a4   :  { %7111 = vmatpush1.bf16.msra.mxu1 %v8036_v39 }
0x10a5   :  { %5885 = vmatprep.subr.msk.mxu1 %vm91_vm0, %v8047_v41 }
0x10a8   :  { %5886 = vmatpush1.msk.msra.mxu1 %vm91_vm0, %v8061_v43 }
0x10a9   :  { %7125 = vmatprep.subr.bf16.mxu1 %v7981_v21 }
0x116e   :  { %v1203_v1 = vpop.f32.mrb[4].mxu1 }
0x116f   :  { %v1204_v3 = vadd.f32 %v1203_v1, %v8112_v63  ;;  %v1205_v4 = vpop.f32.mrb[5].mxu1 }
0x1170   :  { %v1206_v5 = vadd.f32 %v1205_v4, %v8114_v2 }
0x1171   :  { %v1209_v7 = vrot.slane %v1204_v3, 4 }
0x1172   :  { %v1219_v8 = vrot.slane %v1206_v5, 4 }
0x1173   :  { %1220 = vrot.lane.b32.xlu0 %v1209_v7, %s7881_s19  ;;  %v1211_v9 = vadd.f32 %v1209_v7, %v8100_v55 }
0x1174   :  { %1222 = vrot.lane.b32.xlu1 %v1219_v8, %s7881_s19 }
0x1175   :  { %v5880_v10 = vmul.f32 -1.442695, %v1211_v9 }
0x1177   :  { %7757 = vpow2.f32 %v5880_v10 }
0x1181   :  { %v7758_v11 = vpop.eup %7757 }
0x1182   :  { %v1215_v13 = vadd.f32 1.0, %v7758_v11 }
0x1184   :  { %7759 = vrcp.f32 %v1215_v13 }
0x118e   :  { %v7760_v17 = vpop.eup %7759 }
0x118f   :  { %v1235_v31 = vsub.f32 1.0, %v7760_v17  ;;  %v1247_v52 = vmul.f32 %v7760_v17, %v1245_v32 }
0x11e5   :  { %v1221_v15 = vpop.permute.xlu0 %1220 }
0x11e6   :  { %v1223_v16 = vpop.permute.xlu1 %1222 }
0x11e7   :  { %v1224_v18 = vsel %vm285_vm2, %v1221_v15, %v1223_v16 }
0x11e8   :  { %v1226_v19 = vmul.f32 %v7760_v17, %v1224_v18 }
0x11ea   :  { %1228 = vrot.lane.b32.xlu0 %v1226_v19, %s7882_s20 }
0x125c   :  { %v1229_v20 = vpop.permute.xlu0 %1228 }
0x125d   :  { %v1231_v22 = vadd.f32 %v1229_v20, %v8100_v55  ;;  %v1232_v23 = vadd.f32 %v1229_v20, %v8102_v57 }
0x125f   :  { %7761 = vtanh.f32 %v1231_v22 }
0x1260   :  { %7763 = vtanh.f32 %v1232_v23 }
0x1269   :  { %v7762_v24 = vpop.eup %7761 }
0x126a   :  { %v7764_v26 = vpop.eup %7763  ;;  %1238 = vrot.lane.b32.xlu1 %v7762_v24, %s7883_s21 }
0x126b   :  { %1240 = vrot.lane.b32.xlu0 %v7764_v26, %s7883_s21 }
0x12dc   :  { %v1239_v28 = vpop.permute.xlu1 %1238 }
0x12dd   :  { %v1241_v29 = vpop.permute.xlu0 %1240 }
0x12de   :  { %v1242_v35 = vsel %vm304_vm3, %v1239_v28, %v1241_v29 }
0x12df   :  { %v1244_v36 = vmul.f32 %v1242_v35, %v1235_v31 }
0x12e1   :  { %v8303_v37 = vadd.f32 %v1247_v52, %v1244_v36 }
0x12e3   :  { %v1289_v38 = vrot.slane %v8303_v37, 4  ;;  %v1402_v17 = vrot.slane %v8303_v37, 6 }
0x12e5   :  { %1290 = vrot.lane.b32.xlu1 %v1289_v38, %s7883_s21 }
0x1357   :  { %v1291_v40 = vpop.permute.xlu1 %1290 }
0x1358   :  { %5883 = vmatmul.mubr.msk.f32.vlgmr.msra.gmra.mrb[14].mxu0 %vm81_vm1, %v1291_v40 }
0x1359   :  { %7115 = vmatpush1.bf16.msra.mxu0 %v7992_v25  ;;  %1668 = vmatprep.mubr.f32.mxu0 %v7880_v0 }
0x135a   :  { %7117 = vmatprep.subr.bf16.mxu0 %v7994_v27 }
0x135d   :  { %7119 = vmatpush1.bf16.msra.mxu0 %v8014_v33 }
0x135e   :  { %7121 = vmatprep.subr.bf16.mxu0 %v8016_v34 }
0x1361   :  { %7123 = vmatpush1.bf16.msra.mxu0 %v8036_v39 }
0x1362   :  { %5889 = vmatprep.subr.msk.mxu0 %vm91_vm0, %v8047_v41 }
0x1365   :  { %5890 = vmatpush1.msk.msra.mxu0 %vm91_vm0, %v8061_v43 }
0x1366   :  { %7137 = vmatprep.subr.bf16.mxu0 %v7981_v21 }
0x142b   :  { %v1360_v42 = vpop.f32.mrb[14].mxu0 }
0x142c   :  { %v1361_v46 = vadd.f32 %v1360_v42, %v8112_v63  ;;  %v1362_v47 = vpop.f32.mrb[15].mxu0 }
0x142d   :  { %v1363_v48 = vadd.f32 %v1362_v47, %v8114_v2 }
0x142e   :  { %v1366_v50 = vrot.slane %v1361_v46, 2 }
0x142f   :  { %v1376_v51 = vrot.slane %v1363_v48, 2 }
0x1430   :  { %1377 = vrot.lane.b32.xlu0 %v1366_v50, %s7881_s19  ;;  %v1368_v53 = vadd.f32 %v1366_v50, %v8100_v55 }
0x1431   :  { %1379 = vrot.lane.b32.xlu1 %v1376_v51, %s7881_s19 }
0x1432   :  { %v5884_v54 = vmul.f32 -1.442695, %v1368_v53 }
0x1434   :  { %7765 = vpow2.f32 %v5884_v54 }
0x143e   :  { %v7766_v59 = vpop.eup %7765 }
0x143f   :  { %v1372_v61 = vadd.f32 1.0, %v7766_v59 }
0x1441   :  { %7767 = vrcp.f32 %v1372_v61 }
0x144b   :  { %v7768_v3 = vpop.eup %7767 }
0x144c   :  { %v1392_v16 = vsub.f32 1.0, %v7768_v3  ;;  %v1404_v19 = vmul.f32 %v7768_v3, %v1402_v17 }
0x14a2   :  { %v1378_v21 = vpop.permute.xlu0 %1377 }
0x14a3   :  { %v1380_v1 = vpop.permute.xlu1 %1379 }
0x14a4   :  { %v1381_v4 = vsel %vm285_vm2, %v1378_v21, %v1380_v1 }
0x14a5   :  { %v1383_v5 = vmul.f32 %v7768_v3, %v1381_v4 }
0x14a7   :  { %1385 = vrot.lane.b32.xlu0 %v1383_v5, %s7882_s20 }
0x1519   :  { %v1386_v7 = vpop.permute.xlu0 %1385 }
0x151a   :  { %v1388_v8 = vadd.f32 %v1386_v7, %v8100_v55  ;;  %v1389_v9 = vadd.f32 %v1386_v7, %v8102_v57 }
0x151c   :  { %7769 = vtanh.f32 %v1388_v8 }
0x151d   :  { %7771 = vtanh.f32 %v1389_v9 }
0x1526   :  { %v7770_v10 = vpop.eup %7769 }
0x1527   :  { %v7772_v11 = vpop.eup %7771  ;;  %1395 = vrot.lane.b32.xlu1 %v7770_v10, %s7883_s21 }
0x1528   :  { %1397 = vrot.lane.b32.xlu0 %v7772_v11, %s7883_s21 }
0x1599   :  { %v1396_v13 = vpop.permute.xlu1 %1395 }
0x159a   :  { %v1398_v15 = vpop.permute.xlu0 %1397 }
0x159b   :  { %v1399_v18 = vsel %vm304_vm3, %v1396_v13, %v1398_v15 }
0x159c   :  { %v1401_v20 = vmul.f32 %v1399_v18, %v1392_v16 }
0x159e   :  { %v8332_v55 = vadd.f32 %v1404_v19, %v1401_v20 }
0x15a0   :  { %v1448_v57 = vrot.slane %v8332_v55, 6 }
0x15a2   :  { %1449 = vrot.lane.b32.xlu1 %v1448_v57, %s7883_s21 }
0x1614   :  { %v1450_v22 = vpop.permute.xlu1 %1449 }
0x1615   :  { %5887 = vmatmul.mubr.msk.f32.vlgmr.msra.gmra.mrb[6].mxu1 %vm81_vm1, %v1450_v22 }
0x1616   :  { %7127 = vmatpush1.bf16.msra.mxu1 %v7992_v25  ;;  %1826 = vmatprep.mubr.f32.mxu1 %v7880_v0 }
0x1617   :  { %7129 = vmatprep.subr.bf16.mxu1 %v7994_v27 }
0x161a   :  { %7131 = vmatpush1.bf16.msra.mxu1 %v8014_v33 }
0x161b   :  { %7133 = vmatprep.subr.bf16.mxu1 %v8016_v34 }
0x161e   :  { %7135 = vmatpush1.bf16.msra.mxu1 %v8036_v39 }
0x161f   :  { %5893 = vmatprep.subr.msk.mxu1 %vm91_vm0, %v8047_v41 }
0x1622   :  { %5894 = vmatpush1.msk.msra.mxu1 %vm91_vm0, %v8061_v43 }
0x16e8   :  { %v1519_v23 = vpop.f32.mrb[6].mxu1 }
0x16e9   :  { %v1520_v24 = vadd.f32 %v1519_v23, %v8112_v63  ;;  %v1521_v26 = vpop.f32.mrb[7].mxu1 }
0x16ea   :  { %v1522_v28 = vadd.f32 %v1521_v26, %v8114_v2 }
0x16eb   :  { %1533 = vrot.lane.b32.xlu0 %v1520_v24, %s7881_s19  ;;  %v1524_v29 = vadd.f32 %v1520_v24, %v8107_v60 }
0x16ec   :  { %1535 = vrot.lane.b32.xlu1 %v1522_v28, %s7881_s19 }
0x16ed   :  { %v5888_v31 = vmul.f32 -1.442695, %v1524_v29 }
0x16ef   :  { %7773 = vpow2.f32 %v5888_v31 }
0x16f9   :  { %v7774_v32 = vpop.eup %7773 }
0x16fa   :  { %v1528_v35 = vadd.f32 1.0, %v7774_v32 }
0x16fc   :  { %7775 = vrcp.f32 %v1528_v35 }
0x1706   :  { %v7776_v38 = vpop.eup %7775 }
0x1707   :  { %v1548_v59 = vsub.f32 1.0, %v7776_v38  ;;  %v1559_v1 = vmul.f32 %v7776_v38, %v1448_v57 }
0x175d   :  { %v1534_v52 = vpop.permute.xlu0 %1533 }
0x175e   :  { %v1536_v36 = vpop.permute.xlu1 %1535 }
0x175f   :  { %v1537_v40 = vsel %vm285_vm2, %v1534_v52, %v1536_v36 }
0x1760   :  { %v1539_v42 = vmul.f32 %v7776_v38, %v1537_v40 }
0x1762   :  { %1541 = vrot.lane.b32.xlu0 %v1539_v42, %s7882_s20 }
0x17d4   :  { %v1542_v46 = vpop.permute.xlu0 %1541 }
0x17d5   :  { %v1544_v47 = vadd.f32 %v1542_v46, %v8107_v60  ;;  %v1545_v48 = vadd.f32 %v1542_v46, %v8109_v62 }
0x17d7   :  { %7777 = vtanh.f32 %v1544_v47 }
0x17d8   :  { %7779 = vtanh.f32 %v1545_v48 }
0x17e1   :  { %v7778_v50 = vpop.eup %7777 }
0x17e2   :  { %v7780_v51 = vpop.eup %7779  ;;  %1551 = vrot.lane.b32.xlu1 %v7778_v50, %s7883_s21 }
0x17e3   :  { %1553 = vrot.lane.b32.xlu0 %v7780_v51, %s7883_s21 }
0x1854   :  { %v1552_v53 = vpop.permute.xlu1 %1551 }
0x1855   :  { %v1554_v54 = vpop.permute.xlu0 %1553 }
0x1856   :  { %v1555_v61 = vsel %vm304_vm3, %v1552_v53, %v1554_v54 }
0x1857   :  { %v1557_v21 = vmul.f32 %v1555_v61, %v1548_v59 }
0x1859   :  { %v8359_v3 = vadd.f32 %v1559_v1, %v1557_v21 }
0x185b   :  { %1600 = vrot.lane.b32.xlu1 %v8359_v3, %s7883_s21  ;;  %v1712_v22 = vrot.slane %v8359_v3, 6 }
0x18cd   :  { %v1601_v4 = vpop.permute.xlu1 %1600 }
0x18ce   :  { %5891 = vmatmul.mubr.msk.f32.vlgmr.msra.gmra.mrb[16].mxu0 %vm81_vm1, %v1601_v4 }
0x18cf   :  { %7139 = vmatpush1.bf16.msra.mxu0 %v7992_v25  ;;  %1983 = vmatprep.mubr.f32.mxu0 %v7880_v0 }
0x18d0   :  { %7141 = vmatprep.subr.bf16.mxu0 %v7994_v27 }
0x18d3   :  { %7143 = vmatpush1.bf16.msra.mxu0 %v8014_v33 }
0x18d4   :  { %7145 = vmatprep.subr.bf16.mxu0 %v8016_v34 }
0x18d7   :  { %7147 = vmatpush1.bf16.msra.mxu0 %v8036_v39 }
0x18d8   :  { %5897 = vmatprep.subr.msk.mxu0 %vm91_vm0, %v8047_v41 }
0x18db   :  { %5898 = vmatpush1.msk.msra.mxu0 %vm91_vm0, %v8061_v43 }
0x19a1   :  { %v1670_v5 = vpop.f32.mrb[16].mxu0 }
0x19a2   :  { %v1671_v7 = vadd.f32 %v1670_v5, %v8112_v63  ;;  %v1672_v25 = vpop.f32.mrb[17].mxu0 }
0x19a3   :  { %v1673_v8 = vadd.f32 %v1672_v25, %v8114_v2 }
0x19a4   :  { %v1676_v9 = vrot.slane %v1671_v7, 6 }
0x19a5   :  { %v1686_v27 = vrot.slane %v1673_v8, 6 }
0x19a6   :  { %1687 = vrot.lane.b32.xlu0 %v1676_v9, %s7881_s19  ;;  %v1678_v33 = vadd.f32 %v1676_v9, %v8107_v60 }
0x19a7   :  { %1689 = vrot.lane.b32.xlu1 %v1686_v27, %s7881_s19 }
0x19a8   :  { %v5892_v34 = vmul.f32 -1.442695, %v1678_v33 }
0x19aa   :  { %7781 = vpow2.f32 %v5892_v34 }
0x19b4   :  { %v7782_v39 = vpop.eup %7781 }
0x19b5   :  { %v1682_v41 = vadd.f32 1.0, %v7782_v39 }
0x19b7   :  { %7783 = vrcp.f32 %v1682_v41 }
0x19c1   :  { %v7784_v11 = vpop.eup %7783 }
0x19c2   :  { %v1702_v24 = vsub.f32 1.0, %v7784_v11  ;;  %v1714_v29 = vmul.f32 %v7784_v11, %v1712_v22 }
0x1a18   :  { %v1688_v43 = vpop.permute.xlu0 %1687 }
0x1a19   :  { %v1690_v10 = vpop.permute.xlu1 %1689 }
0x1a1a   :  { %v1691_v13 = vsel %vm285_vm2, %v1688_v43, %v1690_v10 }
0x1a1b   :  { %v1693_v15 = vmul.f32 %v7784_v11, %v1691_v13 }
0x1a1d   :  { %1695 = vrot.lane.b32.xlu0 %v1693_v15, %s7882_s20 }
0x1a8f   :  { %v1696_v16 = vpop.permute.xlu0 %1695 }
0x1a90   :  { %v1698_v17 = vadd.f32 %v1696_v16, %v8107_v60  ;;  %v1699_v18 = vadd.f32 %v1696_v16, %v8109_v62 }
0x1a92   :  { %7785 = vtanh.f32 %v1698_v17 }
0x1a93   :  { %7787 = vtanh.f32 %v1699_v18 }
0x1a9c   :  { %v7786_v19 = vpop.eup %7785 }
0x1a9d   :  { %v7788_v20 = vpop.eup %7787  ;;  %1705 = vrot.lane.b32.xlu1 %v7786_v19, %s7883_s21 }
0x1a9e   :  { %1707 = vrot.lane.b32.xlu0 %v7788_v20, %s7883_s21 }
0x1b0f   :  { %v1706_v57 = vpop.permute.xlu1 %1705 }
0x1b10   :  { %v1708_v23 = vpop.permute.xlu0 %1707 }
0x1b11   :  { %v1709_v26 = vsel %vm304_vm3, %v1706_v57, %v1708_v23 }
0x1b12   :  { %v1711_v28 = vmul.f32 %v1709_v26, %v1702_v24 }
0x1b14   :  { %v8387_v31 = vadd.f32 %v1714_v29, %v1711_v28  ;;  %v7884_v29 = vmov 1966171168  }
0x1b16   :  { %v1757_v32 = vrot.slane %v8387_v31, 2  ;;  %v1870_v33 = vrot.slane %v8387_v31, 6 }
0x1b18   :  { %1758 = vrot.lane.b32.xlu1 %v1757_v32, %s7883_s21  ;;  %v312_v32 = vunpack.c.l.s4 %v7884_v29 }
0x1b8a   :  { %v1759_v35 = vpop.permute.xlu1 %1758 }
0x1b8b   :  { %5895 = vmatmul.mubr.msk.f32.vlgmr.msra.gmra.mrb[8].mxu1 %vm81_vm1, %v1759_v35  ;;  %v313_v35 = vunpack.c.0.s8 %v312_v32 }
0x1c5e   :  { %v1828_v52 = vpop.f32.mrb[8].mxu1 }
0x1c5f   :  { %v1829_v36 = vadd.f32 %v1828_v52, %v8112_v63  ;;  %v1830_v38 = vpop.f32.mrb[9].mxu1 }
0x1c60   :  { %v1831_v40 = vadd.f32 %v1830_v38, %v8114_v2 }
0x1c61   :  { %v1834_v42 = vrot.slane %v1829_v36, 4 }
0x1c62   :  { %v1844_v46 = vrot.slane %v1831_v40, 4  ;;  %v8423_v40 = vsub.s32 %v313_v35, %v8088_v45 }
0x1c63   :  { %1845 = vrot.lane.b32.xlu0 %v1834_v42, %s7881_s19  ;;  %v1836_v47 = vadd.f32 %v1834_v42, %v8107_v60  ;;  %v782_v42 = vcombine.high %v8217_v6, %v8217_v6 }
0x1c64   :  { %1847 = vrot.lane.b32.xlu1 %v1844_v46, %s7881_s19  ;;  %v8429_v46 = vrot.slane %v8159_v12, %v8423_v40 }
0x1c65   :  { %v5896_v48 = vmul.f32 -1.442695, %v1836_v47  ;;  %v625_v47 = vcombine.high %v8188_v56, %v8188_v56  ;;  %v1407_v56 = vcombine.high %v8332_v55, %v8332_v55 }
0x1c67   :  { %7789 = vpow2.f32 %v5896_v48  ;;  %v8440_v48 = vrot.slane %v782_v42, %v8423_v40 }
0x1c71   :  { %v7790_v50 = vpop.eup %7789 }
0x1c72   :  { %v1840_v51 = vadd.f32 1.0, %v7790_v50  ;;  %v8445_v50 = vrot.slane %v625_v47, %v8423_v40  ;;  %v2079_v47 = vld [vmem:[%s9283_s2 + $0x140] sm:$0xff] }
0x1c74   :  { %7791 = vrcp.f32 %v1840_v51  ;;  %v640_v55 = vrot.slane %v8445_v50, %v8423_v40 }
0x1c7e   :  { %v7792_v59 = vpop.eup %7791 }
0x1c7f   :  { %v1860_v27 = vsub.f32 1.0, %v7792_v59  ;;  %v1872_v39 = vmul.f32 %v7792_v59, %v1870_v33 }
0x1cd5   :  { %v1846_v53 = vpop.permute.xlu0 %1845 }
0x1cd6   :  { %v1848_v54 = vpop.permute.xlu1 %1847 }
0x1cd7   :  { %v1849_v61 = vsel %vm285_vm2, %v1846_v53, %v1848_v54  ;;  %v8453_v53 = vrot.slane %v8274_v58, %v8423_v40 }
0x1cd8   :  { %v1851_v21 = vmul.f32 %v7792_v59, %v1849_v61  ;;  %v1250_v59 = vcombine.high %v8303_v37, %v8303_v37  ;;  %v651_v37 = vrot.slane %v640_v55, %v8095_v49 }
0x1cda   :  { %1853 = vrot.lane.b32.xlu0 %v1851_v21, %s7882_s20  ;;  %v8464_v21 = vrot.slane %v8245_v14, %v8423_v40  ;;  %v8478_v14 = vrot.slane %v1250_v59, %v8423_v40 }
0x1d4c   :  { %v1854_v1 = vpop.permute.xlu0 %1853 }
0x1d4d   :  { %v1856_v4 = vadd.f32 %v1854_v1, %v8107_v60  ;;  %v1857_v5 = vadd.f32 %v1854_v1, %v8109_v62 }
0x1d4f   :  { %7793 = vtanh.f32 %v1856_v4  ;;  %v1106_v4 = vrot.slane %v8453_v53, %v8423_v40 }
0x1d50   :  { %7795 = vtanh.f32 %v1857_v5  ;;  %v8470_v5 = vrot.slane %v1407_v56, %v8423_v40 }
0x1d59   :  { %v7794_v7 = vpop.eup %7793 }
0x1d5a   :  { %v7796_v25 = vpop.eup %7795  ;;  %1863 = vrot.lane.b32.xlu1 %v7794_v7, %s7883_s21  ;;  %v951_v7 = vrot.slane %v8464_v21, %v8423_v40 }
0x1d5b   :  { %1865 = vrot.lane.b32.xlu0 %v7796_v25, %s7883_s21 }
0x1dcc   :  { %v1864_v8 = vpop.permute.xlu1 %1863 }
0x1dcd   :  { %v1866_v9 = vpop.permute.xlu0 %1865 }
0x1dce   :  { %v1867_v34 = vsel %vm304_vm3, %v1864_v8, %v1866_v9  ;;  %v1114_v8 = vcombine.high %v1106_v4, %v1106_v4  ;;  %v1422_v9 = vrot.slane %v8470_v5, %v8423_v40 }
0x1dcf   :  { %v1869_v41 = vmul.f32 %v1867_v34, %v1860_v27  ;;  %v8485_v27 = vrot.slane %v8387_v31, %v8423_v40  ;;  %v962_v34 = vrot.slane %v951_v7, %v8095_v49 }
0x1dd0   :  { %v1430_v31 = vcombine.high %v1422_v9, %v1422_v9 }
0x1dd1   :  { %v8405_v43 = vadd.f32 %v1872_v39, %v1869_v41  ;;  %v1265_v39 = vrot.slane %v8478_v14, %v8423_v40  ;;  %v8496_v41 = vrot.slane %v8359_v3, %v8423_v40  ;;  %v2077_v3 = vld [vmem:[%s9283_s2 + $0x120] sm:$0xff] }
0x1dd3   :  { %v1914_v10 = vrot.slane %v8405_v43, 4  ;;  %v1875_v33 = vcombine.high %v8405_v43, %v8405_v43 }
0x1dd5   :  { %1915 = vrot.lane.b32.xlu1 %v1914_v10, %s7883_s21  ;;  %v1119_v10 = vrot.slane %v1114_v8, %v8095_v49 }
0x1e47   :  { %v1916_v11 = vpop.permute.xlu1 %1915 }
0x1e48   :  { %5899 = vmatmul.mubr.msk.f32.vlgmr.msra.gmra.mrb[18].mxu0 %vm81_vm1, %v1916_v11  ;;  %v1731_v11 = vrot.slane %v8485_v27, %v8423_v40 }
0x1f1b   :  { %v1985_v13 = vpop.f32.mrb[18].mxu0 }
0x1f1c   :  { %v1986_v15 = vadd.f32 %v1985_v13, %v8112_v63  ;;  %v1987_v16 = vpop.f32.mrb[19].mxu0  ;;  %v2075_v13 = vld [vmem:[%s9283_s2 + $0x100] sm:$0xff] }
0x1f1d   :  { %v1988_v17 = vadd.f32 %v1987_v16, %v8114_v2 }
0x1f1e   :  { %v1991_v18 = vrot.slane %v1986_v15, 2  ;;  %v2076_v15 = vld [vmem:[%s9283_s2 + $0x110] sm:$0xff] }
0x1f1f   :  { %v2001_v19 = vrot.slane %v1988_v17, 2  ;;  %v7148_v16 = vpack.c.bf16 %v2076_v15, %v2075_v13  ;;  %v2078_v17 = vld [vmem:[%s9283_s2 + $0x130] sm:$0xff]  ;;  %v633_v13 = vcombine.high %v8445_v50, %v8445_v50 }
0x1f20   :  { %2002 = vrot.lane.b32.xlu0 %v1991_v18, %s7881_s19  ;;  %v1993_v20 = vadd.f32 %v1991_v18, %v8107_v60  ;;  %v1276_v18 = vrot.slane %v1265_v39, %v8095_v49 }
0x1f21   :  { %2004 = vrot.lane.b32.xlu1 %v2001_v19, %s7881_s19  ;;  %v1576_v19 = vrot.slane %v8496_v41, %v8423_v40  ;;  %7149 = vmatprep.subr.bf16.mxu1 %v7148_v16 }
0x1f22   :  { %v5900_v57 = vmul.f32 -1.442695, %v1993_v20  ;;  %v8519_v20 = vrot.slane %v1875_v33, %v8423_v40  ;;  %7151 = vmatpush3.bf16.msra.mxu1 %v7148_v16  ;;  %v790_v16 = vcombine.high %v8440_v48, %v8440_v48 }
0x1f24   :  { %7797 = vpow2.f32 %v5900_v57  ;;  %v7152_v57 = vpack.c.bf16 %v2078_v17, %v2077_v3 }
0x1f26   :  { %7153 = vmatprep.subr.bf16.mxu1 %v7152_v57 }
0x1f27   :  { %7155 = vmatpush3.bf16.msra.mxu1 %v7152_v57 }
0x1f2e   :  { %v7798_v22 = vpop.eup %7797 }
0x1f2f   :  { %v1997_v23 = vadd.f32 1.0, %v7798_v22  ;;  %v1435_v22 = vrot.slane %v1430_v31, %v8095_v49  ;;  %v474_v31 = vcombine.high %v8429_v46, %v8429_v46 }
0x1f31   :  { %7799 = vrcp.f32 %v1997_v23  ;;  %v1739_v23 = vcombine.high %v1731_v11, %v1731_v11  ;;  %v488_v3 = vrot.slane %v474_v31, %v8423_v40  ;;  %v7888_v31 = vmov 1.0|1.0  }
0x1f33   :  { %v490_v57 = vcombine.high %v488_v3, %v488_v3  ;;  %v2531_v3 = vld [vmem:[%s9283_s2 + $0x1d0] sm:$0xf] }
0x1f3b   :  { %v8415_v28 = vpop.eup %7799 }
0x1f3c   :  { %v2017_v35 = vsub.f32 1.0, %v8415_v28 }
0x1f92   :  { %v2003_v24 = vpop.permute.xlu0 %2002 }
0x1f93   :  { %v2005_v26 = vpop.permute.xlu1 %2004 }
0x1f94   :  { %v2006_v63 = vsel %vm285_vm2, %v2003_v24, %v2005_v26  ;;  %v1587_v24 = vrot.slane %v1576_v19, %v8095_v49  ;;  %v1890_v26 = vrot.slane %v8519_v20, %v8423_v40  ;;  %v647_v19 = vrot.slane %v633_v13, %v8423_v40 }
0x1f95   :  { %v2008_v2 = vmul.f32 %v8415_v28, %v2006_v63  ;;  %v1744_v63 = vrot.slane %v1739_v23, %v8095_v49  ;;  %v1099_v23 = vcombine.high %v8453_v53, %v8453_v53  ;;  %v1415_v53 = vcombine.high %v8470_v5, %v8470_v5 }
0x1f96   :  { %v1569_v5 = vcombine.high %v8496_v41, %v8496_v41  ;;  %v1883_v41 = vcombine.high %v8519_v20, %v8519_v20 }
0x1f97   :  { %2010 = vrot.lane.b32.xlu0 %v2008_v2, %s7882_s20  ;;  %v1901_v2 = vrot.slane %v1890_v26, %v8095_v49  ;;  %v1258_v26 = vcombine.high %v8478_v14, %v8478_v14 }
0x2009   :  { %v2011_v52 = vpop.permute.xlu0 %2010 }
0x200a   :  { %v2013_v36 = vadd.f32 %v2011_v52, %v8107_v60  ;;  %v2014_v38 = vadd.f32 %v2011_v52, %v8109_v62  ;;  %v8435_v60 = vrot.slane %v8130_v30, %v8423_v40  ;;  %v481_v62 = vrot.slane %v8429_v46, %v8423_v40 }
0x200b   :  { %v797_v30 = vrot.slane %v8440_v48, %v8423_v40  ;;  %v2027_v52 = vrot.slane %v8405_v43, 6  ;;  %v2081_v43 = vld [vmem:[%s9283_s2 + $0x160] sm:$0xf]  ;;  %v944_v48 = vcombine.high %v8464_v21, %v8464_v21 }
0x200c   :  { %7801 = vtanh.f32 %v2013_v36  ;;  %v325_v6 = vrot.slane %v8435_v60, %v8423_v40  ;;  %v489_v51 = vcombine.high %v481_v62, %v481_v62  ;;  %v2080_v62 = vld [vmem:[%s9283_s2 + $0x150] sm:$0xff] }
0x200d   :  { %7803 = vtanh.f32 %v2014_v38  ;;  %v805_v1 = vcombine.high %v797_v30, %v797_v30  ;;  %v2029_v38 = vmul.f32 %v8415_v28, %v2027_v52  ;;  %v958_v21 = vrot.slane %v944_v48, %v8423_v40 }
0x200e   :  { %v336_v61 = vrot.slane %v325_v6, %v8095_v49  ;;  %v494_v58 = vrot.slane %v489_v51, %v8095_v49 }
0x200f   :  { %v810_v25 = vrot.slane %v805_v1, %v8095_v49  ;;  %v966_v14 = vrot.slane %v958_v21, %v8095_v49 }
0x2016   :  { %v7802_v12 = vpop.eup %7801 }
0x2017   :  { %v7804_v54 = vpop.eup %7803  ;;  %2020 = vrot.lane.b32.xlu1 %v7802_v12, %s7883_s21  ;;  %v7156_v12 = vpack.c.bf16 %v2080_v62, %v2079_v47  ;;  %v1429_v47 = vrot.slane %v1415_v53, %v8423_v40  ;;  %v1724_v62 = vcombine.high %v8485_v27, %v8485_v27 }
0x2018   :  { %2022 = vrot.lane.b32.xlu0 %v7804_v54, %s7883_s21 }
0x2019   :  { %7157 = vmatprep.subr.bf16.mxu1 %v7156_v12 }
0x201a   :  { %7159 = vmatpush3.bf16.msra.mxu1 %v7156_v12  ;;  %v1583_v12 = vrot.slane %v1569_v5, %v8423_v40 }
0x201b   :  { %341 = vrot.lane.b32.xlu1 %v336_v61, %s7883_s21  ;;  %6421 = vmatprep.subr.msk.mxu1 %vm91_vm0, %v2081_v43 }
0x201c   :  { %499 = vrot.lane.b32.xlu0 %v494_v58, %s7883_s21  ;;  %v1591_v27 = vrot.slane %v1583_v12, %v8095_v49 }
0x201e   :  { %6422 = vmatpush3.msk.msra.mxu1 %vm91_vm0, %v2081_v43  ;;  %v1738_v43 = vrot.slane %v1724_v62, %v8423_v40 }
0x201f   :  { %656 = vrot.lane.b32.xlu1 %v651_v37, %s7883_s21 }
0x2020   :  { %815 = vrot.lane.b32.xlu0 %v810_v25, %s7883_s21 }
0x2023   :  { %967 = vrot.lane.b32.xlu1 %v962_v34, %s7883_s21 }
0x2024   :  { %1124 = vrot.lane.b32.xlu0 %v1119_v10, %s7883_s21  ;;  %v318_v10 = vcombine.high %v8435_v60, %v8435_v60 }
0x2026   :  { %v332_v11 = vrot.slane %v318_v10, %v8423_v40 }
0x2027   :  { %1281 = vrot.lane.b32.xlu1 %v1276_v18, %s7883_s21 }
0x2028   :  { %1440 = vrot.lane.b32.xlu0 %v1435_v22, %s7883_s21  ;;  %v340_v50 = vrot.slane %v332_v11, %v8095_v49  ;;  %v804_v22 = vrot.slane %v790_v16, %v8423_v40 }
0x202b   :  { %1592 = vrot.lane.b32.xlu1 %v1587_v24, %s7883_s21  ;;  %v655_v24 = vrot.slane %v647_v19, %v8095_v49 }
0x202c   :  { %1749 = vrot.lane.b32.xlu0 %v1744_v63, %s7883_s21  ;;  %v498_v63 = vrot.slane %v490_v57, %v8095_v49 }
0x202f   :  { %1906 = vrot.lane.b32.xlu1 %v1901_v2, %s7883_s21  ;;  %v806_v2 = vcombine.high %v804_v22, %v804_v22 }
0x2089   :  { %v2021_v29 = vpop.permute.xlu1 %2020 }
0x208a   :  { %v2023_v32 = vpop.permute.xlu0 %2022 }
0x208b   :  { %v2024_v36 = vsel %vm304_vm3, %v2021_v29, %v2023_v32  ;;  %v1113_v29 = vrot.slane %v1099_v23, %v8423_v40  ;;  %v2525_v32 = vld [vmem:[%s9283_s2 + $0x170] sm:$0xff] }
0x208c   :  { %v2026_v42 = vmul.f32 %v2024_v36, %v2017_v35  ;;  %v2526_v35 = vld [vmem:[%s9283_s2 + $0x180] sm:$0xff]  ;;  %v1272_v36 = vrot.slane %v1258_v26, %v8423_v40 }
0x208d   :  { %v342_v6 = vpop.permute.xlu1 %341  ;;  %v7178_v52 = vpack.c.bf16 %v2526_v35, %v2525_v32 }
0x208e   :  { %v2030_v56 = vadd.f32 %v2029_v38, %v2026_v42  ;;  %v500_v51 = vpop.permute.xlu0 %499  ;;  %348 = vst.msk [vmem:[#allocation2] sm:$0x1] %vm347_vm4, %v342_v6  ;;  %v814_v38 = vrot.slane %v806_v2, %v8095_v49  ;;  %v1115_v42 = vcombine.high %v1113_v29, %v1113_v29  ;;  %v1280_v6 = vrot.slane %v1272_v36, %v8095_v49 }
0x208f   :  { %505 = vst.msk [vmem:[#allocation2 + $0x1] sm:$0x1] %vm347_vm4, %v500_v51  ;;  %v1431_v51 = vcombine.high %v1429_v47, %v1429_v47 }
0x2090   :  { %v2032_v28 = vcombine.high %v2030_v56, %v2030_v56  ;;  %v1123_v56 = vrot.slane %v1115_v42, %v8095_v49 }
0x2091   :  { %v657_v30 = vpop.permute.xlu1 %656 }
0x2092   :  { %v8549_v54 = vrot.slane %v2032_v28, %v8423_v40  ;;  %v816_v59 = vpop.permute.xlu0 %815  ;;  %662 = vst.msk [vmem:[#allocation2 + $0x2] sm:$0x1] %vm347_vm4, %v657_v30  ;;  %v1897_v30 = vrot.slane %v1883_v41, %v8423_v40 }
0x2093   :  { %821 = vst.msk [vmem:[#allocation2 + $0x3] sm:$0x1] %vm347_vm4, %v816_v59  ;;  %v1439_v59 = vrot.slane %v1431_v51, %v8095_v49 }
0x2094   :  { %v2047_v61 = vrot.slane %v8549_v54, %v8423_v40  ;;  %v2040_v28 = vcombine.high %v8549_v54, %v8549_v54 }
0x2095   :  { %v968_v55 = vpop.permute.xlu1 %967 }
0x2096   :  { %v1125_v58 = vpop.permute.xlu0 %1124  ;;  %973 = vst.msk [vmem:[#allocation2 + $0x4] sm:$0x1] %vm347_vm4, %v968_v55  ;;  %v2055_v1 = vcombine.high %v2047_v61, %v2047_v61  ;;  %v1740_v61 = vcombine.high %v1738_v43, %v1738_v43  ;;  %v2054_v20 = vrot.slane %v2040_v28, %v8423_v40  ;;  %v1905_v55 = vrot.slane %v1897_v30, %v8095_v49  ;;  %v2527_v40 = vld [vmem:[%s9283_s2 + $0x190] sm:$0xff] }
0x2097   :  { %1130 = vst.msk [vmem:[#allocation2 + $0x5] sm:$0x1] %vm347_vm4, %v1125_v58 }
0x2098   :  { %v2060_v4 = vrot.slane %v2055_v1, %v8095_v49  ;;  %v1748_v54 = vrot.slane %v1740_v61, %v8095_v49  ;;  %v2056_v58 = vcombine.high %v2054_v20, %v2054_v20 }
0x2099   :  { %v1282_v37 = vpop.permute.xlu1 %1281 }
0x209a   :  { %2065 = vrot.lane.b32.xlu0 %v2060_v4, %s7883_s21  ;;  %v1441_v7 = vpop.permute.xlu0 %1440  ;;  %1287 = vst.msk [vmem:[#allocation2 + $0x6] sm:$0x1] %vm347_vm4, %v1282_v37  ;;  %v2064_v1 = vrot.slane %v2056_v58, %v8095_v49  ;;  %v2528_v4 = vld [vmem:[%s9283_s2 + $0x1a0] sm:$0xff] }
0x209b   :  { %1446 = vst.msk [vmem:[#allocation2 + $0x7] sm:$0x1] %vm347_vm4, %v1441_v7  ;;  %v2530_v49 = vld [vmem:[%s9283_s2 + $0x1c0] sm:$0xff] }
0x209d   :  { %v1593_v25 = vpop.permute.xlu1 %1592 }
0x209e   :  { %v1750_v8 = vpop.permute.xlu0 %1749  ;;  %1598 = vst.msk [vmem:[#allocation2 + $0x8] sm:$0x1] %vm347_vm4, %v1593_v25  ;;  %v7182_v25 = vpack.c.bf16 %v2528_v4, %v2527_v40 }
0x209f   :  { %1755 = vst.msk [vmem:[#allocation2 + $0x9] sm:$0x1] %vm347_vm4, %v1750_v8  ;;  %v2529_v8 = vld [vmem:[%s9283_s2 + $0x1b0] sm:$0xff] }
0x20a1   :  { %v1907_v9 = vpop.permute.xlu1 %1906 }
0x20a2   :  { %1912 = vst.msk [vmem:[#allocation2 + $0xa] sm:$0x1] %vm347_vm4, %v1907_v9  ;;  %v2073_v33 = vld [vmem:[#allocation2] sm:$0xff] }
0x20a3   :  { %6423 = vmatprep.mubr.msk.f32.mxu1 %vm81_vm1, %v2073_v33 }
0x210c   :  { %v2066_v34 = vpop.permute.xlu0 %2065 }
0x210d   :  { %2071 = vst.msk [vmem:[#allocation2 + $0xb] sm:$0x1] %vm347_vm4, %v2066_v34  ;;  %v7186_v34 = vpack.c.bf16 %v2530_v49, %v2529_v8 }
0x2114   :  { %v2074_v39 = vld [vmem:[#allocation2 + $0x8] sm:$0xf] }
0x2115   :  { %6424 = vmatmul.mubr.msk.f32.vlgmr.msra.gmra.mrb[10].mxu1 %vm81_vm1, %v2074_v39 }
0x21e8   :  { %v6425_v15 = vpop.f32.mrb[10].mxu1 }
0x21e9   :  { %2170 = vrot.lane.b32.xlu0 %v6425_v15, %s7885_s11  ;;  %v2157_v17 = vpop.f32.mrb[11].mxu1 }
0x21ea   :  { %v7697_v60 = vpack.i.bf16 %v6425_v15, %v2157_v17  ;;  %v7160_v18 = vpack.c.bf16 %v6425_v15, %v2157_v17  ;;  %2168 = vrot.lane.b32.xlu1 %v2157_v17, %s7885_s11 }
0x21ec   :  { %7162 = vmatprep.subr.msk.bf16.mxu0 %vm8581_vm6, %v7160_v18 }
0x21ed   :  { %7165 = vmatpush3.bf16.xpose.msk.msra.mxu0 %vm8581_vm6, %v7160_v18  ;;  %343 = vrot.lane.b32.xlu0 %v340_v50, %s7883_s21 }
0x21ee   :  { %7698 = vrot.lane.b32.xlu1 %v7697_v60, %s7882_s20  ;;  %7179 = vmatprep.subr.bf16.mxu0 %v7178_v52 }
0x21f1   :  { %658 = vrot.lane.b32.xlu0 %v655_v24, %s7883_s21 }
0x21f2   :  { %501 = vrot.lane.b32.xlu1 %v498_v63, %s7883_s21 }
0x21f5   :  { %969 = vrot.lane.b32.xlu0 %v966_v14, %s7883_s21 }
0x21f6   :  { %817 = vrot.lane.b32.xlu1 %v814_v38, %s7883_s21 }
0x21f9   :  { %1283 = vrot.lane.b32.xlu0 %v1280_v6, %s7883_s21 }
0x21fa   :  { %1126 = vrot.lane.b32.xlu1 %v1123_v56, %s7883_s21 }
0x21fd   :  { %1594 = vrot.lane.b32.xlu0 %v1591_v27, %s7883_s21 }
0x21fe   :  { %1442 = vrot.lane.b32.xlu1 %v1439_v59, %s7883_s21 }
0x2201   :  { %1908 = vrot.lane.b32.xlu0 %v1905_v55, %s7883_s21 }
0x2202   :  { %1751 = vrot.lane.b32.xlu1 %v1748_v54, %s7883_s21 }
0x2206   :  { %2067 = vrot.lane.b32.xlu1 %v2064_v1, %s7883_s21 }
0x225b   :  { %v2171_v37 = vpop.permute.xlu0 %2170 }
0x225c   :  { %v2169_v7 = vpop.permute.xlu1 %2168 }
0x225d   :  { %6430 = vmatprep.mubr.msk.f32.mxu0 %vm2172_vm5, %v2169_v7 }
0x225e   :  { %6431 = vmatmul.mubr.msk.f32.vlgmr.msra.gmra.mrb[20].mxu0 %vm2172_vm5, %v2171_v37 }
0x225f   :  { %v344_v9 = vpop.permute.xlu0 %343  ;;  %7181 = vmatpush3.bf16.msra.mxu0 %v7178_v52 }
0x2260   :  { %349 = vst.msk [vmem:[#allocation2 + $0x10] sm:$0x1] %vm347_vm4, %v344_v9  ;;  %v7699_v33 = vpop.permute.xlu1 %7698  ;;  %7183 = vmatprep.subr.bf16.mxu0 %v7182_v25 }
0x2261   :  { %v7701_v39 = vunpack.i.h.bf16 %v7699_v33  ;;  %v7700_v10 = vunpack.i.l.bf16 %v7699_v33 }
0x2263   :  { %v7166_v11 = vpack.c.bf16 %v7701_v39, %v7700_v10  ;;  %v659_v13 = vpop.permute.xlu0 %658  ;;  %7185 = vmatpush3.bf16.msra.mxu0 %v7182_v25 }
0x2264   :  { %663 = vst.msk [vmem:[#allocation2 + $0x12] sm:$0x1] %vm347_vm4, %v659_v13  ;;  %v502_v15 = vpop.permute.xlu1 %501  ;;  %7187 = vmatprep.subr.bf16.mxu0 %v7186_v34 }
0x2265   :  { %506 = vst.msk [vmem:[#allocation2 + $0x11] sm:$0x1] %vm347_vm4, %v502_v15  ;;  %7168 = vmatprep.subr.msk.bf16.mxu1 %vm8663_vm8, %v7166_v11  ;;  %v2436_v15 = vld [vmem:[%s9282_s1] sm:$0xff] }
0x2266   :  { %7171 = vmatpush3.bf16.msk.msra.mxu1 %vm8663_vm8, %v7166_v11 }
0x2267   :  { %v970_v16 = vpop.permute.xlu0 %969  ;;  %7189 = vmatpush3.bf16.msra.mxu0 %v7186_v34 }
0x2268   :  { %974 = vst.msk [vmem:[#allocation2 + $0x14] sm:$0x1] %vm347_vm4, %v970_v16  ;;  %v818_v17 = vpop.permute.xlu1 %817  ;;  %6459 = vmatprep.subr.msk.mxu0 %vm91_vm0, %v2531_v3  ;;  %v2971_v16 = vld [vmem:[#allocation3 + $0x18] sm:$0xf] }
0x2269   :  { %822 = vst.msk [vmem:[#allocation2 + $0x13] sm:$0x1] %vm347_vm4, %v818_v17 }
0x226b   :  { %v1284_v60 = vpop.permute.xlu0 %1283  ;;  %6460 = vmatpush3.msk.msra.mxu0 %vm91_vm0, %v2531_v3  ;;  %v2970_v3 = vld [vmem:[#allocation3 + $0x10] sm:$0xff] }
0x226c   :  { %1288 = vst.msk [vmem:[#allocation2 + $0x16] sm:$0x1] %vm347_vm4, %v1284_v60  ;;  %v1127_v18 = vpop.permute.xlu1 %1126  ;;  %v7208_v17 = vpack.c.bf16 %v2971_v16, %v2970_v3 }
0x226d   :  { %1131 = vst.msk [vmem:[#allocation2 + $0x15] sm:$0x1] %vm347_vm4, %v1127_v18 }
0x226e   :  { %7210 = vmatprep.subr.msk.bf16.mxu0 %vm8663_vm8, %v7208_v17 }
0x226f   :  { %v1595_v50 = vpop.permute.xlu0 %1594 }
0x2270   :  { %1599 = vst.msk [vmem:[#allocation2 + $0x18] sm:$0x1] %vm347_vm4, %v1595_v50  ;;  %v1443_v19 = vpop.permute.xlu1 %1442 }
0x2271   :  { %1447 = vst.msk [vmem:[#allocation2 + $0x17] sm:$0x1] %vm347_vm4, %v1443_v19 }
0x2273   :  { %v1909_v48 = vpop.permute.xlu0 %1908 }
0x2274   :  { %1913 = vst.msk [vmem:[#allocation2 + $0x1a] sm:$0x1] %vm347_vm4, %v1909_v48  ;;  %v1752_v57 = vpop.permute.xlu1 %1751 }
0x2275   :  { %1756 = vst.msk [vmem:[#allocation2 + $0x19] sm:$0x1] %vm347_vm4, %v1752_v57 }
0x2278   :  { %v2068_v22 = vpop.permute.xlu1 %2067  ;;  %v2523_v23 = vld [vmem:[#allocation2 + $0x10] sm:$0xff] }
0x2279   :  { %2072 = vst.msk [vmem:[#allocation2 + $0x1b] sm:$0x1] %vm347_vm4, %v2068_v22  ;;  %6461 = vmatprep.mubr.msk.f32.mxu0 %vm81_vm1, %v2523_v23 }
0x2280   :  { %v2524_v24 = vld [vmem:[#allocation2 + $0x18] sm:$0xf] }
0x2281   :  { %6462 = vmatmul.mubr.msk.f32.vlgmr.msra.gmra.mrb[22].mxu0 %vm81_vm1, %v2524_v24 }
0x2282   :  { %7213 = vmatpush3.bf16.msk.msra.mxu0 %vm8663_vm8, %v7208_v17 }
0x2331   :  { %v6432_v21 = vpop.f32.mrb[20].mxu0 }
0x2332   :  { %v2258_v26 = vsel %vm2257_vm9, %v6432_v21, -inf  ;;  %v2247_v63 = vpop.f32.mrb[21].mxu0 }
0x2333   :  { %v2256_v2 = vsel %vm2172_vm5, %v2247_v63, -inf }
0x2334   :  { %v2259_v29 = vmax.f32 %v2256_v2, %v2258_v26 }
0x2336   :  { %v2260_v53 = vrot.slane %v2259_v29, 4 }
0x2338   :  { %v2261_v32 = vmax.f32 %v2259_v29, %v2260_v53 }
0x233a   :  { %v2262_v35 = vrot.slane %v2261_v32, 2 }
0x233c   :  { %v2263_v52 = vmax.f32 %v2261_v32, %v2262_v35 }
0x233e   :  { %v2264_v14 = vrot.slane %v2263_v52, 1 }
0x2340   :  { %v2265_v36 = vmax.f32 %v2263_v52, %v2264_v14 }
0x2342   :  { %v2266_v5 = vsub.f32 %v2247_v63, %v2265_v36  ;;  %v2267_v38 = vsub.f32 %v6432_v21, %v2265_v36 }
0x2344   :  { %v2268_v42 = vmul.f32 1.442695, %v2266_v5  ;;  %v2270_v47 = vmul.f32 1.442695, %v2267_v38  ;;  %v2437_v38 = vld [vmem:[%s9282_s1 + $0x8] sm:$0xff] }
0x2346   :  { %7805 = vpow2.f32 %v2268_v42 }
0x2347   :  { %7807 = vpow2.f32 %v2270_v47 }
0x2350   :  { %v7806_v62 = vpop.eup %7805 }
0x2351   :  { %v7808_v6 = vpop.eup %7807  ;;  %v2272_v12 = vsel %vm2172_vm5, %v7806_v62, 0.0 }
0x2352   :  { %v2273_v41 = vsel %vm2257_vm9, %v7808_v6, 0.0 }
0x2353   :  { %v2274_v56 = vadd.f32 %v2273_v41, %v2272_v12 }
0x2354   :  { %v6463_v51 = vpop.f32.mrb[22].mxu0 }
0x2355   :  { %v2275_v43 = vrot.slane %v2274_v56, 4  ;;  %v2607_v28 = vpop.f32.mrb[23].mxu0 }
0x2356   :  { %v7702_v27 = vpack.i.bf16 %v6463_v51, %v2607_v28  ;;  %v8693_v30 = vpack.c.bf16 %v6463_v51, %v2607_v28 }
0x2357   :  { %v2276_v59 = vadd.f32 %v2275_v43, %v2274_v56 }
0x2359   :  { %v2277_v61 = vrot.slane %v2276_v59, 2 }
0x235b   :  { %v2278_v20 = vadd.f32 %v2277_v61, %v2276_v59 }
0x235d   :  { %v2279_v55 = vrot.slane %v2278_v20, 1 }
0x235f   :  { %v2280_v54 = vadd.f32 %v2279_v55, %v2278_v20 }
0x2361   :  { %7809 = vrcp.f32 %v2280_v54 }
0x236b   :  { %v7810_v58 = vpop.eup %7809 }
0x236c   :  { %v2282_v1 = vmul.f32 %v7810_v58, %v7806_v62  ;;  %v2283_v40 = vmul.f32 %v7810_v58, %v7808_v6 }
0x236e   :  { %6437 = vmatprep.mubr.msk.f32.mxu1 %vm2172_vm5, %v2282_v1 }
0x236f   :  { %6438 = vmatmul.mubr.msk.f32.vlgmr.msra.gmra.mrb[12].mxu1 %vm2172_vm5, %v2283_v40 }
0x2370   :  { %6444 = vmatprep.mubr.msk.f32.mxu1 %vm2172_vm5, %v2436_v15 }
0x2442   :  { %v6439_v4 = vpop.f32.mrb[12].mxu1 }
0x2443   :  { %v2363_v37 = vpop.f32.mrb[13].mxu1  ;;  %v2373_v25 = vmax.f32 %v6439_v4, 0.0 }
0x2444   :  { %v2372_v7 = vmax.f32 %v2363_v37, 0.0 }
0x2446   :  { %2374 = vxpose.xlu0.b32.start [1/2] (short) (narrow) %v2372_v7, 16 }
0x244a   :  { %2375 = vxpose.xlu0.b32.end [2/2] (short) (narrow) %v2373_v25, 16 }
0x24c6   :  { %v2390_v8 = vpop.trf.xlu0 }
0x24c7   :  { %v2406_v49 = vadd.f32 %v2390_v8, %v2372_v7 }
0x24c9   :  { %v2408_v9 = vmul.f32 0.5, %v2406_v49 }
0x24ca   :  { %v2391_v33 = vpop.trf.xlu0 }
0x24cb   :  { %v2407_v34 = vadd.f32 %v2391_v33, %v2373_v25  ;;  %v2410_v39 = vsel %vm2172_vm5, %v2408_v9, 0.0 }
0x24cc   :  { %2419 = vadd.xlane.f32.xlu1 %v2410_v39 }
0x24cd   :  { %v2409_v10 = vmul.f32 0.5, %v2407_v34 }
0x24cf   :  { %v2411_v11 = vsel %vm2257_vm9, %v2409_v10, 0.0 }
0x24d0   :  { %2421 = vadd.xlane.f32.xlu0 %v2411_v11  ;;  %v2412_v13 = vadd.f32 %v2411_v11, %v2410_v39 }
0x24d2   :  { %v2413_v60 = vrot.slane %v2412_v13, 4 }
0x24d4   :  { %v2414_v18 = vadd.f32 %v2413_v60, %v2412_v13 }
0x24d6   :  { %v2415_v50 = vrot.slane %v2414_v18, 2 }
0x24d8   :  { %v2416_v19 = vadd.f32 %v2415_v50, %v2414_v18 }
0x24da   :  { %v2417_v48 = vrot.slane %v2416_v19, 1 }
0x24dc   :  { %v2418_v57 = vadd.f32 %v2417_v48, %v2416_v19 }
0x24dd   :  { %2618 = vrot.lane.b32.xlu1 %v2607_v28, %s7885_s11 }
0x24de   :  { %vm2423_vm12 = vcmp.gt.f32.partialorder %v2418_v57, 0.0 }
0x24e1   :  { %2620 = vrot.lane.b32.xlu1 %v6463_v51, %s7885_s11 }
0x24e5   :  { %7703 = vrot.lane.b32.xlu1 %v7702_v27, %s7882_s20 }
0x2559   :  { %v2420_v22 = vpop.xlane.xlu1 %2419 }
0x255a   :  { %7811 = vrsqrt.f32 %v2420_v22  ;;  %vm2426_vm10 = vcmp.gt.f32.partialorder %v2420_v22, 0.0 }
0x255b   :  { %7813 = vrsqrt.f32 %v2418_v57 }
0x255d   :  { %v2422_v23 = vpop.xlane.xlu0 %2421  ;;  %v2619_v26 = vpop.permute.xlu1 %2618 }
0x255e   :  { %7815 = vrsqrt.f32 %v2422_v23  ;;  %vm2427_vm11 = vcmp.gt.f32.partialorder %v2422_v23, 0.0 }
0x2561   :  { %v2621_v36 = vpop.permute.xlu1 %2620 }
0x2564   :  { %v7812_v24 = vpop.eup %7811 }
0x2565   :  { %v2430_v21 = vsel %vm2426_vm10, %v7812_v24, 0.0  ;;  %v7814_v63 = vpop.eup %7813  ;;  %v7704_v42 = vpop.permute.xlu1 %7703 }
0x2566   :  { %v2432_v29 = vmul.f32 %v2430_v21, %v2408_v9  ;;  %v2425_v35 = vsel %vm2423_vm12, %v7814_v63, 0.0  ;;  %v7706_v47 = vunpack.i.h.bf16 %v7704_v42  ;;  %v7705_v62 = vunpack.i.l.bf16 %v7704_v42 }
0x2568   :  { %v7816_v2 = vpop.eup %7815  ;;  %v2434_v52 = vmul.f32 %v2432_v29, %v2425_v35  ;;  %v7196_v6 = vpack.c.bf16 %v7706_v47, %v7705_v62  ;;  %v2884_v29 = vld [vmem:[%s9282_s1 + $0x10] sm:$0xff] }
0x2569   :  { %v2431_v53 = vsel %vm2427_vm11, %v7816_v2, 0.0 }
0x256a   :  { %v2433_v32 = vmul.f32 %v2431_v53, %v2409_v10 }
0x256c   :  { %v2435_v14 = vmul.f32 %v2433_v32, %v2425_v35 }
0x256e   :  { %v7172_v5 = vpack.c.bf16 %v2435_v14, %v2434_v52 }
0x2570   :  { %7174 = vmatprep.subr.msk.bf16.mxu1 %vm8663_vm8, %v7172_v5 }
0x2571   :  { %7177 = vmatpush3.bf16.msk.msra.mxu1 %vm8663_vm8, %v7172_v5 }
0x2572   :  { %7192 = vmatprep.subr.msk.bf16.mxu1 %vm8581_vm6, %v8693_v30 }
0x2574   :  { %6445 = vmatmul.mubr.msk.f32.vlgmr.msra.gmra.mrb[14].mxu1 %vm2172_vm5, %v2437_v38 }
0x2575   :  { %6468 = vmatprep.mubr.msk.f32.mxu1 %vm2172_vm5, %v2619_v26 }
0x257a   :  { %7195 = vmatpush3.bf16.xpose.msk.msra.mxu1 %vm8581_vm6, %v8693_v30 }
0x257b   :  { %7198 = vmatprep.subr.msk.bf16.mxu1 %vm8663_vm8, %v7196_v6 }
0x2581   :  { %6469 = vmatmul.mubr.msk.f32.vlgmr.msra.gmra.mrb[16].mxu1 %vm2172_vm5, %v2621_v36 }
0x2582   :  { %7201 = vmatpush3.bf16.msk.msra.mxu1 %vm8663_vm8, %v7196_v6 }
0x2647   :  { %v8730_v12 = vpop.f32.mrb[14].mxu1 }
0x2648   :  { %v3079_v41 = vrot.slane %v8730_v12, 7  ;;  %v8733_v56 = vpop.f32.mrb[15].mxu1 }
0x2649   :  { %v3078_v51 = vrot.slane %v8733_v56, 7  ;;  %6489 = vmatprep.mubr.msk.f32.mxu0 %vm2172_vm5, %v8733_v56 }
0x264a   :  { %6490 = vmatmul.mubr.msk.f32.vlgmr.msra.gmra.mrb[24].mxu0 %vm2172_vm5, %v8730_v12 }
0x264b   :  { %v8745_v46 = vsel %vm3077_vm13, %v3078_v51, %v3079_v41 }
0x2654   :  { %v6470_v43 = vpop.f32.mrb[16].mxu1 }
0x2655   :  { %v2706_v28 = vsel %vm2257_vm9, %v6470_v43, -inf  ;;  %v2696_v27 = vpop.f32.mrb[17].mxu1 }
0x2656   :  { %v2705_v30 = vsel %vm2172_vm5, %v2696_v27, -inf }
0x2657   :  { %v2707_v59 = vmax.f32 %v2705_v30, %v2706_v28 }
0x2659   :  { %v2708_v61 = vrot.slane %v2707_v59, 4 }
0x265b   :  { %v2709_v20 = vmax.f32 %v2707_v59, %v2708_v61 }
0x265d   :  { %v2710_v55 = vrot.slane %v2709_v20, 2 }
0x265f   :  { %v2711_v54 = vmax.f32 %v2709_v20, %v2710_v55  ;;  %v2885_v55 = vld [vmem:[%s9282_s1 + $0x18] sm:$0xff] }
0x2661   :  { %v2712_v58 = vrot.slane %v2711_v54, 1 }
0x2663   :  { %v2713_v1 = vmax.f32 %v2711_v54, %v2712_v58  ;;  %v3107_v54 = vld [vmem:[#allocation3] sm:$0xff]  ;;  %v3108_v58 = vld [vmem:[#allocation3 + $0x8] sm:$0xf] }
0x2665   :  { %v2714_v40 = vsub.f32 %v2696_v27, %v2713_v1  ;;  %v2715_v4 = vsub.f32 %v6470_v43, %v2713_v1  ;;  %v7214_v1 = vpack.c.bf16 %v3108_v58, %v3107_v54  ;;  %v3348_v58 = vld [vmem:[#allocation3 + $0x48] sm:$0xff] }
0x2667   :  { %v2716_v37 = vmul.f32 1.442695, %v2714_v40  ;;  %v2718_v7 = vmul.f32 1.442695, %v2715_v4  ;;  %7216 = vmatprep.subr.msk.bf16.mxu0 %vm8663_vm8, %v7214_v1  ;;  %v3457_v40 = vld [vmem:[#allocation3 + $0xb0] sm:$0xff] }
0x2668   :  { %7219 = vmatpush3.bf16.msk.msra.mxu0 %vm8663_vm8, %v7214_v1  ;;  %v3458_v4 = vld [vmem:[#allocation3 + $0xb8] sm:$0xf]  ;;  %v3349_v1 = vld [vmem:[#allocation3 + $0x50] sm:$0xff] }
0x2669   :  { %7817 = vpow2.f32 %v2716_v37  ;;  %v7252_v37 = vpack.c.bf16 %v3458_v4, %v3457_v40 }
0x266a   :  { %7819 = vpow2.f32 %v2718_v7  ;;  %v3217_v7 = vld [vmem:[#allocation3 + $0x68] sm:$0xff] }
0x266b   :  { %7254 = vmatprep.subr.msk.bf16.mxu0 %vm8663_vm8, %v7252_v37 }
0x2673   :  { %v7818_v25 = vpop.eup %7817 }
0x2674   :  { %v7820_v8 = vpop.eup %7819  ;;  %v2720_v49 = vsel %vm2172_vm5, %v7818_v25, 0.0 }
0x2675   :  { %v2721_v9 = vsel %vm2257_vm9, %v7820_v8, 0.0 }
0x2676   :  { %v2722_v33 = vadd.f32 %v2721_v9, %v2720_v49  ;;  %v3220_v9 = vld [vmem:[#allocation3 + $0x80] sm:$0xff] }
0x2678   :  { %v2723_v34 = vrot.slane %v2722_v33, 4 }
0x267a   :  { %v2724_v39 = vadd.f32 %v2723_v34, %v2722_v33  ;;  %v3221_v34 = vld [vmem:[#allocation3 + $0x88] sm:$0xff] }
0x267c   :  { %v2725_v10 = vrot.slane %v2724_v39, 2 }
0x267e   :  { %v2726_v11 = vadd.f32 %v2725_v10, %v2724_v39  ;;  %v3222_v39 = vld [vmem:[#allocation3 + $0x90] sm:$0xff] }
0x267f   :  { %v7228_v10 = vpack.c.bf16 %v3222_v39, %v3221_v34  ;;  %v3350_v34 = vld [vmem:[#allocation3 + $0x58] sm:$0xff]  ;;  %v3351_v39 = vld [vmem:[#allocation3 + $0x60] sm:$0xff] }
0x2680   :  { %v2727_v13 = vrot.slane %v2726_v11, 1 }
0x2682   :  { %v2728_v15 = vadd.f32 %v2727_v13, %v2726_v11  ;;  %v8774_v11 = vadd.s32 8, %v8088_v45  ;;  %v8777_v13 = vand.u32 7, %v8088_v45 }
0x2684   :  { %7821 = vrcp.f32 %v2728_v15  ;;  %v8780_v15 = vadd.s32 16, %v8088_v45  ;;  %vm3099_vm2 = vcmp.ge.s32.totalorder %v8777_v13, 1  ;;  %vm3683_vm10 = vcmp.ge.s32.totalorder %v8777_v13, 2 }
0x268e   :  { %v7822_v3 = vpop.eup %7821 }
0x268f   :  { %v2730_v16 = vmul.f32 %v7822_v3, %v7818_v25  ;;  %v2731_v17 = vmul.f32 %v7822_v3, %v7820_v8  ;;  %v3218_v25 = vld [vmem:[#allocation3 + $0x70] sm:$0xff]  ;;  %v3219_v8 = vld [vmem:[#allocation3 + $0x78] sm:$0xff]  ;;  %v8783_v3 = vand.u32 7, %v8774_v11 }
0x2690   :  { %v7220_v49 = vpack.c.bf16 %v3218_v25, %v3217_v7  ;;  %v7224_v33 = vpack.c.bf16 %v3220_v9, %v3219_v8  ;;  %v7244_v9 = vpack.c.bf16 %v3349_v1, %v3348_v58  ;;  %v5947_v58 = vld [vmem:[#allocation3 + $0xc0] ss:$0 sm:$0xff] }
0x2691   :  { %6475 = vmatprep.mubr.msk.f32.mxu1 %vm2172_vm5, %v2730_v16  ;;  %v8786_v16 = vadd.s32 24, %v8088_v45  ;;  %vm3100_vm3 = vcmp.ge.s32.totalorder %v8783_v3, 1  ;;  %vm3684_vm11 = vcmp.ge.s32.totalorder %v8783_v3, 2 }
0x2692   :  { %6476 = vmatmul.mubr.msk.f32.vlgmr.msra.gmra.mrb[18].mxu1 %vm2172_vm5, %v2731_v17 }
0x2693   :  { %6482 = vmatprep.mubr.msk.f32.mxu1 %vm2172_vm5, %v2884_v29  ;;  %v3345_v29 = vld [vmem:[#allocation3 + $0x30] sm:$0xff] }
0x2765   :  { %v6477_v60 = vpop.f32.mrb[18].mxu1 }
0x2766   :  { %v2811_v18 = vpop.f32.mrb[19].mxu1  ;;  %v2821_v19 = vmax.f32 %v6477_v60, 0.0  ;;  %v3089_v60 = vsel %vm3077_vm13, 0.0, %v3078_v51 }
0x2767   :  { %v2820_v50 = vmax.f32 %v2811_v18, 0.0  ;;  %v8793_v18 = vand.u32 7, %v8780_v15 }
0x2769   :  { %2822 = vxpose.xlu1.b32.start [1/2] (short) (narrow) %v2820_v50, 16  ;;  %vm3101_vm4 = vcmp.ge.s32.totalorder %v8793_v18, 1  ;;  %vm3685_vm12 = vcmp.ge.s32.totalorder %v8793_v18, 2 }
0x276d   :  { %2823 = vxpose.xlu1.b32.end [2/2] (short) (narrow) %v2821_v19, 16 }
0x27e9   :  { %v2838_v48 = vpop.trf.xlu1 }
0x27ea   :  { %v2854_v57 = vadd.f32 %v2838_v48, %v2820_v50 }
0x27ec   :  { %v2856_v22 = vmul.f32 0.5, %v2854_v57  ;;  %v3103_v57 = vsel %vm3099_vm2, %v3089_v60, 0.0 }
0x27ed   :  { %v2839_v23 = vpop.trf.xlu1 }
0x27ee   :  { %v2855_v24 = vadd.f32 %v2839_v23, %v2821_v19  ;;  %v2858_v21 = vsel %vm2172_vm5, %v2856_v22, 0.0 }
0x27ef   :  { %2867 = vadd.xlane.f32.xlu0 %v2858_v21 }
0x27f0   :  { %v2857_v26 = vmul.f32 0.5, %v2855_v24  ;;  %v3104_v24 = vsel %vm3100_vm3, %v8745_v46, 0.0  ;;  %v3223_v46 = vld [vmem:[#allocation3 + $0x98] sm:$0xff] }
0x27f2   :  { %v2859_v63 = vsel %vm2257_vm9, %v2857_v26, 0.0  ;;  %vm3670_vm9 = vcmask 1041408  }
0x27f3   :  { %2869 = vadd.xlane.f32.xlu0 %v2859_v63  ;;  %v2860_v2 = vadd.f32 %v2859_v63, %v2858_v21 }
0x27f5   :  { %v2861_v53 = vrot.slane %v2860_v2, 4 }
0x27f7   :  { %v2862_v32 = vadd.f32 %v2861_v53, %v2860_v2  ;;  %v3344_v2 = vld [vmem:[#allocation3 + $0x28] sm:$0xff] }
0x27f8   :  { %v7236_v53 = vpack.c.bf16 %v3345_v29, %v3344_v2  ;;  %v3691_v2 = vld [vmem:[#allocation3 + $0xc8] sm:$0xff]  ;;  %v3692_v29 = vld [vmem:[#allocation3 + $0xd0] sm:$0xff] }
0x27f9   :  { %v2863_v35 = vrot.slane %v2862_v32, 2 }
0x27fb   :  { %v2864_v52 = vadd.f32 %v2863_v35, %v2862_v32  ;;  %v3560_v32 = vld [vmem:[#allocation3 + $0x108] sm:$0xff]  ;;  %v3561_v35 = vld [vmem:[#allocation3 + $0x110] sm:$0xff] }
0x27fd   :  { %v2865_v14 = vrot.slane %v2864_v52, 1 }
0x27ff   :  { %v2866_v36 = vadd.f32 %v2865_v14, %v2864_v52  ;;  %v3562_v52 = vld [vmem:[#allocation3 + $0x118] sm:$0xff]  ;;  %v3563_v14 = vld [vmem:[#allocation3 + $0x120] sm:$0xff] }
0x2801   :  { %vm2871_vm1 = vcmp.gt.f32.partialorder %v2866_v36, 0.0 }
0x287c   :  { %v2868_v5 = vpop.xlane.xlu0 %2867 }
0x287d   :  { %7823 = vrsqrt.f32 %v2868_v5  ;;  %vm2874_vm14 = vcmp.gt.f32.partialorder %v2868_v5, 0.0 }
0x287e   :  { %7825 = vrsqrt.f32 %v2866_v36  ;;  %v7262_v36 = vpack.c.bf16 %v3563_v14, %v3562_v52  ;;  %v3806_v52 = vld [vmem:[#allocation3 + $0x1e0] sm:$0xff]  ;;  %v3807_v14 = vld [vmem:[#allocation3 + $0x1e8] sm:$0xff] }
0x2880   :  { %v2870_v38 = vpop.xlane.xlu0 %2869 }
0x2881   :  { %7827 = vrsqrt.f32 %v2870_v38  ;;  %vm2875_vm15 = vcmp.gt.f32.partialorder %v2870_v38, 0.0 }
0x2887   :  { %v7824_v42 = vpop.eup %7823 }
0x2888   :  { %v2878_v47 = vsel %vm2874_vm14, %v7824_v42, 0.0  ;;  %v7826_v62 = vpop.eup %7825  ;;  %vm4267_vm14 = vcmp.ge.s32.totalorder %v8777_v13, 4 }
0x2889   :  { %v2880_v43 = vmul.f32 %v2878_v47, %v2856_v22  ;;  %v2873_v30 = vsel %vm2871_vm1, %v7826_v62, 0.0  ;;  %v8801_v22 = vand.u32 7, %v8786_v16  ;;  %v3346_v62 = vld [vmem:[#allocation3 + $0x38] sm:$0xff]  ;;  %vm4269_vm1 = vcmp.ge.s32.totalorder %v8793_v18, 4 }
0x288b   :  { %v7828_v6 = vpop.eup %7827  ;;  %v2882_v59 = vmul.f32 %v2880_v43, %v2873_v30  ;;  %vm3102_vm6 = vcmp.ge.s32.totalorder %v8801_v22, 1 }
0x288c   :  { %v2879_v28 = vsel %vm2875_vm15, %v7828_v6, 0.0  ;;  %v3347_v6 = vld [vmem:[#allocation3 + $0x40] sm:$0xff]  ;;  %vm4268_vm15 = vcmp.ge.s32.totalorder %v8783_v3, 4 }
0x288d   :  { %v2881_v27 = vmul.f32 %v2879_v28, %v2857_v26  ;;  %v3224_v26 = vld [vmem:[#allocation3 + $0xa0] sm:$0xff] }
0x288e   :  { %v7232_v63 = vpack.c.bf16 %v3224_v26, %v3223_v46  ;;  %v3566_v46 = vld [vmem:[#allocation3 + $0x138] sm:$0xff]  ;;  %v3567_v26 = vld [vmem:[#allocation3 + $0x140] sm:$0xff] }
0x288f   :  { %v2883_v61 = vmul.f32 %v2881_v27, %v2873_v30 }
0x2891   :  { %v7202_v20 = vpack.c.bf16 %v2883_v61, %v2882_v59 }
0x2893   :  { %7204 = vmatprep.subr.msk.bf16.mxu1 %vm8663_vm8, %v7202_v20 }
0x2894   :  { %7207 = vmatpush3.bf16.msk.msra.mxu1 %vm8663_vm8, %v7202_v20  ;;  %v7240_v20 = vpack.c.bf16 %v3347_v6, %v3346_v62  ;;  %v3812_v6 = vld [vmem:[#allocation3 + $0x210] sm:$0xff] }
0x2895   :  { %7221 = vmatprep.subr.bf16.mxu1 %v7220_v49 }
0x2897   :  { %6483 = vmatmul.mubr.msk.f32.vlgmr.msra.gmra.mrb[20].mxu1 %vm2172_vm5, %v2885_v55 }
0x2898   :  { %7223 = vmatpush3.bf16.msra.mxu1 %v7220_v49 }
0x2899   :  { %7225 = vmatprep.subr.bf16.mxu1 %v7224_v33 }
0x289c   :  { %7227 = vmatpush3.bf16.msra.mxu1 %v7224_v33 }
0x289d   :  { %7229 = vmatprep.subr.bf16.mxu1 %v7228_v10 }
0x28a0   :  { %7231 = vmatpush3.bf16.msra.mxu1 %v7228_v10 }
0x28a1   :  { %7233 = vmatprep.subr.bf16.mxu1 %v7232_v63 }
0x28a4   :  { %7235 = vmatpush3.bf16.msra.mxu1 %v7232_v63  ;;  %v7270_v63 = vpack.c.bf16 %v3567_v26, %v3566_v46 }
0x28a5   :  { %7237 = vmatprep.subr.bf16.mxu1 %v7236_v53 }
0x296a   :  { %v6484_v17 = vpop.f32.mrb[20].mxu1 }
0x296b   :  { %v3083_v50 = vrot.slane %v6484_v17, 7  ;;  %v2961_v19 = vpop.f32.mrb[21].mxu1 }
0x296c   :  { %v3081_v48 = vrot.slane %v2961_v19, 7  ;;  %6492 = vmatprep.mubr.msk.f32.mxu0 %vm2172_vm5, %v2961_v19 }
0x296d   :  { %6493 = vmatmul.mubr.msk.f32.gmra.mrb[26].mxu0 %vm2172_vm5, %v6484_v17 }
0x296e   :  { %6499 = vmatprep.mubr.msk.f32.mxu0 %vm2172_vm5, %v3103_v57  ;;  %v3082_v51 = vsel %vm3077_vm13, %v3079_v41, %v3081_v48  ;;  %v3084_v23 = vsel %vm3077_vm13, %v3081_v48, %v3083_v50  ;;  %v7248_v48 = vpack.c.bf16 %v3351_v39, %v3350_v34 }
0x296f   :  { %v3105_v21 = vsel %vm3101_vm4, %v3082_v51, 0.0  ;;  %v3106_v41 = vsel %vm3102_vm6, %v3084_v23, 0.0 }
0x2971   :  { %6500 = vmatmul.mubr.msk.f32.vlgmr.msra.gmra.mrb[24].mxu0 %vm2172_vm5, %v3104_v24  ;;  %v3564_v24 = vld [vmem:[#allocation3 + $0x128] sm:$0xff] }
0x2972   :  { %6502 = vmatprep.mubr.msk.f32.mxu0 %vm2172_vm5, %v3105_v21  ;;  %7257 = vmatpush3.bf16.msk.msra.mxu0 %vm8663_vm8, %v7252_v37  ;;  %v3565_v21 = vld [vmem:[#allocation3 + $0x130] sm:$0xff] }
0x2975   :  { %6503 = vmatmul.mubr.msk.f32.gmra.mrb[26].mxu0 %vm2172_vm5, %v3106_v41  ;;  %v7266_v41 = vpack.c.bf16 %v3565_v21, %v3564_v24 }
0x2976   :  { %6553 = vmatprep.mubr.msk.f32.mxu0 %vm2172_vm5, %v8733_v56  ;;  %v7258_v56 = vpack.c.bf16 %v3561_v35, %v3560_v32  ;;  %v3804_v32 = vld [vmem:[#allocation3 + $0x1d0] sm:$0xff]  ;;  %v3805_v35 = vld [vmem:[#allocation3 + $0x1d8] sm:$0xff] }
0x2978   :  { %7259 = vmatprep.subr.bf16.mxu0 %v7258_v56 }
0x2979   :  { %6554 = vmatmul.mubr.msk.f32.vlgmr.msra.gmra.mrb[28].mxu0 %vm2172_vm5, %v8730_v12  ;;  %v5927_v12 = vld [vmem:[#allocation3 + $0x20] ss:$0 sm:$0xff] }
0x297a   :  { %6556 = vmatprep.mubr.msk.f32.mxu0 %vm2172_vm5, %v2961_v19  ;;  %7261 = vmatpush3.bf16.msra.mxu0 %v7258_v56  ;;  %v7290_v56 = vpack.c.bf16 %v3805_v35, %v3804_v32  ;;  %v3695_v32 = vld [vmem:[#allocation3 + $0xe8] sm:$0xff]  ;;  %v3696_v35 = vld [vmem:[#allocation3 + $0xf0] sm:$0xff] }
0x297b   :  { %7263 = vmatprep.subr.bf16.mxu0 %v7262_v36 }
0x297d   :  { %6557 = vmatmul.mubr.msk.f32.gmra.mrb[30].mxu0 %vm2172_vm5, %v6484_v17 }
0x297e   :  { %7265 = vmatpush3.bf16.msra.mxu0 %v7262_v36  ;;  %v7294_v36 = vpack.c.bf16 %v3807_v14, %v3806_v52 }
0x297f   :  { %7267 = vmatprep.subr.bf16.mxu0 %v7266_v41 }
0x2982   :  { %7269 = vmatpush3.bf16.msra.mxu0 %v7266_v41 }
0x2983   :  { %7271 = vmatprep.subr.bf16.mxu0 %v7270_v63 }
0x2986   :  { %7273 = vmatpush3.bf16.msra.mxu0 %v7270_v63 }
0x2a44   :  { %v6501_v5 = vpop.f32.mrb[24].mxu0 }
0x2a45   :  { %v7634_v38 = vadd.f32 %v6501_v5, %v5927_v12  ;;  %v3190_v42 = vpop.f32.mrb[25].mxu0  ;;  %v3809_v5 = vld [vmem:[#allocation3 + $0x1f8] sm:$0xff] }
0x2a46   :  { %v7635_v47 = vadd.f32 %v5927_v12, %v3190_v42  ;;  %v3810_v42 = vld [vmem:[#allocation3 + $0x200] sm:$0xff] }
0x2a47   :  { %v3214_v43 = vmax.f32 %v7634_v38, 0.0 }
0x2a48   :  { %v3213_v28 = vmax.f32 %v7635_v47, 0.0  ;;  %v6504_v27 = vpop.f32.mrb[26].mxu0  ;;  %v3811_v47 = vld [vmem:[#allocation3 + $0x208] sm:$0xff] }
0x2a49   :  { %v3329_v30 = vrot.slane %v3214_v43, 7  ;;  %v7636_v59 = vadd.f32 %v6504_v27, %v5927_v12  ;;  %v3200_v61 = vpop.f32.mrb[27].mxu0  ;;  %v7302_v62 = vpack.c.bf16 %v3811_v47, %v3810_v42  ;;  %v3814_v27 = vld [vmem:[#allocation3 + $0x220] sm:$0xff] }
0x2a4a   :  { %v3328_v55 = vrot.slane %v3213_v28, 7  ;;  %v7637_v54 = vadd.f32 %v5927_v12, %v3200_v61  ;;  %6521 = vmatprep.mubr.msk.f32.mxu1 %vm3230_vm7, %v3213_v28  ;;  %v3808_v12 = vld [vmem:[#allocation3 + $0x1f0] sm:$0xff] }
0x2a4b   :  { %v3216_v40 = vmax.f32 %v7636_v59, 0.0  ;;  %6522 = vmatmul.mubr.msk.f32.vlgmr.msra.gmra.mrb[22].mxu1 %vm3230_vm7, %v3214_v43  ;;  %v7298_v38 = vpack.c.bf16 %v3809_v5, %v3808_v12  ;;  %v3813_v43 = vld [vmem:[#allocation3 + $0x218] sm:$0xff]  ;;  %v3816_v61 = vld [vmem:[#allocation3 + $0x230] sm:$0xff] }
0x2a4c   :  { %v3330_v4 = vsel %vm3077_vm13, %v3328_v55, %v3329_v30  ;;  %v3215_v37 = vmax.f32 %v7637_v54, 0.0  ;;  %7239 = vmatpush3.bf16.msra.mxu1 %v7236_v53  ;;  %v8831_v7 = vpop.f32.mrb[28].mxu0  ;;  %v3339_v25 = vsel %vm3077_vm13, 0.0, %v3328_v55  ;;  %v8856_v53 = vpack.c.bf16 %v3692_v29, %v3691_v2  ;;  %v5938_v54 = vld [vmem:[#allocation3 + $0xa8] ss:$0 sm:$0xff]  ;;  %v3697_v5 = vld [vmem:[#allocation3 + $0xf8] sm:$0xff] }
0x2a4d   :  { %v3333_v8 = vrot.slane %v3216_v40, 7  ;;  %v8834_v49 = vpop.f32.mrb[29].mxu0  ;;  %7241 = vmatprep.subr.bf16.mxu1 %v7240_v20  ;;  %v3340_v10 = vsel %vm3099_vm2, %v3339_v25, 0.0  ;;  %v3341_v57 = vsel %vm3100_vm3, %v3330_v4, 0.0  ;;  %v7306_v28 = vpack.c.bf16 %v3813_v43, %v3812_v6  ;;  %v4039_v6 = vld [vmem:[#allocation3 + $0x258] sm:$0xff]  ;;  %v4040_v43 = vld [vmem:[#allocation3 + $0x260] sm:$0xff] }
0x2a4e   :  { %v3331_v33 = vrot.slane %v3215_v37, 7  ;;  %6524 = vmatprep.mubr.msk.f32.mxu1 %vm3230_vm7, %v3215_v37  ;;  %7275 = vmatprep.subr.bf16.mxu0 %v8856_v53  ;;  %v3539_v25 = vadd.f32 %v8831_v7, %v5947_v58  ;;  %vm4270_vm2 = vcmp.ge.s32.totalorder %v8801_v22, 4 }
0x2a4f   :  { %6525 = vmatmul.mubr.msk.f32.gmra.mrb[24].mxu1 %vm3230_vm7, %v3216_v40 }
0x2a50   :  { %7243 = vmatpush3.bf16.msra.mxu1 %v7240_v20  ;;  %6543 = vmatprep.mubr.msk.f32.mxu1 %vm3230_vm7, %v3340_v10  ;;  %v8841_v17 = vpop.f32.mrb[30].mxu0  ;;  %v3332_v60 = vsel %vm3077_vm13, %v3329_v30, %v3331_v33  ;;  %v3334_v50 = vsel %vm3077_vm13, %v3331_v33, %v3333_v8  ;;  %v3815_v30 = vld [vmem:[#allocation3 + $0x228] sm:$0xff]  ;;  %v3817_v20 = vld [vmem:[#allocation3 + $0x238] sm:$0xff]  ;;  %vm3686_vm13 = vcmp.ge.s32.totalorder %v8801_v22, 2 }
0x2a51   :  { %v8845_v19 = vpop.f32.mrb[31].mxu0  ;;  %7245 = vmatprep.subr.bf16.mxu1 %v7244_v9  ;;  %v3342_v51 = vsel %vm3101_vm4, %v3332_v60, 0.0  ;;  %v3343_v23 = vsel %vm3102_vm6, %v3334_v50, 0.0  ;;  %v7310_v59 = vpack.c.bf16 %v3815_v30, %v3814_v27  ;;  %v7314_v55 = vpack.c.bf16 %v3817_v20, %v3816_v61  ;;  %v4041_v27 = vld [vmem:[#allocation3 + $0x268] sm:$0xff]  ;;  %v4042_v30 = vld [vmem:[#allocation3 + $0x270] sm:$0xff]  ;;  %v4043_v20 = vld [vmem:[#allocation3 + $0x278] sm:$0xff] }
0x2a52   :  { %v3544_v41 = vadd.f32 %v5947_v58, %v8845_v19 }
0x2a54   :  { %7247 = vmatpush3.bf16.msra.mxu1 %v7244_v9  ;;  %v3534_v9 = vadd.f32 %v5947_v58, %v8834_v49 }
0x2a55   :  { %7249 = vmatprep.subr.bf16.mxu1 %v7248_v48 }
0x2a58   :  { %7251 = vmatpush3.bf16.msra.mxu1 %v7248_v48 }
0x2a59   :  { %7291 = vmatprep.subr.bf16.mxu1 %v7290_v56 }
0x2a5b   :  { %6544 = vmatmul.mubr.msk.f32.vlgmr.msra.gmra.mrb[22].mxu1 %vm3230_vm7, %v3341_v57  ;;  %v3693_v57 = vld [vmem:[#allocation3 + $0xd8] sm:$0xff] }
0x2a5c   :  { %6546 = vmatprep.mubr.msk.f32.mxu1 %vm3230_vm7, %v3342_v51  ;;  %7293 = vmatpush3.bf16.msra.mxu1 %v7290_v56  ;;  %v3694_v51 = vld [vmem:[#allocation3 + $0xe0] sm:$0xff] }
0x2a5d   :  { %7295 = vmatprep.subr.bf16.mxu1 %v7294_v36  ;;  %v7278_v63 = vpack.c.bf16 %v3694_v51, %v3693_v57  ;;  %v4148_v57 = vld [vmem:[#allocation3 + $0x338] sm:$0xff] }
0x2a5f   :  { %6547 = vmatmul.mubr.msk.f32.gmra.mrb[24].mxu1 %vm3230_vm7, %v3343_v23  ;;  %v3549_v23 = vadd.f32 %v8841_v17, %v5947_v58 }
0x2a60   :  { %7297 = vmatpush3.bf16.msra.mxu1 %v7294_v36  ;;  %v7282_v36 = vpack.c.bf16 %v3696_v35, %v3695_v32  ;;  %v5953_v35 = vld [vmem:[#allocation3 + $0x148] ss:$0 sm:$0xff] }
0x2a61   :  { %7299 = vmatprep.subr.bf16.mxu1 %v7298_v38 }
0x2a64   :  { %7301 = vmatpush3.bf16.msra.mxu1 %v7298_v38  ;;  %v3698_v38 = vld [vmem:[#allocation3 + $0x100] sm:$0xff] }
0x2a65   :  { %7303 = vmatprep.subr.bf16.mxu1 %v7302_v62 }
0x2a68   :  { %7305 = vmatpush3.bf16.msra.mxu1 %v7302_v62  ;;  %v7286_v62 = vpack.c.bf16 %v3698_v38, %v3697_v5 }
0x2a69   :  { %7307 = vmatprep.subr.bf16.mxu1 %v7306_v28 }
0x2a6c   :  { %7309 = vmatpush3.bf16.msra.mxu1 %v7306_v28  ;;  %v7354_v28 = vpack.c.bf16 %v4040_v43, %v4039_v6 }
0x2a6d   :  { %7311 = vmatprep.subr.bf16.mxu1 %v7310_v59 }
0x2a70   :  { %7313 = vmatpush3.bf16.msra.mxu1 %v7310_v59  ;;  %v7358_v59 = vpack.c.bf16 %v4042_v30, %v4041_v27  ;;  %v3935_v27 = vld [vmem:[#allocation3 + $0x178] sm:$0xff] }
0x2a71   :  { %7315 = vmatprep.subr.bf16.mxu1 %v7314_v55 }
0x2a74   :  { %7317 = vmatpush3.bf16.msra.mxu1 %v7314_v55  ;;  %v4044_v55 = vld [vmem:[#allocation3 + $0x280] sm:$0xff] }
0x2a75   :  { %v7362_v58 = vpack.c.bf16 %v4044_v55, %v4043_v20 }
0x2b2e   :  { %v6545_v1 = vpop.f32.mrb[22].mxu1 }
0x2b2f   :  { %v7638_v40 = vadd.f32 %v6545_v1, %v5938_v54  ;;  %v3430_v4 = vpop.f32.mrb[23].mxu1 }
0x2b30   :  { %v7639_v37 = vadd.f32 %v5938_v54, %v3430_v4  ;;  %v4046_v4 = vld [vmem:[#allocation3 + $0x290] sm:$0xff] }
0x2b31   :  { %v3454_v8 = vmax.f32 %v7638_v40, 0.0  ;;  %v4045_v40 = vld [vmem:[#allocation3 + $0x288] sm:$0xff] }
0x2b32   :  { %v3453_v33 = vmax.f32 %v7639_v37, 0.0  ;;  %v6548_v34 = vpop.f32.mrb[24].mxu1  ;;  %v7366_v37 = vpack.c.bf16 %v4046_v4, %v4045_v40 }
0x2b33   :  { %v3553_v39 = vadd.f32 %v3539_v25, %v3454_v8  ;;  %v7640_v10 = vadd.f32 %v6548_v34, %v5938_v54  ;;  %v3440_v60 = vpop.f32.mrb[25].mxu1  ;;  %v3818_v25 = vld [vmem:[#allocation3 + $0x240] sm:$0xff]  ;;  %v3819_v8 = vld [vmem:[#allocation3 + $0x248] sm:$0xff]  ;;  %v3931_v34 = vld [vmem:[#allocation3 + $0x158] sm:$0xff] }
0x2b34   :  { %v3552_v50 = vadd.f32 %v3534_v9, %v3453_v33  ;;  %v7641_v48 = vadd.f32 %v5938_v54, %v3440_v60  ;;  %v7318_v9 = vpack.c.bf16 %v3819_v8, %v3818_v25  ;;  %v3930_v33 = vld [vmem:[#allocation3 + $0x150] sm:$0xff]  ;;  %v4146_v60 = vld [vmem:[#allocation3 + $0x328] sm:$0xff] }
0x2b35   :  { %v8862_v24 = vmax.f32 %v3553_v39, 0.0  ;;  %v3456_v21 = vmax.f32 %v7640_v10, 0.0  ;;  %v7322_v39 = vpack.c.bf16 %v3931_v34, %v3930_v33  ;;  %v4145_v10 = vld [vmem:[#allocation3 + $0x320] sm:$0xff]  ;;  %v3938_v8 = vld [vmem:[#allocation3 + $0x190] sm:$0xff] }
0x2b36   :  { %v3556_v7 = vmax.f32 %v3552_v50, 0.0  ;;  %v3455_v46 = vmax.f32 %v7641_v48, 0.0  ;;  %7319 = vmatprep.subr.bf16.mxu1 %v7318_v9  ;;  %v4147_v50 = vld [vmem:[#allocation3 + $0x330] sm:$0xff]  ;;  %v7370_v48 = vpack.c.bf16 %v4146_v60, %v4145_v10  ;;  %v3940_v10 = vld [vmem:[#allocation3 + $0x1a0] sm:$0xff]  ;;  %v3941_v60 = vld [vmem:[#allocation3 + $0x1a8] sm:$0xff] }
0x2b37   :  { %v3672_v49 = vrot.slane %v8862_v24, 6  ;;  %v3555_v26 = vadd.f32 %v3549_v23, %v3456_v21  ;;  %7321 = vmatpush3.bf16.msra.mxu1 %v7318_v9  ;;  %v7374_v51 = vpack.c.bf16 %v4148_v57, %v4147_v50  ;;  %v4149_v23 = vld [vmem:[#allocation3 + $0x340] sm:$0xff]  ;;  %v3939_v9 = vld [vmem:[#allocation3 + $0x198] sm:$0xff]  ;;  %v7342_v57 = vpack.c.bf16 %v3941_v60, %v3940_v10 }
0x2b38   :  { %v3554_v2 = vadd.f32 %v3544_v41, %v3455_v46  ;;  %6575 = vmatprep.mubr.msk.f32.mxu0 %vm3230_vm7, %v3556_v7  ;;  %v3671_v29 = vrot.slane %v3556_v7, 6  ;;  %7323 = vmatprep.subr.bf16.mxu1 %v7322_v39  ;;  %v4151_v41 = vld [vmem:[#allocation3 + $0x350] sm:$0xff] }
0x2b39   :  { %v3559_v52 = vmax.f32 %v3555_v26, 0.0  ;;  %6576 = vmatmul.mubr.msk.f32.vlgmr.msra.gmra.mrb[32].mxu0 %vm3230_vm7, %v8862_v24  ;;  %v4154_v26 = vld [vmem:[#allocation3 + $0x368] sm:$0xff] }
0x2b3a   :  { %v3558_v17 = vmax.f32 %v3554_v2, 0.0  ;;  %7277 = vmatpush3.bf16.msra.mxu0 %v8856_v53  ;;  %v3682_v19 = vsel %vm3670_vm9, 0.0, %v3671_v29  ;;  %v3673_v56 = vsel %vm3670_vm9, %v3671_v29, %v3672_v49  ;;  %v4155_v2 = vld [vmem:[#allocation3 + $0x370] sm:$0xff]  ;;  %v4156_v29 = vld [vmem:[#allocation3 + $0x378] sm:$0xff] }
0x2b3b   :  { %v3676_v14 = vrot.slane %v3559_v52, 6  ;;  %7279 = vmatprep.subr.bf16.mxu0 %v7278_v63  ;;  %v3687_v42 = vsel %vm3683_vm10, %v3682_v19, 0.0  ;;  %v3688_v61 = vsel %vm3684_vm11, %v3673_v56, 0.0  ;;  %v7390_v32 = vpack.c.bf16 %v4156_v29, %v4155_v2  ;;  %v4160_v2 = vld [vmem:[#allocation3 + $0x398] sm:$0xff] }
0x2b3c   :  { %v3674_v12 = vrot.slane %v3558_v17, 6  ;;  %6578 = vmatprep.mubr.msk.f32.mxu0 %vm3230_vm7, %v3558_v17 }
0x2b3d   :  { %6579 = vmatmul.mubr.msk.f32.gmra.mrb[34].mxu0 %vm3230_vm7, %v3559_v52 }
0x2b3e   :  { %7281 = vmatpush3.bf16.msra.mxu0 %v7278_v63  ;;  %6597 = vmatprep.mubr.msk.f32.mxu0 %vm3230_vm7, %v3687_v42  ;;  %v3675_v53 = vsel %vm3670_vm9, %v3672_v49, %v3674_v12  ;;  %v3677_v47 = vsel %vm3670_vm9, %v3674_v12, %v3676_v14  ;;  %v4153_v49 = vld [vmem:[#allocation3 + $0x360] sm:$0xff] }
0x2b3f   :  { %7283 = vmatprep.subr.bf16.mxu0 %v7282_v36  ;;  %v3689_v54 = vsel %vm3685_vm12, %v3675_v53, 0.0  ;;  %v3690_v1 = vsel %vm3686_vm13, %v3677_v47, 0.0  ;;  %v7386_v63 = vpack.c.bf16 %v4154_v26, %v4153_v49  ;;  %v3932_v14 = vld [vmem:[#allocation3 + $0x160] sm:$0xff]  ;;  %v4158_v49 = vld [vmem:[#allocation3 + $0x388] sm:$0xff] }
0x2b42   :  { %7285 = vmatpush3.bf16.msra.mxu0 %v7282_v36  ;;  %v3933_v36 = vld [vmem:[#allocation3 + $0x168] sm:$0xff] }
0x2b43   :  { %7287 = vmatprep.subr.bf16.mxu0 %v7286_v62 }
0x2b46   :  { %7289 = vmatpush3.bf16.msra.mxu0 %v7286_v62  ;;  %v7326_v62 = vpack.c.bf16 %v3933_v36, %v3932_v14  ;;  %v4387_v36 = vld [vmem:[#allocation3 + $0x440] sm:$0xff] }
0x2b47   :  { %7355 = vmatprep.subr.bf16.mxu0 %v7354_v28 }
0x2b49   :  { %6598 = vmatmul.mubr.msk.f32.vlgmr.msra.gmra.mrb[32].mxu0 %vm3230_vm7, %v3688_v61 }
0x2b4a   :  { %6600 = vmatprep.mubr.msk.f32.mxu0 %vm3230_vm7, %v3689_v54  ;;  %7357 = vmatpush3.bf16.msra.mxu0 %v7354_v28  ;;  %v3934_v28 = vld [vmem:[#allocation3 + $0x170] sm:$0xff] }
0x2b4b   :  { %7359 = vmatprep.subr.bf16.mxu0 %v7358_v59  ;;  %v7330_v55 = vpack.c.bf16 %v3935_v27, %v3934_v28  ;;  %v4394_v27 = vld [vmem:[#allocation3 + $0x478] sm:$0xff] }
0x2b4d   :  { %6601 = vmatmul.mubr.msk.f32.gmra.mrb[34].mxu0 %vm3230_vm7, %v3690_v1  ;;  %v3937_v1 = vld [vmem:[#allocation3 + $0x188] sm:$0xff] }
0x2b4e   :  { %7361 = vmatpush3.bf16.msra.mxu0 %v7358_v59  ;;  %6695 = vmatprep.mubr.msk.f32.mxu0 %vm3230_vm7, %v3556_v7  ;;  %v4152_v7 = vld [vmem:[#allocation3 + $0x358] sm:$0xff] }
0x2b4f   :  { %7363 = vmatprep.subr.bf16.mxu0 %v7362_v58  ;;  %v7382_v46 = vpack.c.bf16 %v4152_v7, %v4151_v41  ;;  %v3945_v41 = vld [vmem:[#allocation3 + $0x1c8] sm:$0xff] }
0x2b52   :  { %7365 = vmatpush3.bf16.msra.mxu0 %v7362_v58  ;;  %v3936_v58 = vld [vmem:[#allocation3 + $0x180] sm:$0xff] }
0x2b53   :  { %7367 = vmatprep.subr.bf16.mxu0 %v7366_v37  ;;  %v7334_v25 = vpack.c.bf16 %v3937_v1, %v3936_v58  ;;  %v5967_v58 = vld [vmem:[#allocation3 + $0x298] ss:$0 sm:$0xff] }
0x2b56   :  { %7369 = vmatpush3.bf16.msra.mxu0 %v7366_v37 }
0x2b57   :  { %7371 = vmatprep.subr.bf16.mxu0 %v7370_v48 }
0x2b59   :  { %6696 = vmatmul.mubr.msk.f32.vlgmr.msra.gmra.mrb[36].mxu0 %vm3230_vm7, %v8862_v24  ;;  %v4150_v24 = vld [vmem:[#allocation3 + $0x348] sm:$0xff] }
0x2b5a   :  { %6698 = vmatprep.mubr.msk.f32.mxu0 %vm3230_vm7, %v3558_v17  ;;  %7373 = vmatpush3.bf16.msra.mxu0 %v7370_v48  ;;  %v7378_v21 = vpack.c.bf16 %v4150_v24, %v4149_v23  ;;  %v3943_v23 = vld [vmem:[#allocation3 + $0x1b8] sm:$0xff] }
0x2b5b   :  { %7375 = vmatprep.subr.bf16.mxu0 %v7374_v51 }
0x2b5d   :  { %6699 = vmatmul.mubr.msk.f32.gmra.mrb[38].mxu0 %vm3230_vm7, %v3559_v52 }
0x2b5e   :  { %7377 = vmatpush3.bf16.msra.mxu0 %v7374_v51  ;;  %v3942_v51 = vld [vmem:[#allocation3 + $0x1b0] sm:$0xff] }
0x2b5f   :  { %7379 = vmatprep.subr.bf16.mxu0 %v7378_v21  ;;  %v7346_v24 = vpack.c.bf16 %v3943_v23, %v3942_v51 }
0x2b62   :  { %7381 = vmatpush3.bf16.msra.mxu0 %v7378_v21  ;;  %v3944_v21 = vld [vmem:[#allocation3 + $0x1c0] sm:$0xff] }
0x2b63   :  { %7383 = vmatprep.subr.bf16.mxu0 %v7382_v46  ;;  %v7350_v7 = vpack.c.bf16 %v3945_v41, %v3944_v21  ;;  %v4277_v21 = vld [vmem:[#allocation3 + $0x2b0] sm:$0xff]  ;;  %v4278_v41 = vld [vmem:[#allocation3 + $0x2b8] sm:$0xff] }
0x2b66   :  { %7385 = vmatpush3.bf16.msra.mxu0 %v7382_v46  ;;  %v4157_v46 = vld [vmem:[#allocation3 + $0x380] sm:$0xff] }
0x2b67   :  { %7387 = vmatprep.subr.bf16.mxu0 %v7386_v63  ;;  %v7394_v26 = vpack.c.bf16 %v4158_v49, %v4157_v46 }
0x2b6a   :  { %7389 = vmatpush3.bf16.msra.mxu0 %v7386_v63  ;;  %v4159_v63 = vld [vmem:[#allocation3 + $0x390] sm:$0xff] }
0x2b6b   :  { %7391 = vmatprep.subr.bf16.mxu0 %v7390_v32  ;;  %v7398_v29 = vpack.c.bf16 %v4160_v2, %v4159_v63  ;;  %v7406_v2 = vpack.c.bf16 %v4278_v41, %v4277_v21  ;;  %v4633_v41 = vld [vmem:[#allocation3 + $0x4e0] sm:$0xff] }
0x2b6e   :  { %7393 = vmatpush3.bf16.msra.mxu0 %v7390_v32  ;;  %v4275_v32 = vld [vmem:[#allocation3 + $0x2a0] sm:$0xff] }
0x2b6f   :  { %7395 = vmatprep.subr.bf16.mxu0 %v7394_v26 }
0x2b72   :  { %7397 = vmatpush3.bf16.msra.mxu0 %v7394_v26 }
0x2b73   :  { %7399 = vmatprep.subr.bf16.mxu0 %v7398_v29 }
0x2b76   :  { %7401 = vmatpush3.bf16.msra.mxu0 %v7398_v29 }
0x2c1c   :  { %v6599_v52 = vpop.f32.mrb[32].mxu0 }
0x2c1d   :  { %v7642_v17 = vadd.f32 %v6599_v52, %v5953_v35  ;;  %v3777_v19 = vpop.f32.mrb[33].mxu0 }
0x2c1e   :  { %v7643_v56 = vadd.f32 %v5953_v35, %v3777_v19  ;;  %v4385_v19 = vld [vmem:[#allocation3 + $0x430] sm:$0xff] }
0x2c1f   :  { %v3801_v12 = vmax.f32 %v7642_v17, 0.0  ;;  %v4384_v17 = vld [vmem:[#allocation3 + $0x428] sm:$0xff] }
0x2c20   :  { %v3800_v5 = vmax.f32 %v7643_v56, 0.0  ;;  %v6602_v38 = vpop.f32.mrb[34].mxu0  ;;  %v4386_v56 = vld [vmem:[#allocation3 + $0x438] sm:$0xff]  ;;  %v7434_v14 = vpack.c.bf16 %v4385_v19, %v4384_v17 }
0x2c21   :  { %v3915_v42 = vrot.slane %v3801_v12, 6  ;;  %v7644_v53 = vadd.f32 %v6602_v38, %v5953_v35  ;;  %v3787_v47 = vpop.f32.mrb[35].mxu0  ;;  %v4389_v38 = vld [vmem:[#allocation3 + $0x450] sm:$0xff] }
0x2c22   :  { %v3914_v6 = vrot.slane %v3800_v5, 6  ;;  %v7645_v43 = vadd.f32 %v5953_v35, %v3787_v47  ;;  %6635 = vmatprep.mubr.f32.mxu1 %v3800_v5  ;;  %v4276_v35 = vld [vmem:[#allocation3 + $0x2a8] sm:$0xff]  ;;  %v4391_v47 = vld [vmem:[#allocation3 + $0x460] sm:$0xff] }
0x2c23   :  { %v3803_v30 = vmax.f32 %v7644_v53, 0.0  ;;  %6636 = vmatmul.mubr.f32.vlgmr.msra.gmra.mrb[26].mxu1 %v3801_v12  ;;  %v8917_v52 = vpack.c.bf16 %v4276_v35, %v4275_v32  ;;  %v7438_v12 = vpack.c.bf16 %v4387_v36, %v4386_v56  ;;  %v4388_v5 = vld [vmem:[#allocation3 + $0x448] sm:$0xff]  ;;  %v4390_v53 = vld [vmem:[#allocation3 + $0x458] sm:$0xff]  ;;  %v4279_v32 = vld [vmem:[#allocation3 + $0x2c0] sm:$0xff] }
0x2c24   :  { %v3916_v59 = vsel %vm3670_vm9, %v3914_v6, %v3915_v42  ;;  %v3802_v61 = vmax.f32 %v7645_v43, 0.0  ;;  %7325 = vmatpush3.bf16.msra.mxu1 %v7322_v39  ;;  %v3925_v40 = vsel %vm3670_vm9, 0.0, %v3914_v6  ;;  %v7338_v39 = vpack.c.bf16 %v3939_v9, %v3938_v8  ;;  %v4392_v6 = vld [vmem:[#allocation3 + $0x468] sm:$0xff]  ;;  %v4393_v43 = vld [vmem:[#allocation3 + $0x470] sm:$0xff] }
0x2c25   :  { %v3919_v20 = vrot.slane %v3803_v30, 6  ;;  %7327 = vmatprep.subr.bf16.mxu1 %v7326_v62  ;;  %7403 = vmatprep.subr.bf16.mxu0 %v8917_v52  ;;  %v7450_v28 = vpack.c.bf16 %v4393_v43, %v4392_v6  ;;  %v4280_v35 = vld [vmem:[#allocation3 + $0x2c8] sm:$0xff]  ;;  %v4281_v56 = vld [vmem:[#allocation3 + $0x2d0] sm:$0xff] }
0x2c26   :  { %v3917_v54 = vrot.slane %v3802_v61, 6  ;;  %6638 = vmatprep.mubr.f32.mxu1 %v3802_v61  ;;  %v4396_v61 = vld [vmem:[#allocation3 + $0x488] sm:$0xff]  ;;  %v7410_v19 = vpack.c.bf16 %v4280_v35, %v4279_v32  ;;  %v5972_v35 = vld [vmem:[#allocation3 + $0x3a0] ss:$0 sm:$0xff] }
0x2c27   :  { %6639 = vmatmul.mubr.f32.gmra.mrb[28].mxu1 %v3803_v30  ;;  %v4395_v30 = vld [vmem:[#allocation3 + $0x480] sm:$0xff]  ;;  %v4288_v6 = vld [vmem:[#allocation3 + $0x308] sm:$0xff] }
0x2c28   :  { %7329 = vmatpush3.bf16.msra.mxu1 %v7326_v62  ;;  %6673 = vmatprep.mubr.msk.f32.mxu1 %vm3683_vm10, %v3925_v40  ;;  %v3918_v4 = vsel %vm3670_vm9, %v3915_v42, %v3917_v54  ;;  %v3920_v37 = vsel %vm3670_vm9, %v3917_v54, %v3919_v20  ;;  %v7442_v42 = vpack.c.bf16 %v4389_v38, %v4388_v5  ;;  %v4397_v20 = vld [vmem:[#allocation3 + $0x490] sm:$0xff]  ;;  %v4284_v5 = vld [vmem:[#allocation3 + $0x2e8] sm:$0xff] }
0x2c29   :  { %7331 = vmatprep.subr.bf16.mxu1 %v7330_v55  ;;  %v7446_v62 = vpack.c.bf16 %v4391_v47, %v4390_v53  ;;  %v5962_v54 = vld [vmem:[#allocation3 + $0x250] ss:$0 sm:$0xff]  ;;  %v4286_v53 = vld [vmem:[#allocation3 + $0x2f8] sm:$0xff] }
0x2c2c   :  { %7333 = vmatpush3.bf16.msra.mxu1 %v7330_v55  ;;  %v8903_v33 = vpop.f32.mrb[36].mxu0  ;;  %v7458_v55 = vpack.c.bf16 %v4397_v20, %v4396_v61 }
0x2c2d   :  { %v8905_v34 = vpop.f32.mrb[37].mxu0  ;;  %7335 = vmatprep.subr.bf16.mxu1 %v7334_v25 }
0x2c2e   :  { %v4119_v9 = vadd.f32 %v5967_v58, %v8905_v34 }
0x2c30   :  { %7337 = vmatpush3.bf16.msra.mxu1 %v7334_v25  ;;  %v8907_v50 = vpop.f32.mrb[38].mxu0  ;;  %v4124_v25 = vadd.f32 %v8903_v33, %v5967_v58 }
0x2c31   :  { %v8909_v48 = vpop.f32.mrb[39].mxu0  ;;  %7339 = vmatprep.subr.bf16.mxu1 %v7338_v39 }
0x2c32   :  { %v4129_v49 = vadd.f32 %v5967_v58, %v8909_v48 }
0x2c34   :  { %7341 = vmatpush3.bf16.msra.mxu1 %v7338_v39 }
0x2c35   :  { %7343 = vmatprep.subr.bf16.mxu1 %v7342_v57 }
0x2c38   :  { %7345 = vmatpush3.bf16.msra.mxu1 %v7342_v57 }
0x2c39   :  { %7347 = vmatprep.subr.bf16.mxu1 %v7346_v24 }
0x2c3c   :  { %7349 = vmatpush3.bf16.msra.mxu1 %v7346_v24 }
0x2c3d   :  { %7351 = vmatprep.subr.bf16.mxu1 %v7350_v7 }
0x2c40   :  { %7353 = vmatpush3.bf16.msra.mxu1 %v7350_v7  ;;  %v4134_v7 = vadd.f32 %v8907_v50, %v5967_v58 }
0x2c41   :  { %7435 = vmatprep.subr.bf16.mxu1 %v7434_v14 }
0x2c43   :  { %6674 = vmatmul.mubr.msk.f32.vlgmr.msra.gmra.mrb[26].mxu1 %vm3684_vm11, %v3916_v59  ;;  %v7454_v59 = vpack.c.bf16 %v4395_v30, %v4394_v27  ;;  %v4290_v27 = vld [vmem:[#allocation3 + $0x318] sm:$0xff] }
0x2c44   :  { %6676 = vmatprep.mubr.msk.f32.mxu1 %vm3685_vm12, %v3918_v4  ;;  %7437 = vmatpush3.bf16.msra.mxu1 %v7434_v14  ;;  %v4282_v14 = vld [vmem:[#allocation3 + $0x2d8] sm:$0xff] }
0x2c45   :  { %7439 = vmatprep.subr.bf16.mxu1 %v7438_v12 }
0x2c47   :  { %6677 = vmatmul.mubr.msk.f32.gmra.mrb[28].mxu1 %vm3686_vm13, %v3920_v37 }
0x2c48   :  { %7441 = vmatpush3.bf16.msra.mxu1 %v7438_v12  ;;  %v4283_v12 = vld [vmem:[#allocation3 + $0x2e0] sm:$0xff] }
0x2c49   :  { %7443 = vmatprep.subr.bf16.mxu1 %v7442_v42  ;;  %v7418_v38 = vpack.c.bf16 %v4284_v5, %v4283_v12 }
0x2c4c   :  { %7445 = vmatpush3.bf16.msra.mxu1 %v7442_v42  ;;  %v4285_v42 = vld [vmem:[#allocation3 + $0x2f0] sm:$0xff] }
0x2c4d   :  { %7447 = vmatprep.subr.bf16.mxu1 %v7446_v62  ;;  %v7422_v47 = vpack.c.bf16 %v4286_v53, %v4285_v42 }
0x2c50   :  { %7449 = vmatpush3.bf16.msra.mxu1 %v7446_v62  ;;  %v4287_v62 = vld [vmem:[#allocation3 + $0x300] sm:$0xff] }
0x2c51   :  { %7451 = vmatprep.subr.bf16.mxu1 %v7450_v28  ;;  %v7426_v43 = vpack.c.bf16 %v4288_v6, %v4287_v62 }
0x2c54   :  { %7453 = vmatpush3.bf16.msra.mxu1 %v7450_v28  ;;  %v4289_v28 = vld [vmem:[#allocation3 + $0x310] sm:$0xff] }
0x2c55   :  { %7455 = vmatprep.subr.bf16.mxu1 %v7454_v59  ;;  %v7430_v30 = vpack.c.bf16 %v4290_v27, %v4289_v28  ;;  %v4514_v28 = vld [vmem:[#allocation3 + $0x3c8] sm:$0xff]  ;;  %v4515_v27 = vld [vmem:[#allocation3 + $0x3d0] sm:$0xff] }
0x2c58   :  { %7457 = vmatpush3.bf16.msra.mxu1 %v7454_v59 }
0x2c59   :  { %7459 = vmatprep.subr.bf16.mxu1 %v7458_v55 }
0x2c5c   :  { %7461 = vmatpush3.bf16.msra.mxu1 %v7458_v55 }
0x2d16   :  { %v6675_v1 = vpop.f32.mrb[26].mxu1 }
0x2d17   :  { %v7646_v40 = vadd.f32 %v6675_v1, %v5962_v54  ;;  %v4012_v4 = vpop.f32.mrb[27].mxu1  ;;  %v4398_v1 = vld [vmem:[#allocation3 + $0x498] sm:$0xff] }
0x2d18   :  { %v7647_v37 = vadd.f32 %v5962_v54, %v4012_v4 }
0x2d19   :  { %v4036_v8 = vmax.f32 %v7646_v40, 0.0  ;;  %v4399_v40 = vld [vmem:[#allocation3 + $0x4a0] sm:$0xff] }
0x2d1a   :  { %v4035_v39 = vmax.f32 %v7647_v37, 0.0  ;;  %v6678_v10 = vpop.f32.mrb[28].mxu1  ;;  %v7462_v4 = vpack.c.bf16 %v4399_v40, %v4398_v1  ;;  %v4510_v37 = vld [vmem:[#allocation3 + $0x3a8] sm:$0xff]  ;;  %v4517_v1 = vld [vmem:[#allocation3 + $0x3e0] sm:$0xff] }
0x2d1b   :  { %v4138_v60 = vadd.f32 %v4124_v25, %v4036_v8  ;;  %v7648_v57 = vadd.f32 %v6678_v10, %v5962_v54  ;;  %v4022_v51 = vpop.f32.mrb[29].mxu1  ;;  %v4511_v25 = vld [vmem:[#allocation3 + $0x3b0] sm:$0xff]  ;;  %v4629_v10 = vld [vmem:[#allocation3 + $0x4c0] sm:$0xff] }
0x2d1c   :  { %v4137_v23 = vadd.f32 %v4119_v9, %v4035_v39  ;;  %v7649_v24 = vadd.f32 %v5962_v54, %v4022_v51  ;;  %7463 = vmatprep.subr.bf16.mxu1 %v7462_v4  ;;  %v7466_v8 = vpack.c.bf16 %v4511_v25, %v4510_v37  ;;  %v4627_v9 = vld [vmem:[#allocation3 + $0x4b0] sm:$0xff]  ;;  %v4628_v39 = vld [vmem:[#allocation3 + $0x4b8] sm:$0xff] }
0x2d1d   :  { %v4038_v46 = vmax.f32 %v7648_v57, 0.0  ;;  %v8926_v63 = vmax.f32 %v4138_v60, 0.0  ;;  %7465 = vmatpush3.bf16.msra.mxu1 %v7462_v4  ;;  %v7498_v60 = vpack.c.bf16 %v4628_v39, %v4627_v9  ;;  %v4630_v57 = vld [vmem:[#allocation3 + $0x4c8] sm:$0xff]  ;;  %v4519_v9 = vld [vmem:[#allocation3 + $0x3f0] sm:$0xff] }
0x2d1e   :  { %v8924_v26 = vmax.f32 %v4137_v23, 0.0  ;;  %v4037_v33 = vmax.f32 %v7649_v24, 0.0  ;;  %7467 = vmatprep.subr.bf16.mxu1 %v7466_v8  ;;  %v7502_v51 = vpack.c.bf16 %v4630_v57, %v4629_v10  ;;  %v4631_v23 = vld [vmem:[#allocation3 + $0x4d0] sm:$0xff]  ;;  %v4632_v24 = vld [vmem:[#allocation3 + $0x4d8] sm:$0xff] }
0x2d1f   :  { %v4140_v34 = vadd.f32 %v4134_v7, %v4038_v46  ;;  %v4256_v59 = vrot.slane %v8926_v63, 4  ;;  %v7506_v21 = vpack.c.bf16 %v4632_v24, %v4631_v23  ;;  %v4634_v7 = vld [vmem:[#allocation3 + $0x4e8] sm:$0xff]  ;;  %v4520_v10 = vld [vmem:[#allocation3 + $0x3f8] sm:$0xff]  ;;  %v4523_v23 = vld [vmem:[#allocation3 + $0x410] sm:$0xff] }
0x2d20   :  { %v4139_v29 = vadd.f32 %v4129_v49, %v4037_v33  ;;  %6733 = vmatprep.mubr.f32.mxu0 %v8924_v26  ;;  %v4255_v17 = vrot.slane %v8924_v26, 4  ;;  %v7510_v46 = vpack.c.bf16 %v4634_v7, %v4633_v41  ;;  %v4635_v49 = vld [vmem:[#allocation3 + $0x4f0] sm:$0xff]  ;;  %v4636_v33 = vld [vmem:[#allocation3 + $0x4f8] sm:$0xff] }
0x2d21   :  { %6734 = vmatmul.mubr.f32.vlgmr.msra.gmra.mrb[40].mxu0 %v8926_v63  ;;  %v8934_v48 = vmax.f32 %v4140_v34, 0.0  ;;  %v7514_v34 = vpack.c.bf16 %v4636_v33, %v4635_v49  ;;  %v4524_v24 = vld [vmem:[#allocation3 + $0x418] sm:$0xff]  ;;  %v4639_v7 = vld [vmem:[#allocation3 + $0x510] sm:$0xff]  ;;  %v4641_v33 = vld [vmem:[#allocation3 + $0x520] sm:$0xff] }
0x2d22   :  { %v8931_v50 = vmax.f32 %v4139_v29, 0.0  ;;  %7405 = vmatpush3.bf16.msra.mxu0 %v8917_v52  ;;  %v4266_v36 = vsel %vm91_vm0, 0.0, %v4255_v17  ;;  %v7414_v52 = vpack.c.bf16 %v4282_v14, %v4281_v56  ;;  %v4257_v20 = vsel %vm91_vm0, %v4255_v17, %v4256_v59  ;;  %v4638_v29 = vld [vmem:[#allocation3 + $0x508] sm:$0xff] }
0x2d23   :  { %7407 = vmatprep.subr.bf16.mxu0 %v7406_v2  ;;  %v4260_v55 = vrot.slane %v8934_v48, 4 }
0x2d24   :  { %6736 = vmatprep.mubr.f32.mxu0 %v8931_v50  ;;  %v4258_v61 = vrot.slane %v8931_v50, 4 }
0x2d25   :  { %6737 = vmatmul.mubr.f32.gmra.mrb[42].mxu0 %v8934_v48 }
0x2d26   :  { %7409 = vmatpush3.bf16.msra.mxu0 %v7406_v2  ;;  %6771 = vmatprep.mubr.msk.f32.mxu0 %vm4267_vm14, %v4266_v36  ;;  %v4259_v54 = vsel %vm91_vm0, %v4256_v59, %v4258_v61  ;;  %v4261_v58 = vsel %vm91_vm0, %v4258_v61, %v4260_v55  ;;  %v4637_v2 = vld [vmem:[#allocation3 + $0x500] sm:$0xff]  ;;  %v4512_v36 = vld [vmem:[#allocation3 + $0x3b8] sm:$0xff]  ;;  %v7474_v55 = vpack.c.bf16 %v4515_v27, %v4514_v28 }
0x2d27   :  { %7411 = vmatprep.subr.bf16.mxu0 %v7410_v19  ;;  %v7518_v32 = vpack.c.bf16 %v4638_v29, %v4637_v2  ;;  %v4848_v29 = vld [vmem:[#allocation3 + $0x550] sm:$0xff] }
0x2d2a   :  { %7413 = vmatpush3.bf16.msra.mxu0 %v7410_v19 }
0x2d2b   :  { %7415 = vmatprep.subr.bf16.mxu0 %v7414_v52 }
0x2d2e   :  { %7417 = vmatpush3.bf16.msra.mxu0 %v7414_v52  ;;  %v4513_v52 = vld [vmem:[#allocation3 + $0x3c0] sm:$0xff] }
0x2d2f   :  { %7419 = vmatprep.subr.bf16.mxu0 %v7418_v38  ;;  %v7470_v62 = vpack.c.bf16 %v4513_v52, %v4512_v36 }
0x2d32   :  { %7421 = vmatpush3.bf16.msra.mxu0 %v7418_v38 }
0x2d33   :  { %7423 = vmatprep.subr.bf16.mxu0 %v7422_v47 }
0x2d36   :  { %7425 = vmatpush3.bf16.msra.mxu0 %v7422_v47 }
0x2d37   :  { %7427 = vmatprep.subr.bf16.mxu0 %v7426_v43 }
0x2d3a   :  { %7429 = vmatpush3.bf16.msra.mxu0 %v7426_v43 }
0x2d3b   :  { %7431 = vmatprep.subr.bf16.mxu0 %v7430_v30 }
0x2d3e   :  { %7433 = vmatpush3.bf16.msra.mxu0 %v7430_v30 }
0x2d3f   :  { %7499 = vmatprep.subr.bf16.mxu0 %v7498_v60 }
0x2d41   :  { %6772 = vmatmul.mubr.msk.f32.vlgmr.msra.gmra.mrb[40].mxu0 %vm4268_vm15, %v4257_v20 }
0x2d42   :  { %6774 = vmatprep.mubr.msk.f32.mxu0 %vm4269_vm1, %v4259_v54  ;;  %7501 = vmatpush3.bf16.msra.mxu0 %v7498_v60  ;;  %v4521_v60 = vld [vmem:[#allocation3 + $0x400] sm:$0xff] }
0x2d43   :  { %7503 = vmatprep.subr.bf16.mxu0 %v7502_v51  ;;  %v7486_v57 = vpack.c.bf16 %v4521_v60, %v4520_v10  ;;  %v4862_v10 = vld [vmem:[#allocation3 + $0x5c0] sm:$0xff]  ;;  %v4863_v60 = vld [vmem:[#allocation3 + $0x5c8] sm:$0xff] }
0x2d45   :  { %6775 = vmatmul.mubr.msk.f32.gmra.mrb[42].mxu0 %vm4270_vm2, %v4261_v58  ;;  %v4516_v58 = vld [vmem:[#allocation3 + $0x3d8] sm:$0xff] }
0x2d46   :  { %7505 = vmatpush3.bf16.msra.mxu0 %v7502_v51  ;;  %v7478_v25 = vpack.c.bf16 %v4517_v1, %v4516_v58  ;;  %v4522_v51 = vld [vmem:[#allocation3 + $0x408] sm:$0xff]  ;;  %v4856_v1 = vld [vmem:[#allocation3 + $0x590] sm:$0xff] }
0x2d47   :  { %7507 = vmatprep.subr.bf16.mxu0 %v7506_v21  ;;  %v7490_v13 = vpack.c.bf16 %v4523_v23, %v4522_v51  ;;  %v4855_v58 = vld [vmem:[#allocation3 + $0x588] sm:$0xff]  ;;  %v4737_v51 = vld [vmem:[#allocation3 + $0x538] sm:$0xff]  ;;  %v4738_v23 = vld [vmem:[#allocation3 + $0x540] sm:$0xf] }
0x2d4a   :  { %7509 = vmatpush3.bf16.msra.mxu0 %v7506_v21  ;;  %v4525_v21 = vld [vmem:[#allocation3 + $0x420] sm:$0xff] }
0x2d4b   :  { %7511 = vmatprep.subr.bf16.mxu0 %v7510_v46  ;;  %v7494_v41 = vpack.c.bf16 %v4525_v21, %v4524_v24  ;;  %v5982_v24 = vld [vmem:[#allocation3 + $0x530] ss:$0 sm:$0xff] }
0x2d4e   :  { %7513 = vmatpush3.bf16.msra.mxu0 %v7510_v46  ;;  %v4640_v46 = vld [vmem:[#allocation3 + $0x518] sm:$0xff] }
0x2d4f   :  { %7515 = vmatprep.subr.bf16.mxu0 %v7514_v34  ;;  %v7522_v49 = vpack.c.bf16 %v4640_v46, %v4639_v7 }
0x2d52   :  { %7517 = vmatpush3.bf16.msra.mxu0 %v7514_v34  ;;  %v4642_v34 = vld [vmem:[#allocation3 + $0x528] sm:$0xff] }
0x2d53   :  { %7519 = vmatprep.subr.bf16.mxu0 %v7518_v32  ;;  %v7526_v2 = vpack.c.bf16 %v4642_v34, %v4641_v33 }
0x2d56   :  { %7521 = vmatpush3.bf16.msra.mxu0 %v7518_v32  ;;  %v4849_v32 = vld [vmem:[#allocation3 + $0x558] sm:$0xff] }
0x2d57   :  { %7523 = vmatprep.subr.bf16.mxu0 %v7522_v49  ;;  %v7536_v3 = vpack.c.bf16 %v4849_v32, %v4848_v29 }
0x2d5a   :  { %7525 = vmatpush3.bf16.msra.mxu0 %v7522_v49 }
0x2d5b   :  { %7527 = vmatprep.subr.bf16.mxu0 %v7526_v2 }
0x2d5e   :  { %7529 = vmatpush3.bf16.msra.mxu0 %v7526_v2 }
0x2d5f   :  { %7537 = vmatprep.subr.bf16.mxu0 %v7536_v3 }
0x2e14   :  { %v6773_v17 = vpop.f32.mrb[40].mxu0 }
0x2e15   :  { %v7650_v19 = vadd.f32 %v6773_v17, %v5972_v35  ;;  %v4357_v56 = vpop.f32.mrb[41].mxu0 }
0x2e16   :  { %v7651_v14 = vadd.f32 %v5972_v35, %v4357_v56 }
0x2e17   :  { %v4381_v12 = vmax.f32 %v7650_v19, 0.0 }
0x2e18   :  { %v4380_v5 = vmax.f32 %v7651_v14, 0.0  ;;  %v6776_v38 = vpop.f32.mrb[42].mxu0 }
0x2e19   :  { %v4495_v42 = vrot.slane %v4381_v12, 4  ;;  %v7652_v53 = vadd.f32 %v6776_v38, %v5972_v35  ;;  %v4367_v47 = vpop.f32.mrb[43].mxu0 }
0x2e1a   :  { %v4494_v6 = vrot.slane %v4380_v5, 4  ;;  %v7653_v43 = vadd.f32 %v5972_v35, %v4367_v47  ;;  %6809 = vmatprep.mubr.f32.mxu1 %v4380_v5  ;;  %v5977_v35 = vld [vmem:[#allocation3 + $0x4a8] ss:$0 sm:$0xff] }
0x2e1b   :  { %v4383_v30 = vmax.f32 %v7652_v53, 0.0  ;;  %6810 = vmatmul.mubr.f32.vlgmr.msra.gmra.mrb[30].mxu1 %v4381_v12  ;;  %v4850_v53 = vld [vmem:[#allocation3 + $0x560] sm:$0xff]  ;;  %v4851_v47 = vld [vmem:[#allocation3 + $0x568] sm:$0xff] }
0x2e1c   :  { %v4496_v59 = vsel %vm91_vm0, %v4494_v6, %v4495_v42  ;;  %v4382_v61 = vmax.f32 %v7653_v43, 0.0  ;;  %7469 = vmatpush3.bf16.msra.mxu1 %v7466_v8  ;;  %v4505_v40 = vsel %vm91_vm0, 0.0, %v4494_v6  ;;  %v4518_v8 = vld [vmem:[#allocation3 + $0x3e8] sm:$0xff] }
0x2e1d   :  { %v4499_v20 = vrot.slane %v4383_v30, 4  ;;  %7471 = vmatprep.subr.bf16.mxu1 %v7470_v62  ;;  %v7482_v39 = vpack.c.bf16 %v4519_v9, %v4518_v8  ;;  %v4860_v8 = vld [vmem:[#allocation3 + $0x5b0] sm:$0xff]  ;;  %v4861_v9 = vld [vmem:[#allocation3 + $0x5b8] sm:$0xff] }
0x2e1e   :  { %v4497_v54 = vrot.slane %v4382_v61, 4  ;;  %6812 = vmatprep.mubr.f32.mxu1 %v4382_v61  ;;  %v4852_v61 = vld [vmem:[#allocation3 + $0x570] sm:$0xff] }
0x2e1f   :  { %6813 = vmatmul.mubr.f32.gmra.mrb[32].mxu1 %v4383_v30  ;;  %v7540_v30 = vpack.c.bf16 %v4851_v47, %v4850_v53  ;;  %v5123_v53 = vld [vmem:[#allocation3 + $0x650] sm:$0xff]  ;;  %v5125_v47 = vld [vmem:[#allocation3 + $0x660] sm:$0xff] }
0x2e20   :  { %7473 = vmatpush3.bf16.msra.mxu1 %v7470_v62  ;;  %6847 = vmatprep.mubr.msk.f32.mxu1 %vm4267_vm14, %v4505_v40  ;;  %v4498_v4 = vsel %vm91_vm0, %v4495_v42, %v4497_v54  ;;  %v4500_v37 = vsel %vm91_vm0, %v4497_v54, %v4499_v20  ;;  %v4853_v20 = vld [vmem:[#allocation3 + $0x578] sm:$0xff]  ;;  %v4854_v54 = vld [vmem:[#allocation3 + $0x580] sm:$0xff]  ;;  %vm4990_vm0 = vcmask 261120  }
0x2e21   :  { %7475 = vmatprep.subr.bf16.mxu1 %v7474_v55  ;;  %v4857_v40 = vld [vmem:[#allocation3 + $0x598] sm:$0xff] }
0x2e24   :  { %7477 = vmatpush3.bf16.msra.mxu1 %v7474_v55 }
0x2e25   :  { %7479 = vmatprep.subr.bf16.mxu1 %v7478_v25 }
0x2e28   :  { %7481 = vmatpush3.bf16.msra.mxu1 %v7478_v25 }
0x2e29   :  { %7483 = vmatprep.subr.bf16.mxu1 %v7482_v39 }
0x2e2c   :  { %7485 = vmatpush3.bf16.msra.mxu1 %v7482_v39  ;;  %v7560_v39 = vpack.c.bf16 %v4861_v9, %v4860_v8 }
0x2e2d   :  { %7487 = vmatprep.subr.bf16.mxu1 %v7486_v57 }
0x2e30   :  { %7489 = vmatpush3.bf16.msra.mxu1 %v7486_v57  ;;  %v7564_v57 = vpack.c.bf16 %v4863_v60, %v4862_v10 }
0x2e31   :  { %7491 = vmatprep.subr.bf16.mxu1 %v7490_v13 }
0x2e34   :  { %7493 = vmatpush3.bf16.msra.mxu1 %v7490_v13  ;;  %v7530_v13 = vpack.c.bf16 %v4738_v23, %v4737_v51  ;;  %v4963_v23 = vld [vmem:[#allocation3 + $0x5e0] sm:$0xff] }
0x2e35   :  { %7495 = vmatprep.subr.bf16.mxu1 %v7494_v41 }
0x2e38   :  { %7497 = vmatpush3.bf16.msra.mxu1 %v7494_v41 }
0x2e39   :  { %7532 = vmatprep.subr.msk.bf16.mxu1 %vm8663_vm8, %v7530_v13 }
0x2e3b   :  { %6848 = vmatmul.mubr.msk.f32.vlgmr.msra.gmra.mrb[30].mxu1 %vm4268_vm15, %v4496_v59 }
0x2e3c   :  { %6850 = vmatprep.mubr.msk.f32.mxu1 %vm4269_vm1, %v4498_v4  ;;  %v4858_v4 = vld [vmem:[#allocation3 + $0x5a0] sm:$0xff]  ;;  %7535 = vmatpush3.bf16.msk.msra.mxu1 %vm8663_vm8, %v7530_v13  ;;  %v4964_v13 = vld [vmem:[#allocation3 + $0x5e8] sm:$0xff] }
0x2e3f   :  { %6851 = vmatmul.mubr.msk.f32.gmra.mrb[32].mxu1 %vm4270_vm2, %v4500_v37  ;;  %v4859_v37 = vld [vmem:[#allocation3 + $0x5a8] sm:$0xff] }
0x2e40   :  { %v7556_v25 = vpack.c.bf16 %v4859_v37, %v4858_v4 }
0x2f0e   :  { %v6849_v18 = vpop.f32.mrb[30].mxu1 }
0x2f0f   :  { %v7654_v17 = vadd.f32 %v6849_v18, %v5977_v35  ;;  %v4592_v19 = vpop.f32.mrb[31].mxu1 }
0x2f10   :  { %v7655_v22 = vadd.f32 %v5977_v35, %v4592_v19 }
0x2f11   :  { %v4616_v56 = vmax.f32 %v7654_v17, 0.0 }
0x2f12   :  { %v4615_v14 = vmax.f32 %v7655_v22, 0.0  ;;  %v6852_v36 = vpop.f32.mrb[32].mxu1 }
0x2f13   :  { %v4620_v52 = vadd.f32 %v4616_v56, %v8926_v63  ;;  %v7656_v12 = vadd.f32 %v6852_v36, %v5977_v35  ;;  %v4602_v5 = vpop.f32.mrb[33].mxu1  ;;  %v4962_v56 = vld [vmem:[#allocation3 + $0x5d8] sm:$0xff]  ;;  %v7887_v36 = vmov 0  }
0x2f14   :  { %v4619_v38 = vadd.f32 %v4615_v14, %v8924_v26  ;;  %v7657_v42 = vadd.f32 %v5977_v35, %v4602_v5  ;;  %v7544_v26 = vpack.c.bf16 %v4853_v20, %v4852_v61  ;;  %v4966_v14 = vld [vmem:[#allocation3 + $0x5f8] sm:$0xff]  ;;  %7707 = vset.pattern.permute.xlu0 %v7887_v36  ;;  %7708 = vset.pattern.permute.xlu1 %v7887_v36  ;;  %v5122_v5 = vld [vmem:[#allocation3 + $0x648] sm:$0xff] }
0x2f15   :  { %v4618_v62 = vmax.f32 %v7656_v12, 0.0  ;;  %v4624_v28 = vmax.f32 %v4620_v52, 0.0  ;;  %v4967_v52 = vld [vmem:[#allocation3 + $0x600] sm:$0xff]  ;;  %4972 = vperm.xlu0 %7707, %v4966_v14   ;;  %v4968_v12 = vld [vmem:[#allocation3 + $0x608] sm:$0xff] }
0x2f16   :  { %v4623_v6 = vmax.f32 %v4619_v38, 0.0  ;;  %v4617_v43 = vmax.f32 %v7657_v42, 0.0  ;;  %4977 = vperm.xlu1 %7708, %v4967_v52   ;;  %v4969_v38 = vld [vmem:[#allocation3 + $0x610] sm:$0xff]  ;;  %v5124_v42 = vld [vmem:[#allocation3 + $0x658] sm:$0xff] }
0x2f17   :  { %v4622_v27 = vadd.f32 %v4618_v62, %v8934_v48  ;;  %v7548_v48 = vpack.c.bf16 %v4855_v58, %v4854_v54  ;;  %v5983_v62 = vld [vmem:[#allocation3 + $0x548] ss:$0 sm:$0xff] }
0x2f18   :  { %v4621_v59 = vadd.f32 %v4617_v43, %v8931_v50  ;;  %6885 = vmatprep.mubr.f32.mxu0 %v4623_v6  ;;  %v7552_v50 = vpack.c.bf16 %v4857_v40, %v4856_v1 }
0x2f19   :  { %6886 = vmatmul.mubr.f32.vlgmr.msra.gmra.mrb[44].mxu0 %v4624_v28  ;;  %v4626_v55 = vmax.f32 %v4622_v27, 0.0  ;;  %4982 = vperm.xlu0 %7707, %v4968_v12  }
0x2f1a   :  { %v4625_v63 = vmax.f32 %v4621_v59, 0.0  ;;  %7539 = vmatpush3.bf16.msra.mxu0 %v7536_v3  ;;  %5128 = vperm.xlu1 %7708, %v5122_v5  }
0x2f1b   :  { %7541 = vmatprep.subr.bf16.mxu0 %v7540_v30 }
0x2f1c   :  { %6888 = vmatprep.mubr.f32.mxu0 %v4625_v63 }
0x2f1d   :  { %6889 = vmatmul.mubr.f32.gmra.mrb[46].mxu0 %v4626_v55  ;;  %4987 = vperm.xlu0 %7707, %v4969_v38  }
0x2f1e   :  { %7543 = vmatpush3.bf16.msra.mxu0 %v7540_v30  ;;  %6933 = vmatprep.mubr.f32.mxu0 %v4623_v6  ;;  %v5989_v6 = vld [vmem:[#allocation3 + $0x5d0] ss:$0 sm:$0xff] }
0x2f1f   :  { %7545 = vmatprep.subr.bf16.mxu0 %v7544_v26  ;;  %5138 = vperm.xlu1 %7708, %v5124_v42  }
0x2f21   :  { %5133 = vperm.xlu0 %7707, %v5123_v53  }
0x2f22   :  { %7547 = vmatpush3.bf16.msra.mxu0 %v7544_v26 }
0x2f23   :  { %7549 = vmatprep.subr.bf16.mxu0 %v7548_v48 }
0x2f25   :  { %5143 = vperm.xlu0 %7707, %v5125_v47  }
0x2f26   :  { %7551 = vmatpush3.bf16.msra.mxu0 %v7548_v48 }
0x2f27   :  { %7553 = vmatprep.subr.bf16.mxu0 %v7552_v50 }
0x2f2a   :  { %7555 = vmatpush3.bf16.msra.mxu0 %v7552_v50 }
0x2f2b   :  { %7557 = vmatprep.subr.bf16.mxu0 %v7556_v25 }
0x2f2e   :  { %7559 = vmatpush3.bf16.msra.mxu0 %v7556_v25 }
0x2f2f   :  { %7561 = vmatprep.subr.bf16.mxu0 %v7560_v39 }
0x2f32   :  { %7563 = vmatpush3.bf16.msra.mxu0 %v7560_v39 }
0x2f33   :  { %7565 = vmatprep.subr.bf16.mxu0 %v7564_v57 }
0x2f36   :  { %7567 = vmatpush3.bf16.msra.mxu0 %v7564_v57 }
0x2f39   :  { %6934 = vmatmul.mubr.f32.vlgmr.msra.gmra.mrb[48].mxu0 %v4624_v28 }
0x2f3a   :  { %6936 = vmatprep.mubr.f32.mxu0 %v4625_v63 }
0x2f3d   :  { %6937 = vmatmul.mubr.f32.gmra.mrb[50].mxu0 %v4626_v55 }
0x2fec   :  { %v6887_v21 = vpop.f32.mrb[44].mxu0 }
0x2fed   :  { %v4720_v41 = vadd.f32 %v6887_v21, %v5982_v24  ;;  %v4714_v7 = vpop.f32.mrb[45].mxu0  ;;  %v5118_v21 = vld [vmem:[#allocation3 + $0x628] sm:$0xff] }
0x2fee   :  { %v4715_v46 = vadd.f32 %v5982_v24, %v4714_v7 }
0x2fef   :  { %v4734_v34 = vmax.f32 %v4720_v41, 0.0  ;;  %v4973_v41 = vpop.permute.xlu0 %4972 }
0x2ff0   :  { %v4733_v49 = vmax.f32 %v4715_v46, 0.0  ;;  %v6890_v33 = vpop.f32.mrb[46].mxu0  ;;  %v4978_v46 = vpop.permute.xlu1 %4977 }
0x2ff1   :  { %v4730_v2 = vadd.f32 %v6890_v33, %v5982_v24  ;;  %v4724_v29 = vpop.f32.mrb[47].mxu0 }
0x2ff2   :  { %v4725_v32 = vadd.f32 %v5982_v24, %v4724_v29  ;;  %6895 = vmatprep.mubr.msk.f32.mxu1 %vm2172_vm5, %v4733_v49  ;;  %v4965_v24 = vld [vmem:[#allocation3 + $0x5f0] sm:$0xff] }
0x2ff3   :  { %6896 = vmatmul.mubr.msk.f32.vlgmr.msra.gmra.mrb[34].mxu1 %vm2172_vm5, %v4734_v34  ;;  %v4736_v35 = vmax.f32 %v4730_v2, 0.0  ;;  %v4983_v7 = vpop.permute.xlu0 %4982 }
0x2ff4   :  { %v4735_v3 = vmax.f32 %v4725_v32, 0.0  ;;  %v5994_v32 = vld [vmem:[#allocation3 + $0x618] ss:$0 sm:$0xff] }
0x2ff6   :  { %6898 = vmatprep.mubr.msk.f32.mxu1 %vm2172_vm5, %v4735_v3 }
0x2ff7   :  { %6899 = vmatmul.mubr.msk.f32.gmra.mrb[36].mxu1 %vm2172_vm5, %v4736_v35  ;;  %v4988_v3 = vpop.permute.xlu0 %4987 }
0x2ff8   :  { %6947 = vmatprep.mubr.msk.f32.mxu1 %vm4990_vm0, %v4962_v56  ;;  %v5995_v56 = vld [vmem:[#allocation3 + $0x620] ss:$0 sm:$0xff] }
0x300c   :  { %v6935_v18 = vpop.f32.mrb[48].mxu0 }
0x300d   :  { %v4935_v17 = vpop.f32.mrb[49].mxu0  ;;  %v4941_v59 = vadd.f32 %v6935_v18, %v5989_v6 }
0x300e   :  { %v4936_v20 = vadd.f32 %v5989_v6, %v4935_v17 }
0x3010   :  { %v6938_v19 = vpop.f32.mrb[50].mxu0 }
0x3011   :  { %v4945_v22 = vpop.f32.mrb[51].mxu0  ;;  %v4951_v40 = vadd.f32 %v6938_v19, %v5989_v6 }
0x3012   :  { %v4946_v37 = vadd.f32 %v5989_v6, %v4945_v22 }
0x30c6   :  { %v6897_v43 = vpop.f32.mrb[34].mxu1 }
0x30c7   :  { %v4831_v28 = vadd.f32 %v6897_v43, %v5983_v62  ;;  %v4825_v27 = vpop.f32.mrb[35].mxu1 }
0x30c8   :  { %v4826_v30 = vadd.f32 %v5983_v62, %v4825_v27 }
0x30c9   :  { %v4845_v61 = vmax.f32 %v4831_v28, 0.0 }
0x30ca   :  { %v4844_v63 = vmax.f32 %v4826_v30, 0.0  ;;  %v6900_v55 = vpop.f32.mrb[36].mxu1  ;;  %v5244_v30 = vld [vmem:[%s9285_s4 + $0x8] sm:$0xff] }
0x30cb   :  { %v4955_v26 = vadd.f32 %v4941_v59, %v4845_v61  ;;  %v4841_v54 = vadd.f32 %v6900_v55, %v5983_v62  ;;  %v4835_v58 = vpop.f32.mrb[37].mxu1  ;;  %v5246_v59 = vld [vmem:[%s9285_s4 + $0x18] sm:$0xf]  ;;  %v5243_v55 = vld [vmem:[%s9285_s4] sm:$0xff] }
0x30cc   :  { %v4954_v48 = vadd.f32 %v4936_v20, %v4844_v63  ;;  %v4836_v1 = vadd.f32 %v5983_v62, %v4835_v58  ;;  %v7584_v63 = vpack.c.bf16 %v5246_v59, %v5244_v30  ;;  %v5402_v30 = vadd.s32 216, %v8088_v45 }
0x30cd   :  { %v4959_v50 = vmax.f32 %v4955_v26, 0.0  ;;  %v4847_v4 = vmax.f32 %v4841_v54, 0.0  ;;  %v5245_v26 = vld [vmem:[%s9285_s4 + $0x10] sm:$0xf]  ;;  %s7891_s4 = smov [#allocation6]  }
0x30ce   :  { %v4958_v25 = vmax.f32 %v4954_v48, 0.0  ;;  %v4846_v8 = vmax.f32 %v4836_v1, 0.0  ;;  %v5119_v54 = vld [vmem:[#allocation3 + $0x630] sm:$0xff]  ;;  %v7587_v58 = vpack.c.bf16 %v5245_v26, %v5243_v55  ;;  %v5120_v48 = vld [vmem:[#allocation3 + $0x638] sm:$0xff]  ;;  %v5121_v1 = vld [vmem:[#allocation3 + $0x640] sm:$0xff]  ;;  %v5385_v26 = vadd.s32 80, %v8088_v45 }
0x30cf   :  { %v4957_v9 = vadd.f32 %v4951_v40, %v4847_v4  ;;  %v9007_v40 = vand.u32 127, %v71_v44  ;;  %v5392_v4 = vadd.s32 136, %v8088_v45  ;;  %v9017_v44 = vand.u32 15, %v8088_v45  ;;  %s5838_s3 = sshll.u32 %s7891_s4, 4  ;;  %s5839_s3 = int_to_ptr.vmem [resolvable:$true] %s5838_s3 }
0x30d0   :  { %v4956_v39 = vadd.f32 %v4946_v37, %v4846_v8  ;;  %v7568_v10 = vpack.c.bf16 %v4959_v50, %v4958_v25  ;;  %v5391_v50 = vadd.s32 128, %v8088_v45  ;;  %v5393_v8 = vadd.s32 144, %v8088_v45  ;;  %s7851_s13 = scalar_lea.vmem %s5839_s3, 32  ;;  %p7856_p9 = scmp.lt.s32.totalorder %s5839_s3, %s5839_s3 }
0x30d1   :  { %v4961_v60 = vmax.f32 %v4957_v9, 0.0  ;;  %v5420_v25 = vand.u32 15, %v5392_v4  ;;  %v5394_v9 = vadd.s32 152, %v8088_v45  ;;  %p7852_p8 = scmp.ne.s32.totalorder %s5839_s3, %s7851_s13  ;;  %p7857_p10 = scmp.lt.s32.totalorder %s7851_s13, %s7851_s13 }
0x30d2   :  { %v4960_v57 = vmax.f32 %v4956_v39, 0.0  ;;  %7569 = vmatprep.subr.bf16.mxu1 %v7568_v10  ;;  %v5419_v37 = vand.u32 15, %v5391_v50  ;;  %v9020_v39 = vand.u32 15, %v8774_v11  ;;  %v5379_v11 = vadd.s32 32, %v8088_v45  ;;  %v6046_v50 = vld [vmem:[#allocation3 + $0x668] ss:$0 sm:$0xff] }
0x30d3   :  { %7571 = vmatpush3.bf16.msra.mxu1 %v7568_v10  ;;  %vm5452_vm10 = vcmp.eq.s32.totalorder %v5420_v25, %v9007_v40  ;;  %v5421_v10 = vand.u32 15, %v5393_v8  ;;  %v5430_v25 = vand.u32 15, %v5402_v30  ;;  %p7858_p11 = por %p7857_p10, %p7856_p9 }
0x30d4   :  { %v7572_v51 = vpack.c.bf16 %v4961_v60, %v4960_v57  ;;  %vm5451_vm9 = vcmp.eq.s32.totalorder %v5419_v37, %v9007_v40  ;;  %v5422_v60 = vand.u32 15, %v5394_v9  ;;  %v5395_v57 = vadd.s32 160, %v8088_v45  ;;  %v5751_v9 = vld [vmem:[#allocation3 + $0x688] sm:$0xff] }
0x30d5   :  { %vm7590_vm11 = vmpackc.low %vm5452_vm10, %vm5451_vm9  ;;  %vm5436_vm12 = vcmp.eq.s32.totalorder %v9020_v39, %v9007_v40  ;;  %vm9039_vm13 = vcmp.eq.s32.totalorder %v5421_v10, %v9007_v40  ;;  %v5403_v10 = vadd.s32 224, %v8088_v45  ;;  %p7859_p12 = pnand %p7858_p11, %p7852_p8 }
0x30d6   :  { %7573 = vmatprep.subr.bf16.mxu1 %v7572_v51  ;;  %vm9044_vm14 = vcmp.eq.s32.totalorder %v5422_v60, %v9007_v40  ;;  %v5404_v60 = vadd.s32 232, %v8088_v45 }
0x30d7   :  { %7575 = vmatpush3.bf16.msra.mxu1 %v7572_v51  ;;  %v5396_v51 = vadd.s32 168, %v8088_v45 }
0x30da   :  { %6948 = vmatmul.mubr.msk.f32.vlgmr.msra.gmra.mrb[38].mxu1 %vm4990_vm0, %v4963_v23  ;;  %v9029_v23 = vand.u32 15, %v8780_v15  ;;  %v5387_v15 = vadd.s32 96, %v8088_v45 }
0x30db   :  { %6950 = vmatprep.mubr.msk.f32.mxu1 %vm4990_vm0, %v4964_v13  ;;  %v9032_v13 = vand.u32 15, %v8786_v16  ;;  %v5423_v16 = vand.u32 15, %v5395_v57 }
0x30dc   :  { %vm5437_vm1 = vcmp.eq.s32.totalorder %v9029_v23, %v9007_v40 }
0x30dd   :  { %vm5438_vm2 = vcmp.eq.s32.totalorder %v9032_v13, %v9007_v40 }
0x30de   :  { %6951 = vmatmul.mubr.msk.f32.gmra.mrb[40].mxu1 %vm4990_vm0, %v4965_v24  ;;  %v5380_v24 = vadd.s32 40, %v8088_v45 }
0x30df   :  { %6961 = vmatprep.mubr.msk.f32.mxu1 %vm4990_vm0, %v5118_v21  ;;  %v5397_v21 = vadd.s32 176, %v8088_v45 }
0x31ad   :  { %v6949_v49 = vpop.f32.mrb[38].mxu1 }
0x31ae   :  { %v5075_v33 = vadd.f32 %v6949_v49, %v4978_v46  ;;  %v5069_v34 = vpop.f32.mrb[39].mxu1  ;;  %v5424_v49 = vand.u32 15, %v5396_v51  ;;  %v5413_v51 = vand.u32 15, %v5385_v26 }
0x31af   :  { %v5070_v2 = vadd.f32 %v5069_v34, %v4973_v41  ;;  %v5398_v41 = vadd.s32 184, %v8088_v45 }
0x31b0   :  { %vm5089_vm3 = vcmp.gt.f32.partialorder %v5075_v33, 0.0  ;;  %v5093_v29 = vmul.f32 0.01, %v5075_v33 }
0x31b1   :  { %vm5088_vm4 = vcmp.gt.f32.partialorder %v5070_v2, 0.0  ;;  %v5092_v35 = vmul.f32 0.01, %v5070_v2  ;;  %v6952_v18 = vpop.f32.mrb[40].mxu1 }
0x31b2   :  { %v5097_v17 = vsel %vm5089_vm3, %v5075_v33, %v5093_v29  ;;  %v5085_v19 = vadd.f32 %v6952_v18, %v4988_v3  ;;  %v5079_v22 = vpop.f32.mrb[41].mxu1  ;;  %v5129_v33 = vpop.permute.xlu1 %5128  ;;  %v5382_v3 = vadd.s32 56, %v8088_v45  ;;  %vm7594_vm3 = vmpackc.low %vm9044_vm14, %vm9039_vm13  ;;  %v5408_v18 = vand.u32 15, %v5380_v24 }
0x31b3   :  { %v5106_v14 = vmul.f32 %v5994_v32, %v5097_v17  ;;  %v5096_v36 = vsel %vm5088_vm4, %v5070_v2, %v5092_v35  ;;  %v5080_v52 = vadd.f32 %v5079_v22, %v4983_v7  ;;  %v5381_v2 = vadd.s32 48, %v8088_v45 }
0x31b4   :  { %v5105_v12 = vmul.f32 %v5994_v32, %v5096_v36  ;;  %vm5091_vm6 = vcmp.gt.f32.partialorder %v5085_v19, 0.0  ;;  %v5095_v5 = vmul.f32 0.01, %v5085_v19  ;;  %v5407_v35 = vand.u32 15, %v5379_v11 }
0x31b5   :  { %vm5090_vm7 = vcmp.gt.f32.partialorder %v5080_v52, 0.0  ;;  %v5094_v38 = vmul.f32 0.01, %v5080_v52  ;;  %v5115_v42 = vadd.f32 %v5995_v56, %v5106_v14  ;;  %v5425_v17 = vand.u32 15, %v5397_v21 }
0x31b6   :  { %v5099_v53 = vsel %vm5091_vm6, %v5085_v19, %v5095_v5  ;;  %v5114_v47 = vadd.f32 %v5995_v56, %v5105_v12  ;;  %v5426_v19 = vand.u32 15, %v5398_v41  ;;  %vm9070_vm4 = vcmp.eq.s32.totalorder %v5423_v16, %v9007_v40  ;;  %v5134_v12 = vpop.permute.xlu0 %5133  ;;  %v5139_v55 = vpop.permute.xlu1 %5138 }
0x31b7   :  { %v5108_v62 = vmul.f32 %v5994_v32, %v5099_v53  ;;  %v5098_v6 = vsel %vm5090_vm7, %v5080_v52, %v5094_v38  ;;  %vm9075_vm6 = vcmp.eq.s32.totalorder %v5424_v49, %v9007_v40  ;;  %v5399_v36 = vadd.s32 192, %v8088_v45  ;;  %vm9097_vm7 = vmpackc.low %vm5438_vm2, %vm5437_vm1 }
0x31b8   :  { %v5107_v43 = vmul.f32 %v5994_v32, %v5098_v6  ;;  %v7576_v28 = vpack.c.bf16 %v5115_v42, %v5114_v47  ;;  %v5400_v52 = vadd.s32 200, %v8088_v45  ;;  %v5409_v38 = vand.u32 15, %v5381_v2  ;;  %vm7598_vm9 = vmpackc.low %vm9075_vm6, %vm9070_vm4 }
0x31b9   :  { %v5117_v27 = vadd.f32 %v5995_v56, %v5108_v62  ;;  %v5410_v47 = vand.u32 15, %v5382_v3  ;;  %v5383_v62 = vadd.s32 64, %v8088_v45  ;;  %v5384_v6 = vadd.s32 72, %v8088_v45 }
0x31ba   :  { %7577 = vmatprep.subr.bf16.mxu1 %v7576_v28  ;;  %v5116_v61 = vadd.f32 %v5995_v56, %v5107_v43  ;;  %vm9108_vm10 = vcmp.eq.s32.totalorder %v5407_v35, %v9007_v40  ;;  %v5144_v57 = vpop.permute.xlu0 %5143  ;;  %v5388_v16 = vadd.s32 104, %v8088_v45  ;;  %v5431_v49 = vand.u32 15, %v5403_v10  ;;  %v5752_v10 = vld [vmem:[#allocation3 + $0x690] sm:$0xff] }
0x31bb   :  { %7579 = vmatpush3.bf16.msra.mxu1 %v7576_v28  ;;  %vm9151_vm1 = vcmp.eq.s32.totalorder %v5410_v47, %v9007_v40  ;;  %v5406_v2 = vadd.s32 248, %v8088_v45  ;;  %v5415_v3 = vand.u32 15, %v5387_v15 }
0x31bc   :  { %v7580_v20 = vpack.c.bf16 %v5117_v27, %v5116_v61  ;;  %v5401_v27 = vadd.s32 208, %v8088_v45  ;;  %v5416_v35 = vand.u32 15, %v5388_v16 }
0x31be   :  { %7581 = vmatprep.subr.bf16.mxu1 %v7580_v20  ;;  %v5429_v37 = vand.u32 15, %v5401_v27 }
0x31bf   :  { %7583 = vmatpush3.bf16.msra.mxu1 %v7580_v20  ;;  %v5427_v20 = vand.u32 15, %v5399_v36  ;;  %v5356_v36 = vadd.s32 128, %v9007_v40 }
0x31c0   :  { %7586 = vmatprep.subr.msk.bf16.mxu1 %vm8663_vm8, %v7584_v63  ;;  %v5428_v63 = vand.u32 15, %v5400_v52 }
0x31c1   :  { %vm9157_vm2 = vcmp.eq.s32.totalorder %v5427_v20, %v9007_v40  ;;  %v5358_v52 = vshra.s32 %v5356_v36, 4 }
0x31c2   :  { %6962 = vmatmul.mubr.msk.f32.vlgmr.msra.gmra.mrb[42].mxu1 %vm4990_vm0, %v5119_v54 }
0x31c3   :  { %6964 = vmatprep.mubr.msk.f32.mxu1 %vm4990_vm0, %v5120_v48  ;;  %7589 = vmatpush1.bf16.msk.msra.mxu1 %vm8663_vm8, %v7587_v58  ;;  %vm5435_vm8 = vcmp.eq.s32.totalorder %v9017_v44, %v9007_v40  ;;  %v5411_v58 = vand.u32 15, %v5383_v62  ;;  %v5412_v48 = vand.u32 15, %v5384_v6 }
0x31c4   :  { %7591 = vmatprep.subr.msk.bf16.mxu1 %vm7590_vm11, %v7888_v31  ;;  %vm9055_vm15 = vmpackc.low %vm5436_vm12, %vm5435_vm8  ;;  %vm9113_vm11 = vcmp.eq.s32.totalorder %v5408_v18, %v9007_v40  ;;  %vm9121_vm8 = vcmp.eq.s32.totalorder %v5425_v17, %v9007_v40  ;;  %vm9126_vm12 = vcmp.eq.s32.totalorder %v5426_v19, %v9007_v40  ;;  %v5434_v17 = vand.u32 15, %v5406_v2 }
0x31c5   :  { %vm7600_vm13 = vmpackc.low %vm9113_vm11, %vm9108_vm10  ;;  %vm9181_vm6 = vcmp.eq.s32.totalorder %v5411_v58, %v9007_v40  ;;  %vm9195_vm10 = vcmp.eq.s32.totalorder %v5429_v37, %v9007_v40  ;;  %vm9200_vm11 = vcmp.eq.s32.totalorder %v5430_v25, %v9007_v40  ;;  %v5389_v19 = vadd.s32 112, %v8088_v45  ;;  %v5667_v58 = vld [vmem:[#allocation3 + $0x670] sm:$0xff] }
0x31c6   :  { %6965 = vmatmul.mubr.msk.f32.gmra.mrb[44].mxu1 %vm4990_vm0, %v5121_v1  ;;  %v5386_v1 = vadd.s32 88, %v8088_v45  ;;  %vm7602_vm14 = vmpackc.low %vm9126_vm12, %vm9121_vm8  ;;  %vm9220_vm12 = vcmp.eq.s32.totalorder %v5413_v51, %v9007_v40 }
0x31c7   :  { %5329 = vmatprep.mubr.f32.mxu1 %v7880_v0  ;;  %v5417_v56 = vand.u32 15, %v5389_v19 }
0x31c8   :  { %v5414_v41 = vand.u32 15, %v5386_v1 }
0x3295   :  { %v6963_v7 = vpop.f32.mrb[42].mxu1 }
0x3296   :  { %v5224_v34 = vpop.f32.mrb[43].mxu1  ;;  %v5230_v42 = vadd.f32 %v6963_v7, %v5134_v12  ;;  %v5357_v12 = vshra.s32 %v9007_v40, 4  ;;  %v6050_v7 = vld [vmem:[#allocation3 + $0x698] ss:$0 sm:$0xff] }
0x3297   :  { %v5225_v29 = vadd.f32 %v5224_v34, %v5129_v33  ;;  %v5432_v33 = vand.u32 15, %v5404_v60  ;;  %v5405_v34 = vadd.s32 240, %v8088_v45  ;;  %v7632_v60 = vpack.c.bf16 %v5752_v10, %v5751_v9 }
0x3299   :  { %v6966_v22 = vpop.f32.mrb[44].mxu1  ;;  %6002 = vmatmul.mubr.msk.f32.vlgmr.msra.gmra.mrb[46].mxu1 %vm2172_vm5, %v5225_v29  ;;  %v5433_v18 = vand.u32 15, %v5405_v34 }
0x329a   :  { %v5234_v5 = vpop.f32.mrb[45].mxu1  ;;  %5335 = vmatprep.mubr.f32.mxu1 %v7880_v0  ;;  %7593 = vmatpush3.bf16.msk.msra.mxu1 %vm9055_vm15, %v7888_v31  ;;  %vm9146_vm15 = vcmp.eq.s32.totalorder %v5409_v38, %v9007_v40  ;;  %v5240_v11 = vadd.f32 %v6966_v22, %v5144_v57  ;;  %v5390_v22 = vadd.s32 120, %v8088_v45  ;;  %v6048_v57 = vld [vmem:[#allocation3 + $0x680] ss:$0 sm:$0xff] }
0x329b   :  { %7595 = vmatprep.subr.msk.bf16.mxu1 %vm7594_vm3, %v7888_v31  ;;  %v5235_v54 = vadd.f32 %v5234_v5, %v5139_v55  ;;  %vm9162_vm3 = vcmp.eq.s32.totalorder %v5428_v63, %v9007_v40  ;;  %vm7604_vm4 = vmpackc.low %vm9151_vm1, %vm9146_vm15  ;;  %vm5464_vm15 = vcmp.eq.s32.totalorder %v5432_v33, %v9007_v40 }
0x329c   :  { %v5418_v14 = vand.u32 15, %v5390_v22 }
0x329d   :  { %6003 = vmatmul.mubr.msk.f32.gmra.mrb[48].mxu1 %vm2172_vm5, %v5230_v42 }
0x329e   :  { %5341 = vmatprep.mubr.f32.mxu1 %v7880_v0  ;;  %7597 = vmatpush3.bf16.msk.msra.mxu1 %vm9097_vm7, %v7888_v31  ;;  %vm9186_vm7 = vcmp.eq.s32.totalorder %v5412_v48, %v9007_v40  ;;  %v5668_v48 = vld [vmem:[#allocation3 + $0x678] sm:$0xff] }
0x329f   :  { %7599 = vmatprep.subr.msk.bf16.mxu1 %vm7598_vm9, %v7888_v31  ;;  %vm7606_vm9 = vmpackc.low %vm9162_vm3, %vm9157_vm2  ;;  %vm5447_vm3 = vcmp.eq.s32.totalorder %v5415_v3, %v9007_v40  ;;  %v7629_v1 = vpack.c.bf16 %v5668_v48, %v5667_v58 }
0x32a0   :  { %vm7608_vm8 = vmpackc.low %vm9186_vm7, %vm9181_vm6  ;;  %vm5465_vm6 = vcmp.eq.s32.totalorder %v5433_v18, %v9007_v40  ;;  %vm5466_vm7 = vcmp.eq.s32.totalorder %v5434_v17, %v9007_v40 }
0x32a1   :  { %6004 = vmatmul.mubr.msk.f32.gmra.mrb[50].mxu1 %vm2172_vm5, %v5235_v54 }
0x32a2   :  { %5347 = vmatprep.mubr.f32.mxu1 %v7880_v0  ;;  %7601 = vmatpush3.bf16.msk.msra.mxu1 %vm7600_vm13, %v7888_v31  ;;  %vm9225_vm13 = vcmp.eq.s32.totalorder %v5414_v41, %v9007_v40 }
0x32a3   :  { %7603 = vmatprep.subr.msk.bf16.mxu1 %vm7602_vm14, %v7888_v31  ;;  %vm5463_vm14 = vcmp.eq.s32.totalorder %v5431_v49, %v9007_v40  ;;  %vm7612_vm1 = vmpackc.low %vm9225_vm13, %vm9220_vm12  ;;  %vm5364_vm12 = vcmp.eq.s32.totalorder %v5358_v52, %v9017_v44  ;;  %vm5363_vm13 = vcmp.eq.s32.totalorder %v5357_v12, %v9017_v44 }
0x32a4   :  { %vm7614_vm2 = vmpackc.low %vm5464_vm15, %vm5463_vm14  ;;  %vm5366_vm14 = vcmp.eq.s32.totalorder %v5358_v52, %v9020_v39  ;;  %vm5365_vm15 = vcmp.eq.s32.totalorder %v5357_v12, %v9020_v39  ;;  %v7889_v39 = vmov 0.0|0.0  }
0x32a5   :  { %6005 = vmatmul.mubr.msk.f32.gmra.mrb[52].mxu1 %vm2172_vm5, %v5240_v11  ;;  %vm7610_vm5 = vmpackc.low %vm9200_vm11, %vm9195_vm10  ;;  %vm5449_vm11 = vcmp.eq.s32.totalorder %v5417_v56, %v9007_v40  ;;  %7622 = vmatprep.subr.bf16.mxu0 %v7889_v39 }
0x32a6   :  { %7605 = vmatpush3.bf16.msk.msra.mxu1 %vm7604_vm4, %v7888_v31  ;;  %vm5448_vm4 = vcmp.eq.s32.totalorder %v5416_v35, %v9007_v40  ;;  %vm7618_vm10 = vmpackc.low %vm5466_vm7, %vm5465_vm6  ;;  %vm7890_vm6 = vmmov 0   ;;  %vm5584_vm7 = vcmp.eq.s32.totalorder %v5357_v12, %v8088_v45 }
0x32a7   :  { %7607 = vmatprep.subr.msk.bf16.mxu1 %vm7606_vm9, %v7888_v31  ;;  %vm7616_vm9 = vmpackc.low %vm5448_vm4, %vm5447_vm3  ;;  %vm5370_vm3 = vcmp.eq.s32.totalorder %v5358_v52, %v9032_v13  ;;  %vm5369_vm4 = vcmp.eq.s32.totalorder %v5357_v12, %v9032_v13  ;;  %6975 = vmatprep.mubr.msk.f32.mxu0 %vm7890_vm6, %v7880_v0  ;;  %v5585_v54 = vsel %vm5584_vm7, 1.0, %v7880_v0 }
0x32aa   :  { %7609 = vmatpush3.bf16.msk.msra.mxu1 %vm7608_vm8, %v7888_v31  ;;  %vm5450_vm8 = vcmp.eq.s32.totalorder %v5418_v14, %v9007_v40 }
0x32ab   :  { %7611 = vmatprep.subr.msk.bf16.mxu1 %vm7610_vm5, %v7888_v31  ;;  %vm7620_vm5 = vmpackc.low %vm5450_vm8, %vm5449_vm11 }
0x32ae   :  { %7613 = vmatpush3.bf16.msk.msra.mxu1 %vm7612_vm1, %v7888_v31  ;;  %vm5368_vm1 = vcmp.eq.s32.totalorder %v5358_v52, %v9029_v23 }
0x32af   :  { %7615 = vmatprep.subr.msk.bf16.mxu1 %vm7614_vm2, %v7888_v31  ;;  %vm5367_vm2 = vcmp.eq.s32.totalorder %v5357_v12, %v9029_v23 }
0x32b2   :  { %7617 = vmatpush3.bf16.msk.msra.mxu1 %vm7616_vm9, %v7888_v31 }
0x32b3   :  { %7619 = vmatprep.subr.msk.bf16.mxu1 %vm7618_vm10, %v7888_v31  ;;  %vm5674_vm10 = vcmask 130048  }
0x32b6   :  { %7621 = vmatpush3.bf16.msk.msra.mxu1 %vm7620_vm5, %v7888_v31 }
0x336c   :  { %v5331_v5 = vpop.f32.mrb[46].mxu1 }
0x336d   :  { %v5333_v38 = vpop.f32.mrb[47].mxu1 }
0x336e   :  { %6038 = vmatprep.mubr.msk.f32.mxu1 %vm5364_vm12, %v5333_v38 }
0x336f   :  { %6039 = vmatmul.mubr.msk.f32.vlgmr.msra.gmra.mrb[54].mxu1 %vm5363_vm13, %v5331_v5 }
0x3370   :  { %v5337_v42 = vpop.f32.mrb[48].mxu1 }
0x3371   :  { %v5339_v53 = vpop.f32.mrb[49].mxu1 }
0x3372   :  { %6040 = vmatprep.mubr.msk.f32.mxu1 %vm5366_vm14, %v5339_v53 }
0x3373   :  { %6041 = vmatmul.mubr.msk.f32.gmra.mrb[56].mxu1 %vm5365_vm15, %v5337_v42 }
0x3374   :  { %v5343_v31 = vpop.f32.mrb[50].mxu1 }
0x3375   :  { %v5345_v40 = vpop.f32.mrb[51].mxu1 }
0x3376   :  { %6042 = vmatprep.mubr.msk.f32.mxu1 %vm5368_vm1, %v5345_v40 }
0x3377   :  { %6043 = vmatmul.mubr.msk.f32.gmra.mrb[58].mxu1 %vm5367_vm2, %v5343_v31 }
0x3378   :  { %v5349_v44 = vpop.f32.mrb[52].mxu1 }
0x3379   :  { %v5351_v47 = vpop.f32.mrb[53].mxu1 }
0x337a   :  { %6044 = vmatprep.mubr.msk.f32.mxu1 %vm5370_vm3, %v5351_v47 }
0x337b   :  { %6045 = vmatmul.mubr.msk.f32.gmra.mrb[60].mxu1 %vm5369_vm4, %v5349_v44 }
0x3442   :  { %v6386_v62 = vpop.f32.mrb[54].mxu1 }
0x3443   :  { %v6387_v6 = vpop.f32.mrb[55].mxu1 }
0x3444   :  { %v6388_v23 = vadd.f32 %v6387_v6, %v6386_v62 }
0x3446   :  { %v6389_v43 = vpop.f32.mrb[56].mxu1 }
0x3447   :  { %v6390_v28 = vpop.f32.mrb[57].mxu1 }
0x3448   :  { %v6391_v27 = vadd.f32 %v6390_v28, %v6389_v43 }
0x344a   :  { %v7623_v30 = vpack.c.bf16 %v6391_v27, %v6388_v23  ;;  %v6392_v59 = vpop.f32.mrb[58].mxu1 }
0x344b   :  { %v6393_v61 = vpop.f32.mrb[59].mxu1 }
0x344c   :  { %v6394_v20 = vadd.f32 %v6393_v61, %v6392_v59  ;;  %7624 = vmatpush3.bf16.msra.mxu0 %v7623_v30 }
0x344d   :  { %7625 = vmatprep.subr.bf16.mxu0 %v7889_v39 }
0x344e   :  { %v6395_v13 = vpop.f32.mrb[60].mxu1 }
0x344f   :  { %v6396_v63 = vpop.f32.mrb[61].mxu1 }
0x3450   :  { %v6397_v55 = vadd.f32 %v6396_v63, %v6395_v13 }
0x3452   :  { %v7626_v26 = vpack.c.bf16 %v6397_v55, %v6394_v20 }
0x3454   :  { %7627 = vmatpush3.bf16.msra.mxu0 %v7626_v26 }
0x3455   :  { %7628 = vmatprep.subr.bf16.mxu0 %v7889_v39 }
0x3457   :  { %6976 = vmatmul.mubr.msk.f32.vlgmr.msra.gmra.mrb[52].mxu0 %vm4990_vm0, %v5585_v54 }
0x3458   :  { %6982 = vmatprep.mubr.msk.f32.mxu0 %vm7890_vm6, %v7880_v0  ;;  %7630 = vmatpush3.bf16.msra.mxu0 %v7629_v1 }
0x3459   :  { %7631 = vmatprep.subr.bf16.mxu0 %v7889_v39 }
0x352a   :  { %v5660_v4 = vpop.f32.mrb[52].mxu0 }
0x352b   :  { %v5661_v37 = vadd.f32 %v6046_v50, %v5660_v4  ;;  %v6977_v25 = vpop.f32.mrb[53].mxu0 }
0x352d   :  { %vm5664_vm9 = vcmp.gt.f32.partialorder %v5661_v37, 0.0  ;;  %v5665_v45 = vmul.f32 0.01, %v5661_v37 }
0x352f   :  { %v5666_v8 = vsel %vm5664_vm9, %v5661_v37, %v5665_v45 }
0x3530   :  { %6983 = vmatmul.mubr.msk.f32.vlgmr.msra.gmra.mrb[54].mxu0 %vm5674_vm10, %v5666_v8 }
0x3531   :  { %6989 = vmatprep.mubr.msk.f32.mxu0 %vm7890_vm6, %v7880_v0  ;;  %7633 = vmatpush3.bf16.msra.mxu0 %v7632_v60 }
0x3603   :  { %v5744_v51 = vpop.f32.mrb[54].mxu0 }
0x3604   :  { %v5745_v11 = vadd.f32 %v6048_v57, %v5744_v51  ;;  %v6984_v24 = vpop.f32.mrb[55].mxu0 }
0x3606   :  { %vm5748_vm0 = vcmp.gt.f32.partialorder %v5745_v11, 0.0  ;;  %v5749_v21 = vmul.f32 0.01, %v5745_v11 }
0x3608   :  { %v5750_v41 = vsel %vm5748_vm0, %v5745_v11, %v5749_v21 }
0x3609   :  { %6990 = vmatmul.mubr.msk.f32.vlgmr.msra.gmra.mrb[56].mxu0 %vm5674_vm10, %v5750_v41 }
0x36dc   :  { %v5827_v46 = vpop.f32.mrb[56].mxu0 }
0x36dd   :  { %v5828_v15 = vadd.f32 %v6050_v7, %v5827_v46  ;;  %v6991_v16 = vpop.f32.mrb[57].mxu0 }
0x36df   :  { %5831 = vst [vmem:[#allocation6] sm:$0x3] %v5828_v15 }
0x36e0   :  { %7862 = shalt.err (!%p7859_p12)
}
0x36e1   :  { %s7863_s0 = scalar_lea.hbm %s9286_s5, 32 }
0x36e2   :  { %p7864_p13 = scmp.ne.s32.totalorder %s9286_s5, %s7863_s0  ;;  %p7867_p0 = scmp.lt.u32.totalorder %s7863_s0, %s9286_s5 }
0x36e4   :  { %p7869_p1 = pnand %p7867_p0, %p7864_p13 }
0x36e6   :  { %7872 = shalt.err (!%p7869_p1)
}
0x36e7   :  { %5841 = dma.vmem_to_hbm [thread:$0]  %s5839_s3, 32, %s9286_s5, [#allocation5]  }
0x36e8   :  { %7875 = dma.done.wait [#allocation5], 32  }
0x36e9   :  { %7876 = vsyncadd [#allocation5], 4294967264 }
0x36ea   :  { %5845 = vsyncpa [#allocation4], 1 }
0x36eb   :  { %5846 = vsyncpa [#allocation5], 1 }

</bundles_post_ra>
